<compile_context>
chip_gen: v7x
topology: tpu7x:2x2x1
jax: 0.10.0
libtpu: 0.0.40
codegen_flags: <defaults>
</compile_context>

<pallas_src>
import functools

import numpy as np
import jax
import jax.numpy as jnp
from jax.experimental import pallas as pl
from jax.experimental.pallas import tpu as pltpu

# ----------------------------- static config -------------------------------
HISTORY_NUM_FRAMES = 10
FUTURE_LEN = 8                                   # cfg['model_params']['future_num_frames']
NUM_MODES = 3
NUM_IN_CHANNELS = 3 + (HISTORY_NUM_FRAMES + 1) * 2   # 25 (matches the [:, 0:25] slice)
NUM_TARGETS = 2 * FUTURE_LEN
NUM_PREDS = NUM_TARGETS * NUM_MODES              # 48
FC_OUT = NUM_PREDS + NUM_MODES                   # 51

C_STEM = 32
BLOCK_CFGS = [
    # scaled-down MBConv stack (same structure as EfficientNet blocks)
    dict(cin=32, cout=16, expand=1, k=3, stride=1),
    dict(cin=16, cout=24, expand=6, k=3, stride=2),
]
C_HEAD = 64                                      # TODO(synk): real b7 head conv is 2560-ch

CPAD = 128                                       # all channel dims padded -> lane-dense
STEM_K_PAD = 256                                 # 9*25 = 225 im2col K padded to 256
VMEM_LIMIT = 32 * 1024 * 1024                    # safe scoped-VMEM request on v5e/v6e/v7x


# --------------------- kernel 1: tiled matmul + bias + act -------------------
def _mm_kernel(x_ref, w_ref, b_ref, o_ref, acc_ref, *, act):
    @pl.when(pl.program_id(2) == 0)
    def _():
        acc_ref[...] = jnp.zeros_like(acc_ref)

    acc_ref[...] += jnp.dot(x_ref[...], w_ref[...],
                            preferred_element_type=jnp.float32)

    @pl.when(pl.program_id(2) == pl.num_programs(2) - 1)
    def _():
        y = acc_ref[...] + b_ref[...].astype(jnp.float32)
        if act == "silu":
            y = y * jax.nn.sigmoid(y)
        o_ref[...] = y.astype(o_ref.dtype)


def matmul_bias_act(x, w, b, act="none", out_dtype=jnp.bfloat16,
                    tm=256, tn=128, tk=256):
    """y = act(x @ w + b): worked tiled-matmul pattern, f32 VMEM accumulator.

    Defaults target the 2x256x256 MXU of v6e/v7x (they clamp to the problem
    size; on v5e the 128x128 MXU just takes two passes per tile)."""
    M, K = x.shape
    Kw, N = w.shape
    assert K == Kw and b.shape == (1, N)
    tm, tn, tk = min(tm, M), min(tn, N), min(tk, K)
    assert M % tm == 0 and N % tn == 0 and K % tk == 0
    return pl.pallas_call(
        functools.partial(_mm_kernel, act=act),
        out_shape=jax.ShapeDtypeStruct((M, N), out_dtype),
        grid=(M // tm, N // tn, K // tk),
        in_specs=[pl.BlockSpec((tm, tk), lambda i, j, k: (i, k)),
                  pl.BlockSpec((tk, tn), lambda i, j, k: (k, j)),
                  pl.BlockSpec((1, tn), lambda i, j, k: (0, j))],
        out_specs=pl.BlockSpec((tm, tn), lambda i, j, k: (i, j)),
        scratch_shapes=[pltpu.VMEM((tm, tn), jnp.float32)],
        compiler_params=pltpu.CompilerParams(
            dimension_semantics=("parallel", "parallel", "arbitrary"),
            vmem_limit_bytes=VMEM_LIMIT),
    )(x, w, b)


# ------ kernel 2: fully fused MBConv (expand + depthwise + SE + project [+ head]) ------
def _mbconv_kernel(*refs, has_expand, with_head, kk):
    it = iter(refs)
    x_ref, p_ref = next(it), next(it)
    if has_expand:
        ew_ref, eb_ref = next(it), next(it)
    dww_ref, dwb_ref = next(it), next(it)
    sw1_ref, sb1_ref = next(it), next(it)
    sw2_ref, sb2_ref = next(it), next(it)
    pw_ref, pb_ref = next(it), next(it)
    if with_head:
        hw_ref, hb_ref, fw_ref, fb_ref = next(it), next(it), next(it), next(it)
    o_ref = next(it)

    # ---- expand 1x1 (+ folded BN + SiLU), fused; input stays (H*W, C) 2-D ----
    x = x_ref[0]                                            # (HW, C) bf16
    if has_expand:
        e = jnp.dot(x, ew_ref[...], preferred_element_type=jnp.float32)
        e = e + eb_ref[...].astype(jnp.float32)
        e = e * jax.nn.sigmoid(e)                           # SiLU in f32 (v5e-safe)
        e = e.astype(jnp.bfloat16)
    else:
        e = x

    # ---- depthwise conv as k*k selection matmuls; padding folded into P ----
    # acc initialised from the first tap (no zero-fill pass).
    dww = dww_ref[...].astype(jnp.float32)                  # (k*k, C)
    acc = jnp.dot(p_ref[0], e, preferred_element_type=jnp.float32) * dww[0]
    for t in range(1, kk):
        acc = acc + jnp.dot(p_ref[t], e,
                            preferred_element_type=jnp.float32) * dww[t]
    y = acc + dwb_ref[...].astype(jnp.float32)              # folded BN bias
    y = y * jax.nn.sigmoid(y)                               # (M, C) f32

    # ---- squeeze-and-excite (pool over output pixels, two tiny matmuls, gate) ----
    pooled = jnp.mean(y, axis=0, keepdims=True)             # (1, C)
    s1 = jnp.dot(pooled.astype(jnp.bfloat16), sw1_ref[...],
                 preferred_element_type=jnp.float32) + sb1_ref[...].astype(jnp.float32)
    s1 = s1 * jax.nn.sigmoid(s1)
    gate = jnp.dot(s1.astype(jnp.bfloat16), sw2_ref[...],
                   preferred_element_type=jnp.float32) + sb2_ref[...].astype(jnp.float32)
    gate = jax.nn.sigmoid(gate)                             # (1, C)
    ys = (y * gate).astype(jnp.bfloat16)                    # (M, C)

    # ---- project 1x1 (+ folded BN, no activation): ONE matmul, one store ----
    out = jnp.dot(ys, pw_ref[...], preferred_element_type=jnp.float32)
    out = out + pb_ref[...].astype(jnp.float32)             # (M, C) f32

    if not with_head:
        o_ref[0] = out.astype(o_ref.dtype)
        return

    # ---- fused head: conv1x1+BN+swish -> in-kernel GAP -> fc -> split/softmax ----
    h = jnp.dot(out.astype(jnp.bfloat16), hw_ref[...],
                preferred_element_type=jnp.float32) + hb_ref[...].astype(jnp.float32)
    h = h * jax.nn.sigmoid(h)
    feat = jnp.mean(h, axis=0, keepdims=True)               # global average pool (1, C)
    logit = jnp.dot(feat.astype(jnp.bfloat16), fw_ref[...],
                    preferred_element_type=jnp.float32) + fb_ref[...].astype(jnp.float32)
    lane = jax.lax.broadcasted_iota(jnp.int32, logit.shape, 1)
    is_conf = (lane >= NUM_PREDS) & (lane < NUM_PREDS + NUM_MODES)
    z = jnp.where(is_conf, logit, -1e30)
    m = jnp.max(z, axis=-1, keepdims=True)
    ez = jnp.exp(z - m)
    conf = ez / jnp.sum(ez, axis=-1, keepdims=True)
    o_ref[0] = jnp.where(is_conf, conf, logit)              # (1, 128) lane-dense slab


def _bcast_spec(arr):
    if arr.ndim == 2:
        return pl.BlockSpec(arr.shape, lambda b: (0, 0))
    return pl.BlockSpec(arr.shape, lambda b: (0, 0, 0))


def mbconv_block(h, blk, cfg_b, cur_h, cur_w, head=None):
    """One fused MBConv block (optionally with the fused classification head)."""
    n, hw, _ = h.shape
    assert hw == cur_h * cur_w
    k, s = cfg_b["k"], cfg_b["stride"]
    assert s in (1, 2)                                       # static config -> plain ints
    has_expand = cfg_b["expand"] != 1

    sel, oh, ow = make_tap_selectors(cur_h, cur_w, k, s)     # trace-time constant
    m = oh * ow

    inputs = [h, sel]
    if has_expand:
        inputs += [blk["expand_w"], blk["expand_b"]]
    inputs += [blk["dw_w"], blk["dw_b"], blk["se_w1"], blk["se_b1"],
               blk["se_w2"], blk["se_b2"], blk["proj_w"], blk["proj_b"]]
    if head is not None:
        inputs += [head["head_w"], head["head_b"], head["fc_w"], head["fc_b"]]
        out_shape = jax.ShapeDtypeStruct((n, 1, CPAD), jnp.float32)
        out_block = (1, 1, CPAD)
    else:
        out_shape = jax.ShapeDtypeStruct((n, m, CPAD), jnp.bfloat16)
        out_block = (1, m, CPAD)

    in_specs = [pl.BlockSpec((1, hw, CPAD), lambda b: (b, 0, 0))]
    in_specs += [_bcast_spec(a) for a in inputs[1:]]

    out = pl.pallas_call(
        functools.partial(_mbconv_kernel, has_expand=has_expand,
                          with_head=head is not None, kk=k * k),
        out_shape=out_shape,
        grid=(n,),
        in_specs=in_specs,
        out_specs=pl.BlockSpec(out_block, lambda b: (b, 0, 0)),
        compiler_params=pltpu.CompilerParams(
            dimension_semantics=("parallel",),               # batch across TCs (v7x)
            vmem_limit_bytes=VMEM_LIMIT),
    )(*inputs)
    return out, oh, ow


# ------------------------------- glue helpers -------------------------------
def _same_pads(size, k, s):
    out = -(-size // s)
    pad = max((out - 1) * s + k - size, 0)
    return pad // 2, pad - pad // 2


def make_tap_selectors(h, w, k, s):
    """(k*k, OH*OW, H*W) 0/1 selectors: tap t of the SAME-padded (stride s)
    depthwise conv as a row-gather matmul.  Padding positions simply have an
    all-zero selector row contribution, so no XLA-side pad is needed."""
    oh, ow = -(-h // s), -(-w // s)
    ph0, _ = _same_pads(h, k, s)
    pw0, _ = _same_pads(w, k, s)
    sel = np.zeros((k * k, oh * ow, h * w), np.float32)
    for di in range(k):
        for dj in range(k):
            t = di * k + dj
            for oi in range(oh):
                for oj in range(ow):
                    hi = s * oi + di - ph0
                    wi = s * oj + dj - pw0
                    if 0 <= hi < h and 0 <= wi < w:
                        sel[t, oi * ow + oj, hi * w + wi] = 1.0
    return jnp.asarray(sel, jnp.bfloat16), oh, ow


def extract_patches(x, k, stride):
    """im2col for NHWC with TF 'same' padding (XLA glue; stem conv only)."""
    n, h, w, c = x.shape
    ph0, ph1 = _same_pads(h, k, stride)
    pw0, pw1 = _same_pads(w, k, stride)
    xp = jnp.pad(x, ((0, 0), (ph0, ph1), (pw0, pw1), (0, 0)))
    oh, ow = -(-h // stride), -(-w // stride)
    cols = []
    for di in range(k):
        for dj in range(k):
            cols.append(xp[:, di:di + stride * oh:stride, dj:dj + stride * ow:stride, :])
    return jnp.stack(cols, axis=3), oh, ow


def fold_bn(w, gamma, beta, mean, var, eps=1e-3):
    scale = gamma / jnp.sqrt(var + eps)
    return w * scale[None, :], beta - mean * scale


# ------------------------------- parameters ---------------------------------
def init_params(key):
    keys = iter(jax.random.split(key, 128))

    def nrm(shape, fan_in):
        return jax.random.normal(next(keys), shape, jnp.float32) / jnp.sqrt(float(fan_in))

    def bn_params(c):
        g = 1.0 + 0.05 * jax.random.normal(next(keys), (c,), jnp.float32)
        b = 0.05 * jax.random.normal(next(keys), (c,), jnp.float32)
        m = 0.05 * jax.random.normal(next(keys), (c,), jnp.float32)
        v = 1.0 + 0.05 * jnp.abs(jax.random.normal(next(keys), (c,), jnp.float32))
        return g, b, m, v

    def pack_w(w, rows, cols, dtype=jnp.bfloat16):           # zero-pad weight, lane-dense
        out = jnp.zeros((rows, cols), jnp.float32).at[:w.shape[0], :w.shape[1]].set(w)
        return out.astype(dtype)

    def pack_b(b, cols):                                      # zero-pad bias, keep f32
        return jnp.zeros((cols,), jnp.float32).at[:b.shape[0]].set(b).reshape(1, cols)

    params = {}

    # --- stem: emulate `conv_weight.repeat(1, 9, 1, 1)[:, 0:25]` from __init__ ---
    w3 = nrm((C_STEM, 3, 3, 3), 27)                               # original OIHW, 3 in-ch
    w25 = jnp.tile(w3, (1, 9, 1, 1))[:, :NUM_IN_CHANNELS]          # (C_STEM, 25, 3, 3)
    w_mm = jnp.transpose(w25, (2, 3, 1, 0)).reshape(9 * NUM_IN_CHANNELS, C_STEM)
    w_f, b_f = fold_bn(w_mm, *bn_params(C_STEM))
    params["stem_w"] = pack_w(w_f, STEM_K_PAD, CPAD)
    params["stem_b"] = pack_b(b_f, CPAD)

    blocks = []
    for cfg_b in BLOCK_CFGS:                 # static config never enters `params`
        cin, cout = cfg_b["cin"], cfg_b["cout"]
        exp, k = cfg_b["expand"], cfg_b["k"]
        cmid = cin * exp
        csq = max(1, cin // 4)                                     # SE ratio 0.25
        blk = {}
        if exp != 1:
            w = nrm((cmid, cin, 1, 1), cin)[:, :, 0, 0].T          # (cin, cmid)
            w_f, b_f = fold_bn(w, *bn_params(cmid))
            blk["expand_w"] = pack_w(w_f, CPAD, CPAD)
            blk["expand_b"] = pack_b(b_f, CPAD)
        w_dw = nrm((cmid, 1, k, k), k * k)                         # torch (C,1,k,k)
        w_dw = jnp.transpose(w_dw[:, 0], (1, 2, 0)).reshape(k * k, cmid)
        w_f, b_f = fold_bn(w_dw, *bn_params(cmid))
        blk["dw_w"] = pack_w(w_f, k * k, CPAD, jnp.float32)        # VPU path stays f32
        blk["dw_b"] = pack_b(b_f, CPAD)
        w1 = nrm((csq, cmid, 1, 1), cmid)[:, :, 0, 0].T            # (cmid, csq)
        blk["se_w1"] = pack_w(w1, CPAD, CPAD)
        blk["se_b1"] = pack_b(0.05 * jax.random.normal(next(keys), (csq,), jnp.float32), CPAD)
        w2 = nrm((cmid, csq, 1, 1), csq)[:, :, 0, 0].T             # (csq, cmid)
        blk["se_w2"] = pack_w(w2, CPAD, CPAD)
        blk["se_b2"] = pack_b(0.05 * jax.random.normal(next(keys), (cmid,), jnp.float32), CPAD)
        w_pr = nrm((cout, cmid, 1, 1), cmid)[:, :, 0, 0].T         # (cmid, cout)
        w_f, b_f = fold_bn(w_pr, *bn_params(cout))
        blk["proj_w"] = pack_w(w_f, CPAD, CPAD)
        blk["proj_b"] = pack_b(b_f, CPAD)
        blocks.append(blk)
    params["blocks"] = blocks

    head = {}
    w_h = nrm((C_HEAD, BLOCK_CFGS[-1]["cout"], 1, 1), BLOCK_CFGS[-1]["cout"])[:, :, 0, 0].T
    w_f, b_f = fold_bn(w_h, *bn_params(C_HEAD))
    head["head_w"] = pack_w(w_f, CPAD, CPAD)
    head["head_b"] = pack_b(b_f, CPAD)
    w_fc = nrm((FC_OUT, C_HEAD), C_HEAD).T                         # (C_HEAD, FC_OUT)
    head["fc_w"] = pack_w(w_fc, CPAD, CPAD)
    head["fc_b"] = pack_b(0.05 * jax.random.normal(next(keys), (FC_OUT,), jnp.float32), CPAD)
    params["head"] = head
    return params


# ------------------------------- forward pass --------------------------------
def lyft_effnet_forward(x_nchw, params):
    x = jnp.transpose(x_nchw, (0, 2, 3, 1)).astype(jnp.float32)     # NCHW -> NHWC
    bs = x.shape[0]

    # --- backbone.extract_features: stem conv 3x3 /2 (im2col + tiled matmul) ---
    p, oh, ow = extract_patches(x, 3, 2)
    p = p.reshape(bs * oh * ow, 9 * NUM_IN_CHANNELS)
    p = jnp.pad(p, ((0, 0), (0, STEM_K_PAD - p.shape[1]))).astype(jnp.bfloat16)
    h = matmul_bias_act(p, params["stem_w"], params["stem_b"], "silu")
    h = h.reshape(bs, oh * ow, CPAD)                                 # lane-dense chain
    cur_h, cur_w = oh, ow

    # --- MBConv blocks; last one also carries the fused classification head ---
    nblk = len(BLOCK_CFGS)
    for i, (blk, cfg_b) in enumerate(zip(params["blocks"], BLOCK_CFGS)):
        head = params["head"] if i == nblk - 1 else None
        h, cur_h, cur_w = mbconv_block(h, blk, cfg_b, cur_h, cur_w, head=head)

    # --- split the fused head's lane-dense (bs, 128) slab into preds/confidences ---
    slab = h.reshape(bs, CPAD)
    pred = slab[:, :NUM_PREDS].reshape(bs, NUM_MODES, FUTURE_LEN, 2)
    confidences = slab[:, NUM_PREDS:NUM_PREDS + NUM_MODES]
    assert confidences.shape == (bs, NUM_MODES)
    return pred, confidences


# ----------------------------------- main ------------------------------------
if __name__ == "__main__":
    key = jax.random.PRNGKey(0)
    pkey, xkey = jax.random.split(key)
    params = init_params(pkey)

    # PyTorch-style NCHW input: (batch=2, channels=25, H=16, W=16)
    x = jax.random.normal(xkey, (2, NUM_IN_CHANNELS, 16, 16), jnp.float32)

    fwd = jax.jit(lyft_effnet_forward)
    pred, conf = fwd(x, params)
    jax.block_until_ready((pred, conf))

    assert pred.shape == (2, NUM_MODES, FUTURE_LEN, 2), pred.shape
    assert conf.shape == (2, NUM_MODES), conf.shape
    assert bool(jnp.all(jnp.isfinite(pred))) and bool(jnp.all(jnp.isfinite(conf)))
    assert bool(jnp.allclose(jnp.sum(conf, axis=1), 1.0, atol=1e-5))
    print("KERNEL_OK")
</pallas_src>

<mosaic_0001>
module attributes {stable_mosaic.version = 11 : i64} {
  func.func @_mm_kernel(%arg0: i32, %arg1: i32, %arg2: i32, %arg3: memref<128x256xbf16, #tpu.memory_space<vmem>>, %arg4: memref<256x128xbf16, #tpu.memory_space<vmem>>, %arg5: memref<1x128xf32, #tpu.memory_space<vmem>>, %arg6: memref<128x128xbf16, #tpu.memory_space<vmem>>, %arg7: memref<128x128xf32, #tpu.memory_space<vmem>>) attributes {dimension_semantics = [#tpu.dimension_semantics<parallel>, #tpu.dimension_semantics<parallel>, #tpu.dimension_semantics<arbitrary>], iteration_bounds = array<i64: 1, 1, 1>, scalar_prefetch = 0 : i64, scratch_operands = 1 : i64, tpu.core_type = #tpu.core_type<tc>, window_params = [{transform_indices = @transform_0, window_bounds = array<i64: 128, 256>}, {transform_indices = @transform_1, window_bounds = array<i64: 256, 128>}, {transform_indices = @transform_2, window_bounds = array<i64: 1, 128>}, {transform_indices = @transform_3, window_bounds = array<i64: 128, 128>}]} {
    %c0_i32 = arith.constant 0 : i32
    %0 = arith.cmpi eq, %arg2, %c0_i32 : i32
    %1 = arith.extui %0 : i1 to i32
    %c0_i32_0 = arith.constant 0 : i32
    %2 = arith.cmpi ne, %1, %c0_i32_0 : i32
    scf.if %2 {
      %cst_10 = arith.constant 0.000000e+00 : f32
      %12 = vector.broadcast %cst_10 : f32 to vector<128x128xf32>
      %c0_11 = arith.constant 0 : index
      %c0_12 = arith.constant 0 : index
      %13 = vector.load %arg7[%c0_11, %c0_12] : memref<128x128xf32, #tpu.memory_space<vmem>>, vector<128x128xf32>
      tpu.vector_store %arg7[%c0_11, %c0_12], %12 {strides = array<i32>} : memref<128x128xf32, #tpu.memory_space<vmem>>, vector<128x128xf32>,
    } else {
    }
    %c0 = arith.constant 0 : index
    %c0_1 = arith.constant 0 : index
    %3 = vector.load %arg7[%c0, %c0_1] : memref<128x128xf32, #tpu.memory_space<vmem>>, vector<128x128xf32>
    %c0_2 = arith.constant 0 : index
    %c0_3 = arith.constant 0 : index
    %4 = vector.load %arg3[%c0_2, %c0_3] : memref<128x256xbf16, #tpu.memory_space<vmem>>, vector<128x256xbf16>
    %c0_4 = arith.constant 0 : index
    %c0_5 = arith.constant 0 : index
    %5 = vector.load %arg4[%c0_4, %c0_5] : memref<256x128xbf16, #tpu.memory_space<vmem>>, vector<256x128xbf16>
    %cst = arith.constant dense<0.000000e+00> : vector<128x128xf32>
    %6 = tpu.matmul %4, %5, %cst {dimension_numbers = #tpu.dot_dimension_numbers<[1], [0], [0], [1], [0, 0, 1, 1], [], []>} : vector<128x256xbf16>, vector<256x128xbf16>, vector<128x128xf32> -> vector<128x128xf32>
    %7 = arith.addf %3, %6 : vector<128x128xf32>
    %c0_6 = arith.constant 0 : index
    %c0_7 = arith.constant 0 : index
    %8 = vector.load %arg7[%c0_6, %c0_7] : memref<128x128xf32, #tpu.memory_space<vmem>>, vector<128x128xf32>
    tpu.vector_store %arg7[%c0_6, %c0_7], %7 {strides = array<i32>} : memref<128x128xf32, #tpu.memory_space<vmem>>, vector<128x128xf32>,
    %c0_i32_8 = arith.constant 0 : i32
    %9 = arith.cmpi eq, %arg2, %c0_i32_8 : i32
    %10 = arith.extui %9 : i1 to i32
    %c0_i32_9 = arith.constant 0 : i32
    %11 = arith.cmpi ne, %10, %c0_i32_9 : i32
    scf.if %11 {
      %c0_10 = arith.constant 0 : index
      %c0_11 = arith.constant 0 : index
      %12 = vector.load %arg7[%c0_10, %c0_11] : memref<128x128xf32, #tpu.memory_space<vmem>>, vector<128x128xf32>
      %c0_12 = arith.constant 0 : index
      %c0_13 = arith.constant 0 : index
      %13 = vector.load %arg5[%c0_12, %c0_13] : memref<1x128xf32, #tpu.memory_space<vmem>>, vector<1x128xf32>
      %14 = vector.broadcast %13 : vector<1x128xf32> to vector<128x128xf32>
      %15 = arith.addf %12, %14 : vector<128x128xf32>
      %16 = arith.negf %15 : vector<128x128xf32>
      %17 = math.exp %16 : vector<128x128xf32>
      %cst_14 = arith.constant 1.000000e+00 : f32
      %18 = vector.broadcast %cst_14 : f32 to vector<128x128xf32>
      %19 = arith.addf %18, %17 : vector<128x128xf32>
      %20 = arith.divf %18, %19 : vector<128x128xf32>
      %21 = arith.mulf %15, %20 : vector<128x128xf32>
      %22 = arith.truncf %21 : vector<128x128xf32> to vector<128x128xbf16>
      %c0_15 = arith.constant 0 : index
      %c0_16 = arith.constant 0 : index
      %23 = vector.load %arg6[%c0_15, %c0_16] : memref<128x128xbf16, #tpu.memory_space<vmem>>, vector<128x128xbf16>
      tpu.vector_store %arg6[%c0_15, %c0_16], %22 {strides = array<i32>} : memref<128x128xbf16, #tpu.memory_space<vmem>>, vector<128x128xbf16>,
    } else {
    }
    return
  }
  func.func @transform_0(%arg0: i32, %arg1: i32, %arg2: i32) -> (i32, i32) {
    %c0_i32 = arith.constant 0 : i32
    return %arg0, %arg2 : i32, i32
  }
  func.func @transform_1(%arg0: i32, %arg1: i32, %arg2: i32) -> (i32, i32) {
    %c0_i32 = arith.constant 0 : i32
    return %arg2, %arg1 : i32, i32
  }
  func.func @transform_2(%arg0: i32, %arg1: i32, %arg2: i32) -> (i32, i32) {
    %c0_i32 = arith.constant 0 : i32
    %c0_i32_0 = arith.constant 0 : i32
    return %c0_i32, %arg1 : i32, i32
  }
  func.func @transform_3(%arg0: i32, %arg1: i32, %arg2: i32) -> (i32, i32) {
    %c0_i32 = arith.constant 0 : i32
    return %arg0, %arg1 : i32, i32
  }
}

module attributes {stable_mosaic.version = 11 : i64} {
  func.func @_mbconv_kernel(%arg0: i32, %arg1: memref<1x64x128xbf16, #tpu.memory_space<vmem>>, %arg2: memref<9x64x64xbf16, #tpu.memory_space<vmem>>, %arg3: memref<9x128xf32, #tpu.memory_space<vmem>>, %arg4: memref<1x128xf32, #tpu.memory_space<vmem>>, %arg5: memref<128x128xbf16, #tpu.memory_space<vmem>>, %arg6: memref<1x128xf32, #tpu.memory_space<vmem>>, %arg7: memref<128x128xbf16, #tpu.memory_space<vmem>>, %arg8: memref<1x128xf32, #tpu.memory_space<vmem>>, %arg9: memref<128x128xbf16, #tpu.memory_space<vmem>>, %arg10: memref<1x128xf32, #tpu.memory_space<vmem>>, %arg11: memref<1x64x128xbf16, #tpu.memory_space<vmem>>) attributes {dimension_semantics = [#tpu.dimension_semantics<parallel>], iteration_bounds = array<i64: 2>, scalar_prefetch = 0 : i64, scratch_operands = 0 : i64, tpu.core_type = #tpu.core_type<tc>, window_params = [{transform_indices = @transform_0, window_bounds = array<i64: 1, 64, 128>}, {pipeline_mode = #tpu.pipeline_mode<synchronous>, transform_indices = @transform_1, window_bounds = array<i64: 9, 64, 64>}, {pipeline_mode = #tpu.pipeline_mode<synchronous>, transform_indices = @transform_2, window_bounds = array<i64: 9, 128>}, {pipeline_mode = #tpu.pipeline_mode<synchronous>, transform_indices = @transform_3, window_bounds = array<i64: 1, 128>}, {pipeline_mode = #tpu.pipeline_mode<synchronous>, transform_indices = @transform_4, window_bounds = array<i64: 128, 128>}, {pipeline_mode = #tpu.pipeline_mode<synchronous>, transform_indices = @transform_5, window_bounds = array<i64: 1, 128>}, {pipeline_mode = #tpu.pipeline_mode<synchronous>, transform_indices = @transform_6, window_bounds = array<i64: 128, 128>}, {pipeline_mode = #tpu.pipeline_mode<synchronous>, transform_indices = @transform_7, window_bounds = array<i64: 1, 128>}, {pipeline_mode = #tpu.pipeline_mode<synchronous>, transform_indices = @transform_8, window_bounds = array<i64: 128, 128>}, {pipeline_mode = #tpu.pipeline_mode<synchronous>, transform_indices = @transform_9, window_bounds = array<i64: 1, 128>}, {transform_indices = @transform_10, window_bounds = array<i64: 1, 64, 128>}]} {
    %c0 = arith.constant 0 : index
    %c0_0 = arith.constant 0 : index
    %c0_1 = arith.constant 0 : index
    %0 = vector.load %arg1[%c0, %c0_0, %c0_1] : memref<1x64x128xbf16, #tpu.memory_space<vmem>>, vector<1x64x128xbf16>
    %1 = vector.shape_cast %0 : vector<1x64x128xbf16> to vector<64x128xbf16>
    %c0_2 = arith.constant 0 : index
    %c0_3 = arith.constant 0 : index
    %2 = vector.load %arg3[%c0_2, %c0_3] : memref<9x128xf32, #tpu.memory_space<vmem>>, vector<9x128xf32>
    %c0_4 = arith.constant 0 : index
    %c0_5 = arith.constant 0 : index
    %c0_6 = arith.constant 0 : index
    %3 = vector.load %arg2[%c0_4, %c0_5, %c0_6] : memref<9x64x64xbf16, #tpu.memory_space<vmem>>, vector<1x64x64xbf16>
    %4 = vector.shape_cast %3 : vector<1x64x64xbf16> to vector<64x64xbf16>
    %cst = arith.constant dense<0.000000e+00> : vector<64x128xf32>
    %5 = tpu.matmul %4, %1, %cst {dimension_numbers = #tpu.dot_dimension_numbers<[1], [0], [0], [1], [0, 0, 1, 1], [], []>} : vector<64x64xbf16>, vector<64x128xbf16>, vector<64x128xf32> -> vector<64x128xf32>
    %6 = vector.extract_strided_slice %2 {offsets = [0, 0], sizes = [1, 128], strides = [1, 1]} : vector<9x128xf32> to vector<1x128xf32>
    %7 = vector.shape_cast %6 : vector<1x128xf32> to vector<128xf32>
    %8 = vector.shape_cast %7 : vector<128xf32> to vector<1x128xf32>
    %9 = vector.broadcast %8 : vector<1x128xf32> to vector<64x128xf32>
    %10 = arith.mulf %5, %9 : vector<64x128xf32>
    %c1 = arith.constant 1 : index
    %c0_7 = arith.constant 0 : index
    %c0_8 = arith.constant 0 : index
    %11 = vector.load %arg2[%c1, %c0_7, %c0_8] : memref<9x64x64xbf16, #tpu.memory_space<vmem>>, vector<1x64x64xbf16>
    %12 = vector.shape_cast %11 : vector<1x64x64xbf16> to vector<64x64xbf16>
    %cst_9 = arith.constant dense<0.000000e+00> : vector<64x128xf32>
    %13 = tpu.matmul %12, %1, %cst_9 {dimension_numbers = #tpu.dot_dimension_numbers<[1], [0], [0], [1], [0, 0, 1, 1], [], []>} : vector<64x64xbf16>, vector<64x128xbf16>, vector<64x128xf32> -> vector<64x128xf32>
    %14 = vector.extract_strided_slice %2 {offsets = [1, 0], sizes = [1, 128], strides = [1, 1]} : vector<9x128xf32> to vector<1x128xf32>
    %15 = vector.shape_cast %14 : vector<1x128xf32> to vector<128xf32>
    %16 = vector.shape_cast %15 : vector<128xf32> to vector<1x128xf32>
    %17 = vector.broadcast %16 : vector<1x128xf32> to vector<64x128xf32>
    %18 = arith.mulf %13, %17 : vector<64x128xf32>
    %19 = arith.addf %10, %18 : vector<64x128xf32>
    %c2 = arith.constant 2 : index
    %c0_10 = arith.constant 0 : index
    %c0_11 = arith.constant 0 : index
    %20 = vector.load %arg2[%c2, %c0_10, %c0_11] : memref<9x64x64xbf16, #tpu.memory_space<vmem>>, vector<1x64x64xbf16>
    %21 = vector.shape_cast %20 : vector<1x64x64xbf16> to vector<64x64xbf16>
    %cst_12 = arith.constant dense<0.000000e+00> : vector<64x128xf32>
    %22 = tpu.matmul %21, %1, %cst_12 {dimension_numbers = #tpu.dot_dimension_numbers<[1], [0], [0], [1], [0, 0, 1, 1], [], []>} : vector<64x64xbf16>, vector<64x128xbf16>, vector<64x128xf32> -> vector<64x128xf32>
    %23 = vector.extract_strided_slice %2 {offsets = [2, 0], sizes = [1, 128], strides = [1, 1]} : vector<9x128xf32> to vector<1x128xf32>
    %24 = vector.shape_cast %23 : vector<1x128xf32> to vector<128xf32>
    %25 = vector.shape_cast %24 : vector<128xf32> to vector<1x128xf32>
    %26 = vector.broadcast %25 : vector<1x128xf32> to vector<64x128xf32>
    %27 = arith.mulf %22, %26 : vector<64x128xf32>
    %28 = arith.addf %19, %27 : vector<64x128xf32>
    %c3 = arith.constant 3 : index
    %c0_13 = arith.constant 0 : index
    %c0_14 = arith.constant 0 : index
    %29 = vector.load %arg2[%c3, %c0_13, %c0_14] : memref<9x64x64xbf16, #tpu.memory_space<vmem>>, vector<1x64x64xbf16>
    %30 = vector.shape_cast %29 : vector<1x64x64xbf16> to vector<64x64xbf16>
    %cst_15 = arith.constant dense<0.000000e+00> : vector<64x128xf32>
    %31 = tpu.matmul %30, %1, %cst_15 {dimension_numbers = #tpu.dot_dimension_numbers<[1], [0], [0], [1], [0, 0, 1, 1], [], []>} : vector<64x64xbf16>, vector<64x128xbf16>, vector<64x128xf32> -> vector<64x128xf32>
    %32 = vector.extract_strided_slice %2 {offsets = [3, 0], sizes = [1, 128], strides = [1, 1]} : vector<9x128xf32> to vector<1x128xf32>
    %33 = vector.shape_cast %32 : vector<1x128xf32> to vector<128xf32>
    %34 = vector.shape_cast %33 : vector<128xf32> to vector<1x128xf32>
    %35 = vector.broadcast %34 : vector<1x128xf32> to vector<64x128xf32>
    %36 = arith.mulf %31, %35 : vector<64x128xf32>
    %37 = arith.addf %28, %36 : vector<64x128xf32>
    %c4 = arith.constant 4 : index
    %c0_16 = arith.constant 0 : index
    %c0_17 = arith.constant 0 : index
    %38 = vector.load %arg2[%c4, %c0_16, %c0_17] : memref<9x64x64xbf16, #tpu.memory_space<vmem>>, vector<1x64x64xbf16>
    %39 = vector.shape_cast %38 : vector<1x64x64xbf16> to vector<64x64xbf16>
    %cst_18 = arith.constant dense<0.000000e+00> : vector<64x128xf32>
    %40 = tpu.matmul %39, %1, %cst_18 {dimension_numbers = #tpu.dot_dimension_numbers<[1], [0], [0], [1], [0, 0, 1, 1], [], []>} : vector<64x64xbf16>, vector<64x128xbf16>, vector<64x128xf32> -> vector<64x128xf32>
    %41 = vector.extract_strided_slice %2 {offsets = [4, 0], sizes = [1, 128], strides = [1, 1]} : vector<9x128xf32> to vector<1x128xf32>
    %42 = vector.shape_cast %41 : vector<1x128xf32> to vector<128xf32>
    %43 = vector.shape_cast %42 : vector<128xf32> to vector<1x128xf32>
    %44 = vector.broadcast %43 : vector<1x128xf32> to vector<64x128xf32>
    %45 = arith.mulf %40, %44 : vector<64x128xf32>
    %46 = arith.addf %37, %45 : vector<64x128xf32>
    %c5 = arith.constant 5 : index
    %c0_19 = arith.constant 0 : index
    %c0_20 = arith.constant 0 : index
    %47 = vector.load %arg2[%c5, %c0_19, %c0_20] : memref<9x64x64xbf16, #tpu.memory_space<vmem>>, vector<1x64x64xbf16>
    %48 = vector.shape_cast %47 : vector<1x64x64xbf16> to vector<64x64xbf16>
    %cst_21 = arith.constant dense<0.000000e+00> : vector<64x128xf32>
    %49 = tpu.matmul %48, %1, %cst_21 {dimension_numbers = #tpu.dot_dimension_numbers<[1], [0], [0], [1], [0, 0, 1, 1], [], []>} : vector<64x64xbf16>, vector<64x128xbf16>, vector<64x128xf32> -> vector<64x128xf32>
    %50 = vector.extract_strided_slice %2 {offsets = [5, 0], sizes = [1, 128], strides = [1, 1]} : vector<9x128xf32> to vector<1x128xf32>
    %51 = vector.shape_cast %50 : vector<1x128xf32> to vector<128xf32>
    %52 = vector.shape_cast %51 : vector<128xf32> to vector<1x128xf32>
    %53 = vector.broadcast %52 : vector<1x128xf32> to vector<64x128xf32>
    %54 = arith.mulf %49, %53 : vector<64x128xf32>
    %55 = arith.addf %46, %54 : vector<64x128xf32>
    %c6 = arith.constant 6 : index
    %c0_22 = arith.constant 0 : index
    %c0_23 = arith.constant 0 : index
    %56 = vector.load %arg2[%c6, %c0_22, %c0_23] : memref<9x64x64xbf16, #tpu.memory_space<vmem>>, vector<1x64x64xbf16>
    %57 = vector.shape_cast %56 : vector<1x64x64xbf16> to vector<64x64xbf16>
    %cst_24 = arith.constant dense<0.000000e+00> : vector<64x128xf32>
    %58 = tpu.matmul %57, %1, %cst_24 {dimension_numbers = #tpu.dot_dimension_numbers<[1], [0], [0], [1], [0, 0, 1, 1], [], []>} : vector<64x64xbf16>, vector<64x128xbf16>, vector<64x128xf32> -> vector<64x128xf32>
    %59 = vector.extract_strided_slice %2 {offsets = [6, 0], sizes = [1, 128], strides = [1, 1]} : vector<9x128xf32> to vector<1x128xf32>
    %60 = vector.shape_cast %59 : vector<1x128xf32> to vector<128xf32>
    %61 = vector.shape_cast %60 : vector<128xf32> to vector<1x128xf32>
    %62 = vector.broadcast %61 : vector<1x128xf32> to vector<64x128xf32>
    %63 = arith.mulf %58, %62 : vector<64x128xf32>
    %64 = arith.addf %55, %63 : vector<64x128xf32>
    %c7 = arith.constant 7 : index
    %c0_25 = arith.constant 0 : index
    %c0_26 = arith.constant 0 : index
    %65 = vector.load %arg2[%c7, %c0_25, %c0_26] : memref<9x64x64xbf16, #tpu.memory_space<vmem>>, vector<1x64x64xbf16>
    %66 = vector.shape_cast %65 : vector<1x64x64xbf16> to vector<64x64xbf16>
    %cst_27 = arith.constant dense<0.000000e+00> : vector<64x128xf32>
    %67 = tpu.matmul %66, %1, %cst_27 {dimension_numbers = #tpu.dot_dimension_numbers<[1], [0], [0], [1], [0, 0, 1, 1], [], []>} : vector<64x64xbf16>, vector<64x128xbf16>, vector<64x128xf32> -> vector<64x128xf32>
    %68 = vector.extract_strided_slice %2 {offsets = [7, 0], sizes = [1, 128], strides = [1, 1]} : vector<9x128xf32> to vector<1x128xf32>
    %69 = vector.shape_cast %68 : vector<1x128xf32> to vector<128xf32>
    %70 = vector.shape_cast %69 : vector<128xf32> to vector<1x128xf32>
    %71 = vector.broadcast %70 : vector<1x128xf32> to vector<64x128xf32>
    %72 = arith.mulf %67, %71 : vector<64x128xf32>
    %73 = arith.addf %64, %72 : vector<64x128xf32>
    %c8 = arith.constant 8 : index
    %c0_28 = arith.constant 0 : index
    %c0_29 = arith.constant 0 : index
    %74 = vector.load %arg2[%c8, %c0_28, %c0_29] : memref<9x64x64xbf16, #tpu.memory_space<vmem>>, vector<1x64x64xbf16>
    %75 = vector.shape_cast %74 : vector<1x64x64xbf16> to vector<64x64xbf16>
    %cst_30 = arith.constant dense<0.000000e+00> : vector<64x128xf32>
    %76 = tpu.matmul %75, %1, %cst_30 {dimension_numbers = #tpu.dot_dimension_numbers<[1], [0], [0], [1], [0, 0, 1, 1], [], []>} : vector<64x64xbf16>, vector<64x128xbf16>, vector<64x128xf32> -> vector<64x128xf32>
    %77 = vector.extract_strided_slice %2 {offsets = [8, 0], sizes = [1, 128], strides = [1, 1]} : vector<9x128xf32> to vector<1x128xf32>
    %78 = vector.shape_cast %77 : vector<1x128xf32> to vector<128xf32>
    %79 = vector.shape_cast %78 : vector<128xf32> to vector<1x128xf32>
    %80 = vector.broadcast %79 : vector<1x128xf32> to vector<64x128xf32>
    %81 = arith.mulf %76, %80 : vector<64x128xf32>
    %82 = arith.addf %73, %81 : vector<64x128xf32>
    %c0_31 = arith.constant 0 : index
    %c0_32 = arith.constant 0 : index
    %83 = vector.load %arg4[%c0_31, %c0_32] : memref<1x128xf32, #tpu.memory_space<vmem>>, vector<1x128xf32>
    %84 = vector.broadcast %83 : vector<1x128xf32> to vector<64x128xf32>
    %85 = arith.addf %82, %84 : vector<64x128xf32>
    %86 = arith.negf %85 : vector<64x128xf32>
    %87 = math.exp %86 : vector<64x128xf32>
    %cst_33 = arith.constant 1.000000e+00 : f32
    %88 = vector.broadcast %cst_33 : f32 to vector<64x128xf32>
    %89 = arith.addf %88, %87 : vector<64x128xf32>
    %90 = arith.divf %88, %89 : vector<64x128xf32>
    %91 = arith.mulf %85, %90 : vector<64x128xf32>
    %cst_34 = arith.constant dense<0.000000e+00> : vector<128xf32>
    %92 = vector.multi_reduction <add>, %91, %cst_34 [0] : vector<64x128xf32> to vector<128xf32>
    %93 = vector.shape_cast %92 : vector<128xf32> to vector<1x128xf32>
    %cst_35 = arith.constant 6.400000e+01 : f32
    %94 = vector.broadcast %cst_35 : f32 to vector<1x128xf32>
    %95 = arith.divf %93, %94 : vector<1x128xf32>
    %96 = arith.truncf %95 : vector<1x128xf32> to vector<1x128xbf16>
    %c0_36 = arith.constant 0 : index
    %c0_37 = arith.constant 0 : index
    %97 = vector.load %arg5[%c0_36, %c0_37] : memref<128x128xbf16, #tpu.memory_space<vmem>>, vector<128x128xbf16>
    %cst_38 = arith.constant dense<0.000000e+00> : vector<1x128xf32>
    %98 = tpu.matmul %96, %97, %cst_38 {dimension_numbers = #tpu.dot_dimension_numbers<[1], [0], [0], [1], [0, 0, 1, 1], [], []>} : vector<1x128xbf16>, vector<128x128xbf16>, vector<1x128xf32> -> vector<1x128xf32>
    %c0_39 = arith.constant 0 : index
    %c0_40 = arith.constant 0 : index
    %99 = vector.load %arg6[%c0_39, %c0_40] : memref<1x128xf32, #tpu.memory_space<vmem>>, vector<1x128xf32>
    %100 = arith.addf %98, %99 : vector<1x128xf32>
    %101 = arith.negf %100 : vector<1x128xf32>
    %102 = math.exp %101 : vector<1x128xf32>
    %cst_41 = arith.constant 1.000000e+00 : f32
    %103 = vector.broadcast %cst_41 : f32 to vector<1x128xf32>
    %104 = arith.addf %103, %102 : vector<1x128xf32>
    %105 = arith.divf %103, %104 : vector<1x128xf32>
    %106 = arith.mulf %100, %105 : vector<1x128xf32>
    %107 = arith.truncf %106 : vector<1x128xf32> to vector<1x128xbf16>
    %c0_42 = arith.constant 0 : index
    %c0_43 = arith.constant 0 : index
    %108 = vector.load %arg7[%c0_42, %c0_43] : memref<128x128xbf16, #tpu.memory_space<vmem>>, vector<128x128xbf16>
    %cst_44 = arith.constant dense<0.000000e+00> : vector<1x128xf32>
    %109 = tpu.matmul %107, %108, %cst_44 {dimension_numbers = #tpu.dot_dimension_numbers<[1], [0], [0], [1], [0, 0, 1, 1], [], []>} : vector<1x128xbf16>, vector<128x128xbf16>, vector<1x128xf32> -> vector<1x128xf32>
    %c0_45 = arith.constant 0 : index
    %c0_46 = arith.constant 0 : index
    %110 = vector.load %arg8[%c0_45, %c0_46] : memref<1x128xf32, #tpu.memory_space<vmem>>, vector<1x128xf32>
    %111 = arith.addf %109, %110 : vector<1x128xf32>
    %112 = arith.negf %111 : vector<1x128xf32>
    %113 = math.exp %112 : vector<1x128xf32>
    %cst_47 = arith.constant 1.000000e+00 : f32
    %114 = vector.broadcast %cst_47 : f32 to vector<1x128xf32>
    %115 = arith.addf %114, %113 : vector<1x128xf32>
    %116 = arith.divf %114, %115 : vector<1x128xf32>
    %117 = vector.broadcast %116 : vector<1x128xf32> to vector<64x128xf32>
    %118 = arith.mulf %91, %117 : vector<64x128xf32>
    %119 = arith.truncf %118 : vector<64x128xf32> to vector<64x128xbf16>
    %c0_48 = arith.constant 0 : index
    %c0_49 = arith.constant 0 : index
    %120 = vector.load %arg9[%c0_48, %c0_49] : memref<128x128xbf16, #tpu.memory_space<vmem>>, vector<128x128xbf16>
    %cst_50 = arith.constant dense<0.000000e+00> : vector<64x128xf32>
    %121 = tpu.matmul %119, %120, %cst_50 {dimension_numbers = #tpu.dot_dimension_numbers<[1], [0], [0], [1], [0, 0, 1, 1], [], []>} : vector<64x128xbf16>, vector<128x128xbf16>, vector<64x128xf32> -> vector<64x128xf32>
    %c0_51 = arith.constant 0 : index
    %c0_52 = arith.constant 0 : index
    %122 = vector.load %arg10[%c0_51, %c0_52] : memref<1x128xf32, #tpu.memory_space<vmem>>, vector<1x128xf32>
    %123 = vector.broadcast %122 : vector<1x128xf32> to vector<64x128xf32>
    %124 = arith.addf %121, %123 : vector<64x128xf32>
    %125 = arith.truncf %124 : vector<64x128xf32> to vector<64x128xbf16>
    %c0_53 = arith.constant 0 : index
    %c0_54 = arith.constant 0 : index
    %c0_55 = arith.constant 0 : index
    %126 = vector.load %arg11[%c0_53, %c0_54, %c0_55] : memref<1x64x128xbf16, #tpu.memory_space<vmem>>, vector<1x64x128xbf16>
    %127 = vector.shape_cast %126 : vector<1x64x128xbf16> to vector<64x128xbf16>
    %128 = vector.shape_cast %125 : vector<64x128xbf16> to vector<1x64x128xbf16>
    tpu.vector_store %arg11[%c0_53, %c0_54, %c0_55], %128 {strides = array<i32>} : memref<1x64x128xbf16, #tpu.memory_space<vmem>>, vector<1x64x128xbf16>,
    return
  }
  func.func @transform_0(%arg0: i32) -> (i32, i32, i32) {
    %c0_i32 = arith.constant 0 : i32
    %c0_i32_0 = arith.constant 0 : i32
    %c0_i32_1 = arith.constant 0 : i32
    return %arg0, %c0_i32, %c0_i32_0 : i32, i32, i32
  }
  func.func @transform_1(%arg0: i32) -> (i32, i32, i32) {
    %c0_i32 = arith.constant 0 : i32
    %c0_i32_0 = arith.constant 0 : i32
    %c0_i32_1 = arith.constant 0 : i32
    %c0_i32_2 = arith.constant 0 : i32
    return %c0_i32, %c0_i32_0, %c0_i32_1 : i32, i32, i32
  }
  func.func @transform_2(%arg0: i32) -> (i32, i32) {
    %c0_i32 = arith.constant 0 : i32
    %c0_i32_0 = arith.constant 0 : i32
    %c0_i32_1 = arith.constant 0 : i32
    return %c0_i32, %c0_i32_0 : i32, i32
  }
  func.func @transform_3(%arg0: i32) -> (i32, i32) {
    %c0_i32 = arith.constant 0 : i32
    %c0_i32_0 = arith.constant 0 : i32
    %c0_i32_1 = arith.constant 0 : i32
    return %c0_i32, %c0_i32_0 : i32, i32
  }
  func.func @transform_4(%arg0: i32) -> (i32, i32) {
    %c0_i32 = arith.constant 0 : i32
    %c0_i32_0 = arith.constant 0 : i32
    %c0_i32_1 = arith.constant 0 : i32
    return %c0_i32, %c0_i32_0 : i32, i32
  }
  func.func @transform_5(%arg0: i32) -> (i32, i32) {
    %c0_i32 = arith.constant 0 : i32
    %c0_i32_0 = arith.constant 0 : i32
    %c0_i32_1 = arith.constant 0 : i32
    return %c0_i32, %c0_i32_0 : i32, i32
  }
  func.func @transform_6(%arg0: i32) -> (i32, i32) {
    %c0_i32 = arith.constant 0 : i32
    %c0_i32_0 = arith.constant 0 : i32
    %c0_i32_1 = arith.constant 0 : i32
    return %c0_i32, %c0_i32_0 : i32, i32
  }
  func.func @transform_7(%arg0: i32) -> (i32, i32) {
    %c0_i32 = arith.constant 0 : i32
    %c0_i32_0 = arith.constant 0 : i32
    %c0_i32_1 = arith.constant 0 : i32
    return %c0_i32, %c0_i32_0 : i32, i32
  }
  func.func @transform_8(%arg0: i32) -> (i32, i32) {
    %c0_i32 = arith.constant 0 : i32
    %c0_i32_0 = arith.constant 0 : i32
    %c0_i32_1 = arith.constant 0 : i32
    return %c0_i32, %c0_i32_0 : i32, i32
  }
  func.func @transform_9(%arg0: i32) -> (i32, i32) {
    %c0_i32 = arith.constant 0 : i32
    %c0_i32_0 = arith.constant 0 : i32
    %c0_i32_1 = arith.constant 0 : i32
    return %c0_i32, %c0_i32_0 : i32, i32
  }
  func.func @transform_10(%arg0: i32) -> (i32, i32, i32) {
    %c0_i32 = arith.constant 0 : i32
    %c0_i32_0 = arith.constant 0 : i32
    %c0_i32_1 = arith.constant 0 : i32
    return %arg0, %c0_i32, %c0_i32_0 : i32, i32, i32
  }
}

module attributes {stable_mosaic.version = 11 : i64} {
  func.func @_mbconv_kernel(%arg0: i32, %arg1: memref<1x64x128xbf16, #tpu.memory_space<vmem>>, %arg2: memref<9x16x64xbf16, #tpu.memory_space<vmem>>, %arg3: memref<128x128xbf16, #tpu.memory_space<vmem>>, %arg4: memref<1x128xf32, #tpu.memory_space<vmem>>, %arg5: memref<9x128xf32, #tpu.memory_space<vmem>>, %arg6: memref<1x128xf32, #tpu.memory_space<vmem>>, %arg7: memref<128x128xbf16, #tpu.memory_space<vmem>>, %arg8: memref<1x128xf32, #tpu.memory_space<vmem>>, %arg9: memref<128x128xbf16, #tpu.memory_space<vmem>>, %arg10: memref<1x128xf32, #tpu.memory_space<vmem>>, %arg11: memref<128x128xbf16, #tpu.memory_space<vmem>>, %arg12: memref<1x128xf32, #tpu.memory_space<vmem>>, %arg13: memref<128x128xbf16, #tpu.memory_space<vmem>>, %arg14: memref<1x128xf32, #tpu.memory_space<vmem>>, %arg15: memref<128x128xbf16, #tpu.memory_space<vmem>>, %arg16: memref<1x128xf32, #tpu.memory_space<vmem>>, %arg17: memref<1x1x128xf32, #tpu.memory_space<vmem>>) attributes {dimension_semantics = [#tpu.dimension_semantics<parallel>], iteration_bounds = array<i64: 2>, scalar_prefetch = 0 : i64, scratch_operands = 0 : i64, tpu.core_type = #tpu.core_type<tc>, window_params = [{transform_indices = @transform_0, window_bounds = array<i64: 1, 64, 128>}, {pipeline_mode = #tpu.pipeline_mode<synchronous>, transform_indices = @transform_1, window_bounds = array<i64: 9, 16, 64>}, {pipeline_mode = #tpu.pipeline_mode<synchronous>, transform_indices = @transform_2, window_bounds = array<i64: 128, 128>}, {pipeline_mode = #tpu.pipeline_mode<synchronous>, transform_indices = @transform_3, window_bounds = array<i64: 1, 128>}, {pipeline_mode = #tpu.pipeline_mode<synchronous>, transform_indices = @transform_4, window_bounds = array<i64: 9, 128>}, {pipeline_mode = #tpu.pipeline_mode<synchronous>, transform_indices = @transform_5, window_bounds = array<i64: 1, 128>}, {pipeline_mode = #tpu.pipeline_mode<synchronous>, transform_indices = @transform_6, window_bounds = array<i64: 128, 128>}, {pipeline_mode = #tpu.pipeline_mode<synchronous>, transform_indices = @transform_7, window_bounds = array<i64: 1, 128>}, {pipeline_mode = #tpu.pipeline_mode<synchronous>, transform_indices = @transform_8, window_bounds = array<i64: 128, 128>}, {pipeline_mode = #tpu.pipeline_mode<synchronous>, transform_indices = @transform_9, window_bounds = array<i64: 1, 128>}, {pipeline_mode = #tpu.pipeline_mode<synchronous>, transform_indices = @transform_10, window_bounds = array<i64: 128, 128>}, {pipeline_mode = #tpu.pipeline_mode<synchronous>, transform_indices = @transform_11, window_bounds = array<i64: 1, 128>}, {pipeline_mode = #tpu.pipeline_mode<synchronous>, transform_indices = @transform_12, window_bounds = array<i64: 128, 128>}, {pipeline_mode = #tpu.pipeline_mode<synchronous>, transform_indices = @transform_13, window_bounds = array<i64: 1, 128>}, {pipeline_mode = #tpu.pipeline_mode<synchronous>, transform_indices = @transform_14, window_bounds = array<i64: 128, 128>}, {pipeline_mode = #tpu.pipeline_mode<synchronous>, transform_indices = @transform_15, window_bounds = array<i64: 1, 128>}, {transform_indices = @transform_16, window_bounds = array<i64: 1, 1, 128>}]} {
    %c0 = arith.constant 0 : index
    %c0_0 = arith.constant 0 : index
    %c0_1 = arith.constant 0 : index
    %0 = vector.load %arg1[%c0, %c0_0, %c0_1] : memref<1x64x128xbf16, #tpu.memory_space<vmem>>, vector<1x64x128xbf16>
    %1 = vector.shape_cast %0 : vector<1x64x128xbf16> to vector<64x128xbf16>
    %c0_2 = arith.constant 0 : index
    %c0_3 = arith.constant 0 : index
    %2 = vector.load %arg3[%c0_2, %c0_3] : memref<128x128xbf16, #tpu.memory_space<vmem>>, vector<128x128xbf16>
    %cst = arith.constant dense<0.000000e+00> : vector<64x128xf32>
    %3 = tpu.matmul %1, %2, %cst {dimension_numbers = #tpu.dot_dimension_numbers<[1], [0], [0], [1], [0, 0, 1, 1], [], []>} : vector<64x128xbf16>, vector<128x128xbf16>, vector<64x128xf32> -> vector<64x128xf32>
    %c0_4 = arith.constant 0 : index
    %c0_5 = arith.constant 0 : index
    %4 = vector.load %arg4[%c0_4, %c0_5] : memref<1x128xf32, #tpu.memory_space<vmem>>, vector<1x128xf32>
    %5 = vector.broadcast %4 : vector<1x128xf32> to vector<64x128xf32>
    %6 = arith.addf %3, %5 : vector<64x128xf32>
    %7 = arith.negf %6 : vector<64x128xf32>
    %8 = math.exp %7 : vector<64x128xf32>
    %cst_6 = arith.constant 1.000000e+00 : f32
    %9 = vector.broadcast %cst_6 : f32 to vector<64x128xf32>
    %10 = arith.addf %9, %8 : vector<64x128xf32>
    %11 = arith.divf %9, %10 : vector<64x128xf32>
    %12 = arith.mulf %6, %11 : vector<64x128xf32>
    %13 = arith.truncf %12 : vector<64x128xf32> to vector<64x128xbf16>
    %c0_7 = arith.constant 0 : index
    %c0_8 = arith.constant 0 : index
    %14 = vector.load %arg5[%c0_7, %c0_8] : memref<9x128xf32, #tpu.memory_space<vmem>>, vector<9x128xf32>
    %c0_9 = arith.constant 0 : index
    %c0_10 = arith.constant 0 : index
    %c0_11 = arith.constant 0 : index
    %15 = vector.load %arg2[%c0_9, %c0_10, %c0_11] : memref<9x16x64xbf16, #tpu.memory_space<vmem>>, vector<1x16x64xbf16>
    %16 = vector.shape_cast %15 : vector<1x16x64xbf16> to vector<16x64xbf16>
    %cst_12 = arith.constant dense<0.000000e+00> : vector<16x128xf32>
    %17 = tpu.matmul %16, %13, %cst_12 {dimension_numbers = #tpu.dot_dimension_numbers<[1], [0], [0], [1], [0, 0, 1, 1], [], []>} : vector<16x64xbf16>, vector<64x128xbf16>, vector<16x128xf32> -> vector<16x128xf32>
    %18 = vector.extract_strided_slice %14 {offsets = [0, 0], sizes = [1, 128], strides = [1, 1]} : vector<9x128xf32> to vector<1x128xf32>
    %19 = vector.shape_cast %18 : vector<1x128xf32> to vector<128xf32>
    %20 = vector.shape_cast %19 : vector<128xf32> to vector<1x128xf32>
    %21 = vector.broadcast %20 : vector<1x128xf32> to vector<16x128xf32>
    %22 = arith.mulf %17, %21 : vector<16x128xf32>
    %c1 = arith.constant 1 : index
    %c0_13 = arith.constant 0 : index
    %c0_14 = arith.constant 0 : index
    %23 = vector.load %arg2[%c1, %c0_13, %c0_14] : memref<9x16x64xbf16, #tpu.memory_space<vmem>>, vector<1x16x64xbf16>
    %24 = vector.shape_cast %23 : vector<1x16x64xbf16> to vector<16x64xbf16>
    %cst_15 = arith.constant dense<0.000000e+00> : vector<16x128xf32>
    %25 = tpu.matmul %24, %13, %cst_15 {dimension_numbers = #tpu.dot_dimension_numbers<[1], [0], [0], [1], [0, 0, 1, 1], [], []>} : vector<16x64xbf16>, vector<64x128xbf16>, vector<16x128xf32> -> vector<16x128xf32>
    %26 = vector.extract_strided_slice %14 {offsets = [1, 0], sizes = [1, 128], strides = [1, 1]} : vector<9x128xf32> to vector<1x128xf32>
    %27 = vector.shape_cast %26 : vector<1x128xf32> to vector<128xf32>
    %28 = vector.shape_cast %27 : vector<128xf32> to vector<1x128xf32>
    %29 = vector.broadcast %28 : vector<1x128xf32> to vector<16x128xf32>
    %30 = arith.mulf %25, %29 : vector<16x128xf32>
    %31 = arith.addf %22, %30 : vector<16x128xf32>
    %c2 = arith.constant 2 : index
    %c0_16 = arith.constant 0 : index
    %c0_17 = arith.constant 0 : index
    %32 = vector.load %arg2[%c2, %c0_16, %c0_17] : memref<9x16x64xbf16, #tpu.memory_space<vmem>>, vector<1x16x64xbf16>
    %33 = vector.shape_cast %32 : vector<1x16x64xbf16> to vector<16x64xbf16>
    %cst_18 = arith.constant dense<0.000000e+00> : vector<16x128xf32>
    %34 = tpu.matmul %33, %13, %cst_18 {dimension_numbers = #tpu.dot_dimension_numbers<[1], [0], [0], [1], [0, 0, 1, 1], [], []>} : vector<16x64xbf16>, vector<64x128xbf16>, vector<16x128xf32> -> vector<16x128xf32>
    %35 = vector.extract_strided_slice %14 {offsets = [2, 0], sizes = [1, 128], strides = [1, 1]} : vector<9x128xf32> to vector<1x128xf32>
    %36 = vector.shape_cast %35 : vector<1x128xf32> to vector<128xf32>
    %37 = vector.shape_cast %36 : vector<128xf32> to vector<1x128xf32>
    %38 = vector.broadcast %37 : vector<1x128xf32> to vector<16x128xf32>
    %39 = arith.mulf %34, %38 : vector<16x128xf32>
    %40 = arith.addf %31, %39 : vector<16x128xf32>
    %c3 = arith.constant 3 : index
    %c0_19 = arith.constant 0 : index
    %c0_20 = arith.constant 0 : index
    %41 = vector.load %arg2[%c3, %c0_19, %c0_20] : memref<9x16x64xbf16, #tpu.memory_space<vmem>>, vector<1x16x64xbf16>
    %42 = vector.shape_cast %41 : vector<1x16x64xbf16> to vector<16x64xbf16>
    %cst_21 = arith.constant dense<0.000000e+00> : vector<16x128xf32>
    %43 = tpu.matmul %42, %13, %cst_21 {dimension_numbers = #tpu.dot_dimension_numbers<[1], [0], [0], [1], [0, 0, 1, 1], [], []>} : vector<16x64xbf16>, vector<64x128xbf16>, vector<16x128xf32> -> vector<16x128xf32>
    %44 = vector.extract_strided_slice %14 {offsets = [3, 0], sizes = [1, 128], strides = [1, 1]} : vector<9x128xf32> to vector<1x128xf32>
    %45 = vector.shape_cast %44 : vector<1x128xf32> to vector<128xf32>
    %46 = vector.shape_cast %45 : vector<128xf32> to vector<1x128xf32>
    %47 = vector.broadcast %46 : vector<1x128xf32> to vector<16x128xf32>
    %48 = arith.mulf %43, %47 : vector<16x128xf32>
    %49 = arith.addf %40, %48 : vector<16x128xf32>
    %c4 = arith.constant 4 : index
    %c0_22 = arith.constant 0 : index
    %c0_23 = arith.constant 0 : index
    %50 = vector.load %arg2[%c4, %c0_22, %c0_23] : memref<9x16x64xbf16, #tpu.memory_space<vmem>>, vector<1x16x64xbf16>
    %51 = vector.shape_cast %50 : vector<1x16x64xbf16> to vector<16x64xbf16>
    %cst_24 = arith.constant dense<0.000000e+00> : vector<16x128xf32>
    %52 = tpu.matmul %51, %13, %cst_24 {dimension_numbers = #tpu.dot_dimension_numbers<[1], [0], [0], [1], [0, 0, 1, 1], [], []>} : vector<16x64xbf16>, vector<64x128xbf16>, vector<16x128xf32> -> vector<16x128xf32>
    %53 = vector.extract_strided_slice %14 {offsets = [4, 0], sizes = [1, 128], strides = [1, 1]} : vector<9x128xf32> to vector<1x128xf32>
    %54 = vector.shape_cast %53 : vector<1x128xf32> to vector<128xf32>
    %55 = vector.shape_cast %54 : vector<128xf32> to vector<1x128xf32>
    %56 = vector.broadcast %55 : vector<1x128xf32> to vector<16x128xf32>
    %57 = arith.mulf %52, %56 : vector<16x128xf32>
    %58 = arith.addf %49, %57 : vector<16x128xf32>
    %c5 = arith.constant 5 : index
    %c0_25 = arith.constant 0 : index
    %c0_26 = arith.constant 0 : index
    %59 = vector.load %arg2[%c5, %c0_25, %c0_26] : memref<9x16x64xbf16, #tpu.memory_space<vmem>>, vector<1x16x64xbf16>
    %60 = vector.shape_cast %59 : vector<1x16x64xbf16> to vector<16x64xbf16>
    %cst_27 = arith.constant dense<0.000000e+00> : vector<16x128xf32>
    %61 = tpu.matmul %60, %13, %cst_27 {dimension_numbers = #tpu.dot_dimension_numbers<[1], [0], [0], [1], [0, 0, 1, 1], [], []>} : vector<16x64xbf16>, vector<64x128xbf16>, vector<16x128xf32> -> vector<16x128xf32>
    %62 = vector.extract_strided_slice %14 {offsets = [5, 0], sizes = [1, 128], strides = [1, 1]} : vector<9x128xf32> to vector<1x128xf32>
    %63 = vector.shape_cast %62 : vector<1x128xf32> to vector<128xf32>
    %64 = vector.shape_cast %63 : vector<128xf32> to vector<1x128xf32>
    %65 = vector.broadcast %64 : vector<1x128xf32> to vector<16x128xf32>
    %66 = arith.mulf %61, %65 : vector<16x128xf32>
    %67 = arith.addf %58, %66 : vector<16x128xf32>
    %c6 = arith.constant 6 : index
    %c0_28 = arith.constant 0 : index
    %c0_29 = arith.constant 0 : index
    %68 = vector.load %arg2[%c6, %c0_28, %c0_29] : memref<9x16x64xbf16, #tpu.memory_space<vmem>>, vector<1x16x64xbf16>
    %69 = vector.shape_cast %68 : vector<1x16x64xbf16> to vector<16x64xbf16>
    %cst_30 = arith.constant dense<0.000000e+00> : vector<16x128xf32>
    %70 = tpu.matmul %69, %13, %cst_30 {dimension_numbers = #tpu.dot_dimension_numbers<[1], [0], [0], [1], [0, 0, 1, 1], [], []>} : vector<16x64xbf16>, vector<64x128xbf16>, vector<16x128xf32> -> vector<16x128xf32>
    %71 = vector.extract_strided_slice %14 {offsets = [6, 0], sizes = [1, 128], strides = [1, 1]} : vector<9x128xf32> to vector<1x128xf32>
    %72 = vector.shape_cast %71 : vector<1x128xf32> to vector<128xf32>
    %73 = vector.shape_cast %72 : vector<128xf32> to vector<1x128xf32>
    %74 = vector.broadcast %73 : vector<1x128xf32> to vector<16x128xf32>
    %75 = arith.mulf %70, %74 : vector<16x128xf32>
    %76 = arith.addf %67, %75 : vector<16x128xf32>
    %c7 = arith.constant 7 : index
    %c0_31 = arith.constant 0 : index
    %c0_32 = arith.constant 0 : index
    %77 = vector.load %arg2[%c7, %c0_31, %c0_32] : memref<9x16x64xbf16, #tpu.memory_space<vmem>>, vector<1x16x64xbf16>
    %78 = vector.shape_cast %77 : vector<1x16x64xbf16> to vector<16x64xbf16>
    %cst_33 = arith.constant dense<0.000000e+00> : vector<16x128xf32>
    %79 = tpu.matmul %78, %13, %cst_33 {dimension_numbers = #tpu.dot_dimension_numbers<[1], [0], [0], [1], [0, 0, 1, 1], [], []>} : vector<16x64xbf16>, vector<64x128xbf16>, vector<16x128xf32> -> vector<16x128xf32>
    %80 = vector.extract_strided_slice %14 {offsets = [7, 0], sizes = [1, 128], strides = [1, 1]} : vector<9x128xf32> to vector<1x128xf32>
    %81 = vector.shape_cast %80 : vector<1x128xf32> to vector<128xf32>
    %82 = vector.shape_cast %81 : vector<128xf32> to vector<1x128xf32>
    %83 = vector.broadcast %82 : vector<1x128xf32> to vector<16x128xf32>
    %84 = arith.mulf %79, %83 : vector<16x128xf32>
    %85 = arith.addf %76, %84 : vector<16x128xf32>
    %c8 = arith.constant 8 : index
    %c0_34 = arith.constant 0 : index
    %c0_35 = arith.constant 0 : index
    %86 = vector.load %arg2[%c8, %c0_34, %c0_35] : memref<9x16x64xbf16, #tpu.memory_space<vmem>>, vector<1x16x64xbf16>
    %87 = vector.shape_cast %86 : vector<1x16x64xbf16> to vector<16x64xbf16>
    %cst_36 = arith.constant dense<0.000000e+00> : vector<16x128xf32>
    %88 = tpu.matmul %87, %13, %cst_36 {dimension_numbers = #tpu.dot_dimension_numbers<[1], [0], [0], [1], [0, 0, 1, 1], [], []>} : vector<16x64xbf16>, vector<64x128xbf16>, vector<16x128xf32> -> vector<16x128xf32>
    %89 = vector.extract_strided_slice %14 {offsets = [8, 0], sizes = [1, 128], strides = [1, 1]} : vector<9x128xf32> to vector<1x128xf32>
    %90 = vector.shape_cast %89 : vector<1x128xf32> to vector<128xf32>
    %91 = vector.shape_cast %90 : vector<128xf32> to vector<1x128xf32>
    %92 = vector.broadcast %91 : vector<1x128xf32> to vector<16x128xf32>
    %93 = arith.mulf %88, %92 : vector<16x128xf32>
    %94 = arith.addf %85, %93 : vector<16x128xf32>
    %c0_37 = arith.constant 0 : index
    %c0_38 = arith.constant 0 : index
    %95 = vector.load %arg6[%c0_37, %c0_38] : memref<1x128xf32, #tpu.memory_space<vmem>>, vector<1x128xf32>
    %96 = vector.broadcast %95 : vector<1x128xf32> to vector<16x128xf32>
    %97 = arith.addf %94, %96 : vector<16x128xf32>
    %98 = arith.negf %97 : vector<16x128xf32>
    %99 = math.exp %98 : vector<16x128xf32>
    %cst_39 = arith.constant 1.000000e+00 : f32
    %100 = vector.broadcast %cst_39 : f32 to vector<16x128xf32>
    %101 = arith.addf %100, %99 : vector<16x128xf32>
    %102 = arith.divf %100, %101 : vector<16x128xf32>
    %103 = arith.mulf %97, %102 : vector<16x128xf32>
    %cst_40 = arith.constant dense<0.000000e+00> : vector<128xf32>
    %104 = vector.multi_reduction <add>, %103, %cst_40 [0] : vector<16x128xf32> to vector<128xf32>
    %105 = vector.shape_cast %104 : vector<128xf32> to vector<1x128xf32>
    %cst_41 = arith.constant 1.600000e+01 : f32
    %106 = vector.broadcast %cst_41 : f32 to vector<1x128xf32>
    %107 = arith.divf %105, %106 : vector<1x128xf32>
    %108 = arith.truncf %107 : vector<1x128xf32> to vector<1x128xbf16>
    %c0_42 = arith.constant 0 : index
    %c0_43 = arith.constant 0 : index
    %109 = vector.load %arg7[%c0_42, %c0_43] : memref<128x128xbf16, #tpu.memory_space<vmem>>, vector<128x128xbf16>
    %cst_44 = arith.constant dense<0.000000e+00> : vector<1x128xf32>
    %110 = tpu.matmul %108, %109, %cst_44 {dimension_numbers = #tpu.dot_dimension_numbers<[1], [0], [0], [1], [0, 0, 1, 1], [], []>} : vector<1x128xbf16>, vector<128x128xbf16>, vector<1x128xf32> -> vector<1x128xf32>
    %c0_45 = arith.constant 0 : index
    %c0_46 = arith.constant 0 : index
    %111 = vector.load %arg8[%c0_45, %c0_46] : memref<1x128xf32, #tpu.memory_space<vmem>>, vector<1x128xf32>
    %112 = arith.addf %110, %111 : vector<1x128xf32>
    %113 = arith.negf %112 : vector<1x128xf32>
    %114 = math.exp %113 : vector<1x128xf32>
    %cst_47 = arith.constant 1.000000e+00 : f32
    %115 = vector.broadcast %cst_47 : f32 to vector<1x128xf32>
    %116 = arith.addf %115, %114 : vector<1x128xf32>
    %117 = arith.divf %115, %116 : vector<1x128xf32>
    %118 = arith.mulf %112, %117 : vector<1x128xf32>
    %119 = arith.truncf %118 : vector<1x128xf32> to vector<1x128xbf16>
    %c0_48 = arith.constant 0 : index
    %c0_49 = arith.constant 0 : index
    %120 = vector.load %arg9[%c0_48, %c0_49] : memref<128x128xbf16, #tpu.memory_space<vmem>>, vector<128x128xbf16>
    %cst_50 = arith.constant dense<0.000000e+00> : vector<1x128xf32>
    %121 = tpu.matmul %119, %120, %cst_50 {dimension_numbers = #tpu.dot_dimension_numbers<[1], [0], [0], [1], [0, 0, 1, 1], [], []>} : vector<1x128xbf16>, vector<128x128xbf16>, vector<1x128xf32> -> vector<1x128xf32>
    %c0_51 = arith.constant 0 : index
    %c0_52 = arith.constant 0 : index
    %122 = vector.load %arg10[%c0_51, %c0_52] : memref<1x128xf32, #tpu.memory_space<vmem>>, vector<1x128xf32>
    %123 = arith.addf %121, %122 : vector<1x128xf32>
    %124 = arith.negf %123 : vector<1x128xf32>
    %125 = math.exp %124 : vector<1x128xf32>
    %cst_53 = arith.constant 1.000000e+00 : f32
    %126 = vector.broadcast %cst_53 : f32 to vector<1x128xf32>
    %127 = arith.addf %126, %125 : vector<1x128xf32>
    %128 = arith.divf %126, %127 : vector<1x128xf32>
    %129 = vector.broadcast %128 : vector<1x128xf32> to vector<16x128xf32>
    %130 = arith.mulf %103, %129 : vector<16x128xf32>
    %131 = arith.truncf %130 : vector<16x128xf32> to vector<16x128xbf16>
    %c0_54 = arith.constant 0 : index
    %c0_55 = arith.constant 0 : index
    %132 = vector.load %arg11[%c0_54, %c0_55] : memref<128x128xbf16, #tpu.memory_space<vmem>>, vector<128x128xbf16>
    %cst_56 = arith.constant dense<0.000000e+00> : vector<16x128xf32>
    %133 = tpu.matmul %131, %132, %cst_56 {dimension_numbers = #tpu.dot_dimension_numbers<[1], [0], [0], [1], [0, 0, 1, 1], [], []>} : vector<16x128xbf16>, vector<128x128xbf16>, vector<16x128xf32> -> vector<16x128xf32>
    %c0_57 = arith.constant 0 : index
    %c0_58 = arith.constant 0 : index
    %134 = vector.load %arg12[%c0_57, %c0_58] : memref<1x128xf32, #tpu.memory_space<vmem>>, vector<1x128xf32>
    %135 = vector.broadcast %134 : vector<1x128xf32> to vector<16x128xf32>
    %136 = arith.addf %133, %135 : vector<16x128xf32>
    %137 = arith.truncf %136 : vector<16x128xf32> to vector<16x128xbf16>
    %c0_59 = arith.constant 0 : index
    %c0_60 = arith.constant 0 : index
    %138 = vector.load %arg13[%c0_59, %c0_60] : memref<128x128xbf16, #tpu.memory_space<vmem>>, vector<128x128xbf16>
    %cst_61 = arith.constant dense<0.000000e+00> : vector<16x128xf32>
    %139 = tpu.matmul %137, %138, %cst_61 {dimension_numbers = #tpu.dot_dimension_numbers<[1], [0], [0], [1], [0, 0, 1, 1], [], []>} : vector<16x128xbf16>, vector<128x128xbf16>, vector<16x128xf32> -> vector<16x128xf32>
    %c0_62 = arith.constant 0 : index
    %c0_63 = arith.constant 0 : index
    %140 = vector.load %arg14[%c0_62, %c0_63] : memref<1x128xf32, #tpu.memory_space<vmem>>, vector<1x128xf32>
    %141 = vector.broadcast %140 : vector<1x128xf32> to vector<16x128xf32>
    %142 = arith.addf %139, %141 : vector<16x128xf32>
    %143 = arith.negf %142 : vector<16x128xf32>
    %144 = math.exp %143 : vector<16x128xf32>
    %cst_64 = arith.constant 1.000000e+00 : f32
    %145 = vector.broadcast %cst_64 : f32 to vector<16x128xf32>
    %146 = arith.addf %145, %144 : vector<16x128xf32>
    %147 = arith.divf %145, %146 : vector<16x128xf32>
    %148 = arith.mulf %142, %147 : vector<16x128xf32>
    %cst_65 = arith.constant dense<0.000000e+00> : vector<128xf32>
    %149 = vector.multi_reduction <add>, %148, %cst_65 [0] : vector<16x128xf32> to vector<128xf32>
    %150 = vector.shape_cast %149 : vector<128xf32> to vector<1x128xf32>
    %cst_66 = arith.constant 1.600000e+01 : f32
    %151 = vector.broadcast %cst_66 : f32 to vector<1x128xf32>
    %152 = arith.divf %150, %151 : vector<1x128xf32>
    %153 = arith.truncf %152 : vector<1x128xf32> to vector<1x128xbf16>
    %c0_67 = arith.constant 0 : index
    %c0_68 = arith.constant 0 : index
    %154 = vector.load %arg15[%c0_67, %c0_68] : memref<128x128xbf16, #tpu.memory_space<vmem>>, vector<128x128xbf16>
    %cst_69 = arith.constant dense<0.000000e+00> : vector<1x128xf32>
    %155 = tpu.matmul %153, %154, %cst_69 {dimension_numbers = #tpu.dot_dimension_numbers<[1], [0], [0], [1], [0, 0, 1, 1], [], []>} : vector<1x128xbf16>, vector<128x128xbf16>, vector<1x128xf32> -> vector<1x128xf32>
    %c0_70 = arith.constant 0 : index
    %c0_71 = arith.constant 0 : index
    %156 = vector.load %arg16[%c0_70, %c0_71] : memref<1x128xf32, #tpu.memory_space<vmem>>, vector<1x128xf32>
    %157 = arith.addf %155, %156 : vector<1x128xf32>
    %158 = tpu.iota {dimensions = array<i32: 1>} : vector<1x128xi32>
    %c48_i32 = arith.constant 48 : i32
    %159 = vector.broadcast %c48_i32 : i32 to vector<1x128xi32>
    %160 = arith.cmpi sge, %158, %159 : vector<1x128xi32>
    %c51_i32 = arith.constant 51 : i32
    %161 = vector.broadcast %c51_i32 : i32 to vector<1x128xi32>
    %162 = arith.cmpi slt, %158, %161 : vector<1x128xi32>
    %163 = arith.andi %160, %162 : vector<1x128xi1>
    %cst_72 = arith.constant -1.000000e+30 : f32
    %164 = vector.broadcast %cst_72 : f32 to vector<1x128xf32>
    %165 = arith.select %163, %157, %164 : vector<1x128xi1>, vector<1x128xf32>
    %cst_73 = arith.constant dense<0xFF800000> : vector<1xf32>
    %166 = vector.multi_reduction <maximumf>, %165, %cst_73 [1] : vector<1x128xf32> to vector<1xf32>
    %167 = vector.shape_cast %166 : vector<1xf32> to vector<1x1xf32>
    %168 = vector.broadcast %167 : vector<1x1xf32> to vector<1x128xf32>
    %169 = arith.subf %165, %168 : vector<1x128xf32>
    %170 = math.exp %169 : vector<1x128xf32>
    %cst_74 = arith.constant dense<0.000000e+00> : vector<1xf32>
    %171 = vector.multi_reduction <add>, %170, %cst_74 [1] : vector<1x128xf32> to vector<1xf32>
    %172 = vector.shape_cast %171 : vector<1xf32> to vector<1x1xf32>
    %173 = vector.broadcast %172 : vector<1x1xf32> to vector<1x128xf32>
    %174 = arith.divf %170, %173 : vector<1x128xf32>
    %175 = arith.select %163, %174, %157 : vector<1x128xi1>, vector<1x128xf32>
    %c0_75 = arith.constant 0 : index
    %c0_76 = arith.constant 0 : index
    %c0_77 = arith.constant 0 : index
    %176 = vector.load %arg17[%c0_75, %c0_76, %c0_77] : memref<1x1x128xf32, #tpu.memory_space<vmem>>, vector<1x1x128xf32>
    %177 = vector.shape_cast %176 : vector<1x1x128xf32> to vector<1x128xf32>
    %178 = vector.shape_cast %175 : vector<1x128xf32> to vector<1x1x128xf32>
    tpu.vector_store %arg17[%c0_75, %c0_76, %c0_77], %178 {strides = array<i32>} : memref<1x1x128xf32, #tpu.memory_space<vmem>>, vector<1x1x128xf32>,
    return
  }
  func.func @transform_0(%arg0: i32) -> (i32, i32, i32) {
    %c0_i32 = arith.constant 0 : i32
    %c0_i32_0 = arith.constant 0 : i32
    %c0_i32_1 = arith.constant 0 : i32
    return %arg0, %c0_i32, %c0_i32_0 : i32, i32, i32
  }
  func.func @transform_1(%arg0: i32) -> (i32, i32, i32) {
    %c0_i32 = arith.constant 0 : i32
    %c0_i32_0 = arith.constant 0 : i32
    %c0_i32_1 = arith.constant 0 : i32
    %c0_i32_2 = arith.constant 0 : i32
    return %c0_i32, %c0_i32_0, %c0_i32_1 : i32, i32, i32
  }
  func.func @transform_2(%arg0: i32) -> (i32, i32) {
    %c0_i32 = arith.constant 0 : i32
    %c0_i32_0 = arith.constant 0 : i32
    %c0_i32_1 = arith.constant 0 : i32
    return %c0_i32, %c0_i32_0 : i32, i32
  }
  func.func @transform_3(%arg0: i32) -> (i32, i32) {
    %c0_i32 = arith.constant 0 : i32
    %c0_i32_0 = arith.constant 0 : i32
    %c0_i32_1 = arith.constant 0 : i32
    return %c0_i32, %c0_i32_0 : i32, i32
  }
  func.func @transform_4(%arg0: i32) -> (i32, i32) {
    %c0_i32 = arith.constant 0 : i32
    %c0_i32_0 = arith.constant 0 : i32
    %c0_i32_1 = arith.constant 0 : i32
    return %c0_i32, %c0_i32_0 : i32, i32
  }
  func.func @transform_5(%arg0: i32) -> (i32, i32) {
    %c0_i32 = arith.constant 0 : i32
    %c0_i32_0 = arith.constant 0 : i32
    %c0_i32_1 = arith.constant 0 : i32
    return %c0_i32, %c0_i32_0 : i32, i32
  }
  func.func @transform_6(%arg0: i32) -> (i32, i32) {
    %c0_i32 = arith.constant 0 : i32
    %c0_i32_0 = arith.constant 0 : i32
    %c0_i32_1 = arith.constant 0 : i32
    return %c0_i32, %c0_i32_0 : i32, i32
  }
  func.func @transform_7(%arg0: i32) -> (i32, i32) {
    %c0_i32 = arith.constant 0 : i32
    %c0_i32_0 = arith.constant 0 : i32
    %c0_i32_1 = arith.constant 0 : i32
    return %c0_i32, %c0_i32_0 : i32, i32
  }
  func.func @transform_8(%arg0: i32) -> (i32, i32) {
    %c0_i32 = arith.constant 0 : i32
    %c0_i32_0 = arith.constant 0 : i32
    %c0_i32_1 = arith.constant 0 : i32
    return %c0_i32, %c0_i32_0 : i32, i32
  }
  func.func @transform_9(%arg0: i32) -> (i32, i32) {
    %c0_i32 = arith.constant 0 : i32
    %c0_i32_0 = arith.constant 0 : i32
    %c0_i32_1 = arith.constant 0 : i32
    return %c0_i32, %c0_i32_0 : i32, i32
  }
  func.func @transform_10(%arg0: i32) -> (i32, i32) {
    %c0_i32 = arith.constant 0 : i32
    %c0_i32_0 = arith.constant 0 : i32
    %c0_i32_1 = arith.constant 0 : i32
    return %c0_i32, %c0_i32_0 : i32, i32
  }
  func.func @transform_11(%arg0: i32) -> (i32, i32) {
    %c0_i32 = arith.constant 0 : i32
    %c0_i32_0 = arith.constant 0 : i32
    %c0_i32_1 = arith.constant 0 : i32
    return %c0_i32, %c0_i32_0 : i32, i32
  }
  func.func @transform_12(%arg0: i32) -> (i32, i32) {
    %c0_i32 = arith.constant 0 : i32
    %c0_i32_0 = arith.constant 0 : i32
    %c0_i32_1 = arith.constant 0 : i32
    return %c0_i32, %c0_i32_0 : i32, i32
  }
  func.func @transform_13(%arg0: i32) -> (i32, i32) {
    %c0_i32 = arith.constant 0 : i32
    %c0_i32_0 = arith.constant 0 : i32
    %c0_i32_1 = arith.constant 0 : i32
    return %c0_i32, %c0_i32_0 : i32, i32
  }
  func.func @transform_14(%arg0: i32) -> (i32, i32) {
    %c0_i32 = arith.constant 0 : i32
    %c0_i32_0 = arith.constant 0 : i32
    %c0_i32_1 = arith.constant 0 : i32
    return %c0_i32, %c0_i32_0 : i32, i32
  }
  func.func @transform_15(%arg0: i32) -> (i32, i32) {
    %c0_i32 = arith.constant 0 : i32
    %c0_i32_0 = arith.constant 0 : i32
    %c0_i32_1 = arith.constant 0 : i32
    return %c0_i32, %c0_i32_0 : i32, i32
  }
  func.func @transform_16(%arg0: i32) -> (i32, i32, i32) {
    %c0_i32 = arith.constant 0 : i32
    %c0_i32_0 = arith.constant 0 : i32
    %c0_i32_1 = arith.constant 0 : i32
    return %arg0, %c0_i32, %c0_i32_0 : i32, i32, i32
  }
}

</mosaic_0001>

<bundles_post_ra>
// kernel: lyft_effnet_forward.3
= control target key start
LH: loop header
LB: loop body
LE: loop exit
PB: predicated region body
PF: predicated region fallthrough
CT: control target
= control target key end

     0   :  { %s1179_s1 = inlined_call_operand.vmem [shape: bf16[256,128], index: 1, kind: input, shape index: {}]   ;;  %s1180_s0 = inlined_call_operand.vmem [shape: bf16[128,256], index: 0, kind: input, shape index: {}]   ;;  %s1181_s2 = inlined_call_operand.vmem [shape: f32[1,128], index: 2, kind: input, shape index: {}]   ;;  %s1182_s3 = inlined_call_operand.vmem [shape: bf16[128,128], index: 3, kind: output, shape index: {}]  }
   0x1   :  { %v850_v0 = vld [vmem:[%s1179_s1 + $0x40] sm:$0xff]   ;;  %v852_v2 = vld [vmem:[%s1179_s1 + $0x48] sm:$0xff]   ;;  %v854_v4 = vld [vmem:[%s1179_s1 + $0x50] sm:$0xff]  }
   0x2   :  { %v851_v1 = vld [vmem:[%s1179_s1] sm:$0xff]   ;;  %770 = vmatprep.subr.bf16.mxu0 %v850_v0  ;;  %834 = vmatprep.subr.bf16.mxu1 %v850_v0  ;;  %v853_v3 = vld [vmem:[%s1179_s1 + $0x8] sm:$0xff]   ;;  %v855_v5 = vld [vmem:[%s1179_s1 + $0x10] sm:$0xff]  }
   0x3   :  { %771 = vmatpush3.bf16.msra.mxu0 %v851_v1  ;;  %842 = vmatpush3.bf16.msra.mxu1 %v851_v1  ;;  %v856_v6 = vld [vmem:[%s1179_s1 + $0x58] sm:$0xff]   ;;  %v858_v8 = vld [vmem:[%s1179_s1 + $0x60] sm:$0xff]   ;;  %v860_v10 = vld [vmem:[%s1179_s1 + $0x68] sm:$0xff]  }
   0x4   :  { %772 = vmatprep.subr.bf16.mxu0 %v852_v2  ;;  %835 = vmatprep.subr.bf16.mxu1 %v852_v2  ;;  %v857_v7 = vld [vmem:[%s1179_s1 + $0x18] sm:$0xff]   ;;  %v859_v9 = vld [vmem:[%s1179_s1 + $0x20] sm:$0xff]   ;;  %v861_v13 = vld [vmem:[%s1179_s1 + $0x28] sm:$0xff]  }
   0x5   :  { %v868_v11 = vld [vmem:[%s1180_s0 + $0x4] ss:$8 sps:$4 sm:$0xff]   ;;  %v862_v14 = vld [vmem:[%s1179_s1 + $0x70] sm:$0xff]   ;;  %v864_v16 = vld [vmem:[%s1179_s1 + $0x78] sm:$0xff]  }
   0x6   :  { %v871_v12 = vld [vmem:[%s1180_s0 + $0x44] ss:$8 sps:$4 sm:$0xff]   ;;  %307 = vmatprep.mubr.bf16.mxu0 %v868_v11  ;;  %v863_v15 = vld [vmem:[%s1179_s1 + $0x30] sm:$0xff]   ;;  %v865_v17 = vld [vmem:[%s1179_s1 + $0x38] sm:$0xff]  }
   0x7   :  { %773 = vmatpush3.bf16.msra.mxu0 %v853_v3  ;;  %843 = vmatpush3.bf16.msra.mxu1 %v853_v3  ;;  %v866_v18 = vld [vmem:[%s1180_s0] ss:$8 sps:$4 sm:$0xff]   ;;  %v872_v20 = vld [vmem:[%s1180_s0 + $0x14] ss:$8 sps:$4 sm:$0xff]   ;;  %v876_v22 = vld [vmem:[%s1180_s0 + $0x10] ss:$8 sps:$4 sm:$0xff]  }
   0x8   :  { %774 = vmatprep.subr.bf16.mxu0 %v854_v4  ;;  %836 = vmatprep.subr.bf16.mxu1 %v854_v4  ;;  %v869_v19 = vld [vmem:[%s1180_s0 + $0x40] ss:$8 sps:$4 sm:$0xff]   ;;  %v874_v21 = vld [vmem:[%s1180_s0 + $0x54] ss:$8 sps:$4 sm:$0xff]   ;;  %v877_v23 = vld [vmem:[%s1180_s0 + $0x50] ss:$8 sps:$4 sm:$0xff]  }
   0x9   :  { %339 = vmatprep.mubr.bf16.mxu1 %v871_v12  ;;  %v878_v24 = vld [vmem:[%s1180_s0 + $0x24] ss:$8 sps:$4 sm:$0xff]   ;;  %v882_v26 = vld [vmem:[%s1180_s0 + $0x20] ss:$8 sps:$4 sm:$0xff]   ;;  %v884_v28 = vld [vmem:[%s1180_s0 + $0x34] ss:$8 sps:$4 sm:$0xff]  }
   0xa   :  { %v880_v25 = vld [vmem:[%s1180_s0 + $0x64] ss:$8 sps:$4 sm:$0xff]   ;;  %v883_v27 = vld [vmem:[%s1180_s0 + $0x60] ss:$8 sps:$4 sm:$0xff]   ;;  %v886_v29 = vld [vmem:[%s1180_s0 + $0x74] ss:$8 sps:$4 sm:$0xff]  }
   0xb   :  { %775 = vmatpush3.bf16.msra.mxu0 %v855_v5  ;;  %844 = vmatpush3.bf16.msra.mxu1 %v855_v5  ;;  %v888_v30 = vld [vmem:[%s1180_s0 + $0x30] ss:$8 sps:$4 sm:$0xff]   ;;  %v1073_v35 = vld [vmem:[%s1181_s2] ss:$0 sm:$0xff] }
   0xc   :  { %776 = vmatprep.subr.bf16.mxu0 %v856_v6  ;;  %837 = vmatprep.subr.bf16.mxu1 %v856_v6  ;;  %v889_v31 = vld [vmem:[%s1180_s0 + $0x70] ss:$8 sps:$4 sm:$0xff]  }
   0xf   :  { %777 = vmatpush3.bf16.msra.mxu0 %v857_v7  ;;  %845 = vmatpush3.bf16.msra.mxu1 %v857_v7 }
  0x10   :  { %778 = vmatprep.subr.bf16.mxu0 %v858_v8  ;;  %838 = vmatprep.subr.bf16.mxu1 %v858_v8 }
  0x13   :  { %779 = vmatpush3.bf16.msra.mxu0 %v859_v9  ;;  %846 = vmatpush3.bf16.msra.mxu1 %v859_v9 }
  0x14   :  { %780 = vmatprep.subr.bf16.mxu0 %v860_v10  ;;  %839 = vmatprep.subr.bf16.mxu1 %v860_v10 }
  0x17   :  { %781 = vmatpush3.bf16.msra.mxu0 %v861_v13  ;;  %847 = vmatpush3.bf16.msra.mxu1 %v861_v13 }
  0x18   :  { %782 = vmatprep.subr.bf16.mxu0 %v862_v14  ;;  %840 = vmatprep.subr.bf16.mxu1 %v862_v14 }
  0x1b   :  { %783 = vmatpush3.bf16.msra.mxu0 %v863_v15  ;;  %848 = vmatpush3.bf16.msra.mxu1 %v863_v15 }
  0x1c   :  { %784 = vmatprep.subr.bf16.mxu0 %v864_v16  ;;  %841 = vmatprep.subr.bf16.mxu1 %v864_v16 }
  0x1f   :  { %785 = vmatpush3.bf16.msra.mxu0 %v865_v17  ;;  %849 = vmatpush3.bf16.msra.mxu1 %v865_v17 }
  0x22   :  { %308 = vmatmul.mubr.bf16.vlgmr.msra.gmra.mrb[0].mxu0 %v866_v18  ;;  %340 = vmatmul.mubr.bf16.vlgmr.msra.gmra.mrb[0].mxu1 %v869_v19 }
  0x23   :  { %315 = vmatprep.mubr.bf16.mxu0 %v872_v20  ;;  %347 = vmatprep.mubr.bf16.mxu1 %v874_v21 }
  0x2a   :  { %316 = vmatmul.mubr.bf16.gmra.mrb[4].mxu0 %v876_v22  ;;  %348 = vmatmul.mubr.bf16.gmra.mrb[4].mxu1 %v877_v23 }
  0x2b   :  { %323 = vmatprep.mubr.bf16.mxu0 %v878_v24  ;;  %355 = vmatprep.mubr.bf16.mxu1 %v880_v25 }
  0x32   :  { %324 = vmatmul.mubr.bf16.gmra.mrb[8].mxu0 %v882_v26  ;;  %356 = vmatmul.mubr.bf16.gmra.mrb[8].mxu1 %v883_v27 }
  0x33   :  { %331 = vmatprep.mubr.bf16.mxu0 %v884_v28  ;;  %363 = vmatprep.mubr.bf16.mxu1 %v886_v29 }
  0x3a   :  { %332 = vmatmul.mubr.bf16.gmra.mrb[12].mxu0 %v888_v30  ;;  %364 = vmatmul.mubr.bf16.gmra.mrb[12].mxu1 %v889_v31 }
  0xf5   :  { %v786_v32 = vpop.f32.mrb[0].mxu0  ;;  %v810_v33 = vpop.f32.mrb[0].mxu1 }
  0xf6   :  { %v787_v34 = vpop.f32.mrb[1].mxu0  ;;  %v811_v36 = vpop.f32.mrb[1].mxu1 }
  0xf7   :  { %v788_v37 = vadd.f32 %v787_v34, %v786_v32  ;;  %v812_v38 = vadd.f32 %v811_v36, %v810_v33  ;;  %v789_v39 = vpop.f32.mrb[2].mxu0  ;;  %v813_v40 = vpop.f32.mrb[2].mxu1 }
  0xf8   :  { %v790_v41 = vpop.f32.mrb[3].mxu0  ;;  %v814_v42 = vpop.f32.mrb[3].mxu1 }
  0xf9   :  { %v1076_v43 = vadd.f32 %v788_v37, %v1073_v35  ;;  %v1079_v44 = vadd.f32 %v812_v38, %v1073_v35  ;;  %v791_v45 = vadd.f32 %v790_v41, %v789_v39  ;;  %v815_v46 = vadd.f32 %v814_v42, %v813_v40 }
  0xfb   :  { %v675_v47 = vmul.f32 -1.442695, %v1076_v43  ;;  %v683_v48 = vmul.f32 -1.442695, %v1079_v44  ;;  %v1084_v49 = vadd.f32 %v791_v45, %v1073_v35  ;;  %v1087_v50 = vadd.f32 %v815_v46, %v1073_v35 }
  0xfd   :  { %890 = vpow2.f32 %v675_v47  ;;  %v676_v51 = vmul.f32 -1.442695, %v1084_v49  ;;  %v684_v52 = vmul.f32 -1.442695, %v1087_v50  ;;  %v792_v53 = vpop.f32.mrb[4].mxu0  ;;  %v816_v54 = vpop.f32.mrb[4].mxu1 }
  0xfe   :  { %892 = vpow2.f32 %v683_v48  ;;  %v793_v55 = vpop.f32.mrb[5].mxu0  ;;  %v817_v56 = vpop.f32.mrb[5].mxu1 }
  0xff   :  { %894 = vpow2.f32 %v676_v51  ;;  %v794_v57 = vadd.f32 %v793_v55, %v792_v53  ;;  %v818_v58 = vadd.f32 %v817_v56, %v816_v54  ;;  %v795_v59 = vpop.f32.mrb[6].mxu0  ;;  %v819_v60 = vpop.f32.mrb[6].mxu1 }
 0x100   :  { %896 = vpow2.f32 %v684_v52  ;;  %v796_v61 = vpop.f32.mrb[7].mxu0  ;;  %v820_v62 = vpop.f32.mrb[7].mxu1 }
 0x101   :  { %v1092_v63 = vadd.f32 %v794_v57, %v1073_v35  ;;  %v1095_v0 = vadd.f32 %v818_v58, %v1073_v35  ;;  %v797_v1 = vadd.f32 %v796_v61, %v795_v59  ;;  %v821_v2 = vadd.f32 %v820_v62, %v819_v60 }
 0x103   :  { %v677_v3 = vmul.f32 -1.442695, %v1092_v63  ;;  %v685_v4 = vmul.f32 -1.442695, %v1095_v0  ;;  %v1100_v5 = vadd.f32 %v797_v1, %v1073_v35  ;;  %v1103_v6 = vadd.f32 %v821_v2, %v1073_v35 }
 0x105   :  { %898 = vpow2.f32 %v677_v3  ;;  %v678_v7 = vmul.f32 -1.442695, %v1100_v5  ;;  %v686_v8 = vmul.f32 -1.442695, %v1103_v6  ;;  %v798_v9 = vpop.f32.mrb[8].mxu0  ;;  %v822_v10 = vpop.f32.mrb[8].mxu1 }
 0x106   :  { %900 = vpow2.f32 %v685_v4  ;;  %v799_v11 = vpop.f32.mrb[9].mxu0  ;;  %v823_v12 = vpop.f32.mrb[9].mxu1 }
 0x107   :  { %v891_v13 = vpop.eup %890  ;;  %902 = vpow2.f32 %v678_v7  ;;  %v800_v14 = vadd.f32 %v799_v11, %v798_v9  ;;  %v824_v15 = vadd.f32 %v823_v12, %v822_v10  ;;  %v801_v16 = vpop.f32.mrb[10].mxu0 }
 0x108   :  { %v825_v17 = vpop.f32.mrb[10].mxu1  ;;  %v893_v18 = vpop.eup %892  ;;  %v494_v19 = vadd.f32 1.0, %v891_v13  ;;  %904 = vpow2.f32 %v686_v8 }
 0x109   :  { %v802_v20 = vpop.f32.mrb[11].mxu0  ;;  %v826_v21 = vpop.f32.mrb[11].mxu1  ;;  %v502_v23 = vadd.f32 1.0, %v893_v18  ;;  %v1108_v24 = vadd.f32 %v800_v14, %v1073_v35  ;;  %v1111_v25 = vadd.f32 %v824_v15, %v1073_v35 }
 0x10a   :  { %v895_v22 = vpop.eup %894  ;;  %v803_v26 = vadd.f32 %v802_v20, %v801_v16  ;;  %906 = vrcp.f32 %v494_v19  ;;  %v827_v29 = vadd.f32 %v826_v21, %v825_v17 }
 0x10b   :  { %v897_v27 = vpop.eup %896  ;;  %v495_v28 = vadd.f32 1.0, %v895_v22  ;;  %908 = vrcp.f32 %v502_v23  ;;  %v679_v31 = vmul.f32 -1.442695, %v1108_v24  ;;  %v687_v32 = vmul.f32 -1.442695, %v1111_v25 }
 0x10c   :  { %v503_v30 = vadd.f32 1.0, %v897_v27  ;;  %v1116_v33 = vadd.f32 %v803_v26, %v1073_v35  ;;  %v1119_v34 = vadd.f32 %v827_v29, %v1073_v35 }
 0x10d   :  { %910 = vrcp.f32 %v495_v28  ;;  %v804_v36 = vpop.f32.mrb[12].mxu0  ;;  %v828_v37 = vpop.f32.mrb[12].mxu1 }
 0x10e   :  { %912 = vrcp.f32 %v503_v30  ;;  %v680_v38 = vmul.f32 -1.442695, %v1116_v33  ;;  %v688_v39 = vmul.f32 -1.442695, %v1119_v34  ;;  %v805_v40 = vpop.f32.mrb[13].mxu0  ;;  %v829_v41 = vpop.f32.mrb[13].mxu1 }
 0x10f   :  { %914 = vpow2.f32 %v679_v31  ;;  %v899_v42 = vpop.eup %898  ;;  %v806_v45 = vadd.f32 %v805_v40, %v804_v36  ;;  %v830_v46 = vadd.f32 %v829_v41, %v828_v37  ;;  %v807_v47 = vpop.f32.mrb[14].mxu0 }
 0x110   :  { %916 = vpow2.f32 %v687_v32  ;;  %v831_v48 = vpop.f32.mrb[14].mxu1  ;;  %v901_v51 = vpop.eup %900  ;;  %v496_v52 = vadd.f32 1.0, %v899_v42 }
 0x111   :  { %918 = vpow2.f32 %v680_v38  ;;  %v808_v53 = vpop.f32.mrb[15].mxu0  ;;  %v832_v54 = vpop.f32.mrb[15].mxu1  ;;  %v504_v56 = vadd.f32 1.0, %v901_v51  ;;  %v1124_v57 = vadd.f32 %v806_v45, %v1073_v35  ;;  %v1127_v58 = vadd.f32 %v830_v46, %v1073_v35 }
 0x112   :  { %v903_v55 = vpop.eup %902  ;;  %920 = vpow2.f32 %v688_v39  ;;  %v809_v61 = vadd.f32 %v808_v53, %v807_v47  ;;  %v833_v62 = vadd.f32 %v832_v54, %v831_v48 }
 0x113   :  { %v905_v59 = vpop.eup %904  ;;  %922 = vrcp.f32 %v496_v52  ;;  %v497_v60 = vadd.f32 1.0, %v903_v55  ;;  %v681_v2 = vmul.f32 -1.442695, %v1124_v57  ;;  %v689_v3 = vmul.f32 -1.442695, %v1127_v58 }
 0x114   :  { %924 = vrcp.f32 %v504_v56  ;;  %v505_v1 = vadd.f32 1.0, %v905_v59  ;;  %v907_v4 = vpop.eup %906  ;;  %v1132_v7 = vadd.f32 %v809_v61, %v1073_v35  ;;  %v1135_v8 = vadd.f32 %v833_v62, %v1073_v35 }
 0x115   :  { %926 = vrcp.f32 %v497_v60  ;;  %v909_v9 = vpop.eup %908  ;;  %v542_v14 = vmul.f32 %v907_v4, %v1076_v43 }
 0x116   :  { %928 = vrcp.f32 %v505_v1  ;;  %v682_v11 = vmul.f32 -1.442695, %v1132_v7  ;;  %v690_v12 = vmul.f32 -1.442695, %v1135_v8  ;;  %v550_v17 = vmul.f32 %v909_v9, %v1079_v44 }
 0x117   :  { %v911_v10 = vpop.eup %910  ;;  %930 = vpow2.f32 %v681_v2 }
 0x118   :  { %v913_v13 = vpop.eup %912  ;;  %v543_v15 = vmul.f32 %v911_v10, %v1084_v49  ;;  %932 = vpow2.f32 %v689_v3 }
 0x119   :  { %v915_v16 = vpop.eup %914  ;;  %v551_v35 = vmul.f32 %v913_v13, %v1087_v50  ;;  %934 = vpow2.f32 %v682_v11 }
 0x11a   :  { %v917_v18 = vpop.eup %916  ;;  %v726_v19 = vpack.c.bf16 %v543_v15, %v542_v14  ;;  %v498_v20 = vadd.f32 1.0, %v915_v16  ;;  %936 = vpow2.f32 %v690_v12 }
 0x11b   :  { %v919_v21 = vpop.eup %918  ;;  %v746_v22 = vpack.c.bf16 %v551_v35, %v550_v17  ;;  %v506_v23 = vadd.f32 1.0, %v917_v18 }
 0x11c   :  { %v921_v26 = vpop.eup %920  ;;  %727 = vst [vmem:[%s1182_s3] sm:$0xff] %v726_v19   ;;  %938 = vrcp.f32 %v498_v20  ;;  %v499_v43 = vadd.f32 1.0, %v919_v21 }
 0x11d   :  { %v923_v49 = vpop.eup %922  ;;  %766 = vst [vmem:[%s1182_s3 + $0x20] sm:$0xff] %v746_v22   ;;  %940 = vrcp.f32 %v506_v23  ;;  %v507_v44 = vadd.f32 1.0, %v921_v26 }
 0x11e   :  { %v925_v50 = vpop.eup %924  ;;  %942 = vrcp.f32 %v499_v43  ;;  %v544_v29 = vmul.f32 %v923_v49, %v1092_v63 }
 0x11f   :  { %v927_v27 = vpop.eup %926  ;;  %944 = vrcp.f32 %v507_v44  ;;  %v552_v32 = vmul.f32 %v925_v50, %v1095_v0 }
 0x120   :  { %v929_v28 = vpop.eup %928  ;;  %v545_v30 = vmul.f32 %v927_v27, %v1100_v5 }
 0x121   :  { %v931_v31 = vpop.eup %930  ;;  %v553_v36 = vmul.f32 %v929_v28, %v1103_v6 }
 0x122   :  { %v933_v37 = vpop.eup %932  ;;  %v731_v38 = vpack.c.bf16 %v545_v30, %v544_v29  ;;  %v500_v39 = vadd.f32 1.0, %v931_v31 }
 0x123   :  { %v935_v40 = vpop.eup %934  ;;  %v751_v41 = vpack.c.bf16 %v553_v36, %v552_v32  ;;  %v508_v42 = vadd.f32 1.0, %v933_v37 }
 0x124   :  { %v937_v45 = vpop.eup %936  ;;  %763 = vst [vmem:[%s1182_s3 + $0x8] sm:$0xff] %v731_v38   ;;  %946 = vrcp.f32 %v500_v39  ;;  %v501_v63 = vadd.f32 1.0, %v935_v40 }
 0x125   :  { %767 = vst [vmem:[%s1182_s3 + $0x28] sm:$0xff] %v751_v41   ;;  %948 = vrcp.f32 %v508_v42  ;;  %v509_v0 = vadd.f32 1.0, %v937_v45 }
 0x126   :  { %v939_v5 = vpop.eup %938  ;;  %950 = vrcp.f32 %v501_v63 }
 0x127   :  { %v941_v6 = vpop.eup %940  ;;  %952 = vrcp.f32 %v509_v0  ;;  %v546_v48 = vmul.f32 %v939_v5, %v1108_v24 }
 0x128   :  { %v943_v46 = vpop.eup %942  ;;  %v554_v52 = vmul.f32 %v941_v6, %v1111_v25 }
 0x129   :  { %v945_v47 = vpop.eup %944  ;;  %v547_v51 = vmul.f32 %v943_v46, %v1116_v33 }
 0x12a   :  { %v555_v53 = vmul.f32 %v945_v47, %v1119_v34 }
 0x12b   :  { %v736_v54 = vpack.c.bf16 %v547_v51, %v546_v48 }
 0x12c   :  { %v756_v55 = vpack.c.bf16 %v555_v53, %v554_v52 }
 0x12d   :  { %764 = vst [vmem:[%s1182_s3 + $0x10] sm:$0xff] %v736_v54  }
 0x12e   :  { %v947_v56 = vpop.eup %946  ;;  %768 = vst [vmem:[%s1182_s3 + $0x30] sm:$0xff] %v756_v55  }
 0x12f   :  { %v949_v59 = vpop.eup %948  ;;  %v548_v33 = vmul.f32 %v947_v56, %v1124_v57 }
 0x130   :  { %v951_v60 = vpop.eup %950  ;;  %v556_v34 = vmul.f32 %v949_v59, %v1127_v58 }
 0x131   :  { %v953_v24 = vpop.eup %952  ;;  %v549_v25 = vmul.f32 %v951_v60, %v1132_v7 }
 0x132   :  { %v557_v61 = vmul.f32 %v953_v24, %v1135_v8 }
 0x133   :  { %v741_v62 = vpack.c.bf16 %v549_v25, %v548_v33 }
 0x134   :  { %v761_v1 = vpack.c.bf16 %v557_v61, %v556_v34 }
 0x135   :  { %765 = vst [vmem:[%s1182_s3 + $0x18] sm:$0xff] %v741_v62  }
 0x136   :  { %769 = vst [vmem:[%s1182_s3 + $0x38] sm:$0xff] %v761_v1  }

// kernel: lyft_effnet_forward.4
= control target key start
LH: loop header
LB: loop body
LE: loop exit
PB: predicated region body
PF: predicated region fallthrough
CT: control target
= control target key end

     0   :  { %s2797_s13 = smov 0   ;;  %s3293_s0 = inlined_call_operand.vmem [shape: bf16[2,64,128], index: 0, kind: input, shape index: {}]   ;;  %s3294_s1 = inlined_call_operand.vmem [shape: bf16[9,64,64], index: 1, kind: input, shape index: {}]   ;;  %s3295_s2 = inlined_call_operand.vmem [shape: f32[9,128], index: 2, kind: input, shape index: {}]   ;;  %s3296_s3 = inlined_call_operand.vmem [shape: f32[1,128], index: 3, kind: input, shape index: {}]   ;;  %s3297_s4 = inlined_call_operand.vmem [shape: bf16[128,128], index: 4, kind: input, shape index: {}]   ;;  %s3298_s5 = inlined_call_operand.vmem [shape: f32[1,128], index: 5, kind: input, shape index: {}]   ;;  %s3299_s6 = inlined_call_operand.vmem [shape: bf16[128,128], index: 6, kind: input, shape index: {}]   ;;  %s3300_s7 = inlined_call_operand.vmem [shape: f32[1,128], index: 7, kind: input, shape index: {}]   ;;  %s3301_s8 = inlined_call_operand.vmem [shape: bf16[128,128], index: 8, kind: input, shape index: {}]   ;;  %s3302_s9 = inlined_call_operand.vmem [shape: f32[1,128], index: 9, kind: input, shape index: {}]   ;;  %s3303_s10 = inlined_call_operand.vmem [shape: bf16[2,64,128], index: 10, kind: output, shape index: {}]  }
   0x1 LB: > { %s2079_s14 = sadd.s32 4294967295, %s2738_s13   ;;  %p2083_p0 = scmp.ge.s32.totalorder %s2738_s13, 1  ;;  %s2738_s13 = sphi %s2797_s13, %s20_s13  }
   0x2   : > { %p312_p1 = scmp.lt.s32.totalorder %s2738_s13, 3 }
   0x4   : > { %p313_p2 = pnand %p2083_p0, %p312_p1 }
   0x5   : > { %p350_p3 = scmp.lt.s32.totalorder (!%p313_p2), %s2079_s14, 1  ;;  %v2632_v0 = vld [vmem:[%s3294_s1] sm:$0xff] (!%p313_p2)   ;;  %vm423_vm0 = vcmask (!%p313_p2), 523264   ;;  %v2633_v6 = vld [vmem:[%s3294_s1 + $0x8] sm:$0xff] (!%p313_p2)   ;;  %v2634_v8 = vld [vmem:[%s3294_s1 + $0x10] sm:$0xff] (!%p313_p2)   ;;  %v2740_v41 = vmov (!%p313_p2), 0.0   ;;  %v501_v47 = vlaneseq (!%p313_p2) }
   0x6   : > { %316 = sbr.rel (%p313_p2) target bundleno = 1111 (0x457), region = 60  ;;  %2418 = vmatprep.mubr.msk.bf16.mxu0 (!%p313_p2), %vm423_vm0, %v2632_v0  ;;  %v2642_v5 = vld [vmem:[%s3294_s1 + $0x60] sm:$0xff] (!%p313_p2)   ;;  %v2643_v7 = vld [vmem:[%s3294_s1 + $0x68] sm:$0xff] (!%p313_p2)   ;;  %v2646_v9 = vld [vmem:[%s3294_s1 + $0x70] sm:$0xff] (!%p313_p2)   ;;  %vm2741_vm1 = vmmov (!%p313_p2), 0  }
   0x7   : > { %2466 = vmatprep.mubr.msk.bf16.mxu1 (!%p313_p2), %vm423_vm0, %v2642_v5  ;;  %v2635_v10 = vld [vmem:[%s3294_s1 + $0x18] sm:$0xff] (!%p313_p2)   ;;  %v2636_v12 = vld [vmem:[%s3294_s1 + $0x20] sm:$0xff] (!%p313_p2)   ;;  %v2637_v14 = vld [vmem:[%s3294_s1 + $0x28] sm:$0xff] (!%p313_p2)   ;;  %v3066_v55 = vshrl.u32 (!%p313_p2), %v501_v47, 7 }
   0x8   : > { %v2647_v11 = vld [vmem:[%s3294_s1 + $0x78] sm:$0xff] (!%p313_p2)   ;;  %v2650_v13 = vld [vmem:[%s3294_s1 + $0xa0] sm:$0xff] (!%p313_p2)   ;;  %v2638_v15 = vld [vmem:[%s3294_s1 + $0x30] sm:$0xff] (!%p313_p2)  }
   0x9   : > { %v2651_v16 = vld [vmem:[%s3294_s1 + $0xa8] sm:$0xff] (!%p313_p2)   ;;  %v2654_v17 = vld [vmem:[%s3294_s1 + $0xb0] sm:$0xff] (!%p313_p2)   ;;  %v2639_v18 = vld [vmem:[%s3294_s1 + $0x38] sm:$0xff] (!%p313_p2)   ;;  %v503_v59 = vsub.s32 (!%p313_p2), 0, %v3066_v55  ;;  %v621_v61 = vsub.s32 (!%p313_p2), 1, %v3066_v55 }
   0xa   : > { %v2640_v19 = vld [vmem:[%s3294_s1 + $0x40] sm:$0xff] (!%p313_p2)   ;;  %v2655_v20 = vld [vmem:[%s3294_s1 + $0xb8] sm:$0xff] (!%p313_p2)   ;;  %v2641_v22 = vld [vmem:[%s3294_s1 + $0x48] sm:$0xff] (!%p313_p2)  }
   0xb   : > { %v2658_v21 = vld [vmem:[%s3294_s1 + $0xe0] sm:$0xff] (!%p313_p2)   ;;  %v2644_v23 = vld [vmem:[%s3294_s1 + $0x50] sm:$0xff] (!%p313_p2)   ;;  %v2659_v24 = vld [vmem:[%s3294_s1 + $0xe8] sm:$0xff] (!%p313_p2)  }
   0xc   : > { %v2662_v25 = vld [vmem:[%s3294_s1 + $0xf0] sm:$0xff] (!%p313_p2)   ;;  %v2645_v26 = vld [vmem:[%s3294_s1 + $0x58] sm:$0xff] (!%p313_p2)   ;;  %v2648_v27 = vld [vmem:[%s3294_s1 + $0x80] sm:$0xff] (!%p313_p2)  }
   0xd   : > { %s3305_s14 = smov (!%p350_p3, %s2079_s14), 1  ;;  %v2663_v28 = vld [vmem:[%s3294_s1 + $0xf8] sm:$0xff]   ;;  %v2649_v29 = vld [vmem:[%s3294_s1 + $0x88] sm:$0xff]   ;;  %v2652_v30 = vld [vmem:[%s3294_s1 + $0x90] sm:$0xff]  }
   0xe   : > { %s2275_s17 = sshll.u32 %s3305_s14, 5  ;;  %v2653_v31 = vld [vmem:[%s3294_s1 + $0x98] sm:$0xff]   ;;  %v2656_v32 = vld [vmem:[%s3294_s1 + $0xc0] sm:$0xff]   ;;  %v2657_v33 = vld [vmem:[%s3294_s1 + $0xc8] sm:$0xff]  }
   0xf   : > { %s354_s20 = scalar_lea.vmem %s3293_s0, %s2275_s17  ;;  %v2660_v34 = vld [vmem:[%s3294_s1 + $0xd0] sm:$0xff]   ;;  %v2661_v35 = vld [vmem:[%s3294_s1 + $0xd8] sm:$0xff]   ;;  %v2664_v36 = vld [vmem:[%s3294_s1 + $0x100] sm:$0xff]   ;;  %s359_s16 = scalar_lea.vmem %s3303_s10, %s2275_s17 }
  0x10   : > { %v2817_v1 = vld [vmem:[%s354_s20] sm:$0xff]   ;;  %v2819_v2 = vld [vmem:[%s354_s20 + $0x8] sm:$0xff]   ;;  %v2826_v3 = vld [vmem:[%s354_s20 + $0x10] sm:$0xff]  }
  0x11   : > { %2410 = vmatprep.subr.bf16.mxu0 %v2817_v1  ;;  %2458 = vmatprep.subr.bf16.mxu1 %v2817_v1  ;;  %v2830_v4 = vld [vmem:[%s354_s20 + $0x18] sm:$0xff]   ;;  %v2665_v37 = vld [vmem:[%s3294_s1 + $0x108] sm:$0xff]   ;;  %v2666_v38 = vld [vmem:[%s3294_s1 + $0x110] sm:$0xff]  }
  0x12   : > { %2411 = vmatpush3.bf16.msra.mxu0 %v2817_v1  ;;  %2459 = vmatpush3.bf16.msra.mxu1 %v2817_v1  ;;  %v2667_v39 = vld [vmem:[%s3294_s1 + $0x118] sm:$0xff]   ;;  %v2668_v40 = vld [vmem:[%s3297_s4] sm:$0xff]   ;;  %v2669_v42 = vld [vmem:[%s3297_s4 + $0x8] sm:$0xff]  }
  0x13   : > { %2412 = vmatprep.subr.bf16.mxu0 %v2819_v2  ;;  %2460 = vmatprep.subr.bf16.mxu1 %v2819_v2  ;;  %v2670_v43 = vld [vmem:[%s3297_s4 + $0x10] sm:$0xff]   ;;  %v2671_v44 = vld [vmem:[%s3297_s4 + $0x18] sm:$0xff]   ;;  %v2672_v54 = vld [vmem:[%s3297_s4 + $0x20] sm:$0xff]  }
  0x14   : > { %v2673_v56 = vld [vmem:[%s3297_s4 + $0x28] sm:$0xff]   ;;  %v2674_v63 = vld [vmem:[%s3297_s4 + $0x30] sm:$0xff]   ;;  %v3085_v0 = vld [vmem:[%s3295_s2] sm:$0xff] }
  0x15   : > { %v504_v5 = vrot.slane %v3085_v0, %v503_v59 }
  0x16   : > { %2413 = vmatpush3.bf16.msra.mxu0 %v2819_v2  ;;  %2461 = vmatpush3.bf16.msra.mxu1 %v2819_v2 }
  0x17   : > { %2414 = vmatprep.subr.bf16.mxu0 %v2826_v3  ;;  %2462 = vmatprep.subr.bf16.mxu1 %v2826_v3 }
  0x1a   : > { %2415 = vmatpush3.bf16.msra.mxu0 %v2826_v3  ;;  %2463 = vmatpush3.bf16.msra.mxu1 %v2826_v3 }
  0x1b   : > { %2416 = vmatprep.subr.bf16.mxu0 %v2830_v4  ;;  %2464 = vmatprep.subr.bf16.mxu1 %v2830_v4 }
  0x1e   : > { %2417 = vmatpush3.bf16.msra.mxu0 %v2830_v4  ;;  %2465 = vmatpush3.bf16.msra.mxu1 %v2830_v4 }
  0x1f   : > { %2426 = vmatprep.subr.bf16.mxu0 %v2817_v1  ;;  %2490 = vmatprep.subr.bf16.mxu1 %v2817_v1 }
  0x21   : > { %2419 = vmatmul.mubr.msk.bf16.vlgmr.msra.gmra.mrb[0].mxu0 %vm423_vm0, %v2633_v6  ;;  %2467 = vmatmul.mubr.msk.bf16.vlgmr.msra.gmra.mrb[0].mxu1 %vm423_vm0, %v2643_v7  ;;  %v622_v6 = vrot.slane %v3085_v0, %v621_v61  ;;  %v2675_v7 = vld [vmem:[%s3297_s4 + $0x38] sm:$0xff]  }
  0x22   : > { %2427 = vmatpush3.bf16.msra.mxu0 %v2817_v1  ;;  %2422 = vmatprep.mubr.msk.bf16.mxu0 %vm423_vm0, %v2634_v8 }
  0x23   : > { %2428 = vmatprep.subr.bf16.mxu0 %v2819_v2  ;;  %2491 = vmatpush3.bf16.msra.mxu1 %v2817_v1 }
  0x24   : > { %2492 = vmatprep.subr.bf16.mxu1 %v2819_v2  ;;  %2470 = vmatprep.mubr.msk.bf16.mxu1 %vm423_vm0, %v2646_v9 }
  0x26   : > { %2429 = vmatpush3.bf16.msra.mxu0 %v2819_v2 }
  0x27   : > { %2430 = vmatprep.subr.bf16.mxu0 %v2826_v3  ;;  %2493 = vmatpush3.bf16.msra.mxu1 %v2819_v2 }
  0x28   : > { %2494 = vmatprep.subr.bf16.mxu1 %v2826_v3 }
  0x29   : > { %2423 = vmatmul.mubr.msk.bf16.gmra.mrb[4].mxu0 %vm423_vm0, %v2635_v10  ;;  %2471 = vmatmul.mubr.msk.bf16.gmra.mrb[4].mxu1 %vm423_vm0, %v2647_v11 }
  0x2a   : > { %2431 = vmatpush3.bf16.msra.mxu0 %v2826_v3  ;;  %2434 = vmatprep.mubr.msk.bf16.mxu0 %vm423_vm0, %v2636_v12 }
  0x2b   : > { %2432 = vmatprep.subr.bf16.mxu0 %v2830_v4  ;;  %2495 = vmatpush3.bf16.msra.mxu1 %v2826_v3 }
  0x2c   : > { %2496 = vmatprep.subr.bf16.mxu1 %v2830_v4  ;;  %2498 = vmatprep.mubr.msk.bf16.mxu1 %vm423_vm0, %v2650_v13 }
  0x2e   : > { %2433 = vmatpush3.bf16.msra.mxu0 %v2830_v4 }
  0x2f   : > { %2442 = vmatprep.subr.bf16.mxu0 %v2817_v1  ;;  %2497 = vmatpush3.bf16.msra.mxu1 %v2830_v4 }
  0x30   : > { %2522 = vmatprep.subr.bf16.mxu1 %v2817_v1 }
  0x31   : > { %2435 = vmatmul.mubr.msk.bf16.vlgmr.msra.gmra.mrb[8].mxu0 %vm423_vm0, %v2637_v14 }
  0x32   : > { %2443 = vmatpush3.bf16.msra.mxu0 %v2817_v1  ;;  %2438 = vmatprep.mubr.msk.bf16.mxu0 %vm423_vm0, %v2638_v15 }
  0x33   : > { %2444 = vmatprep.subr.bf16.mxu0 %v2819_v2  ;;  %2499 = vmatmul.mubr.msk.bf16.vlgmr.msra.gmra.mrb[8].mxu1 %vm423_vm0, %v2651_v16 }
  0x34   : > { %2523 = vmatpush3.bf16.msra.mxu1 %v2817_v1  ;;  %2502 = vmatprep.mubr.msk.bf16.mxu1 %vm423_vm0, %v2654_v17 }
  0x35   : > { %2524 = vmatprep.subr.bf16.mxu1 %v2819_v2 }
  0x36   : > { %2445 = vmatpush3.bf16.msra.mxu0 %v2819_v2 }
  0x37   : > { %2446 = vmatprep.subr.bf16.mxu0 %v2826_v3 }
  0x38   : > { %2525 = vmatpush3.bf16.msra.mxu1 %v2819_v2 }
  0x39   : > { %2439 = vmatmul.mubr.msk.bf16.gmra.mrb[12].mxu0 %vm423_vm0, %v2639_v18  ;;  %2526 = vmatprep.subr.bf16.mxu1 %v2826_v3 }
  0x3a   : > { %2447 = vmatpush3.bf16.msra.mxu0 %v2826_v3  ;;  %2450 = vmatprep.mubr.msk.bf16.mxu0 %vm423_vm0, %v2640_v19 }
  0x3b   : > { %2448 = vmatprep.subr.bf16.mxu0 %v2830_v4  ;;  %2503 = vmatmul.mubr.msk.bf16.gmra.mrb[12].mxu1 %vm423_vm0, %v2655_v20 }
  0x3c   : > { %2527 = vmatpush3.bf16.msra.mxu1 %v2826_v3  ;;  %2530 = vmatprep.mubr.msk.bf16.mxu1 %vm423_vm0, %v2658_v21 }
  0x3d   : > { %2528 = vmatprep.subr.bf16.mxu1 %v2830_v4 }
  0x3e   : > { %2449 = vmatpush3.bf16.msra.mxu0 %v2830_v4 }
  0x3f   : > { %2474 = vmatprep.subr.bf16.mxu0 %v2817_v1 }
  0x40   : > { %2529 = vmatpush3.bf16.msra.mxu1 %v2830_v4 }
  0x41   : > { %2451 = vmatmul.mubr.msk.bf16.vlgmr.msra.gmra.mrb[16].mxu0 %vm423_vm0, %v2641_v22  ;;  %2554 = vmatprep.subr.bf16.mxu1 %v2740_v41 }
  0x42   : > { %2475 = vmatpush3.bf16.msra.mxu0 %v2817_v1  ;;  %2454 = vmatprep.mubr.msk.bf16.mxu0 %vm423_vm0, %v2644_v23 }
  0x43   : > { %2476 = vmatprep.subr.bf16.mxu0 %v2819_v2  ;;  %2531 = vmatmul.mubr.msk.bf16.vlgmr.msra.gmra.mrb[16].mxu1 %vm423_vm0, %v2659_v24 }
  0x44   : > { %2534 = vmatprep.mubr.msk.bf16.mxu1 %vm423_vm0, %v2662_v25  ;;  %2555 = vmatpush3.bf16.msra.mxu1 %v2668_v40 }
  0x45   : > { %2556 = vmatprep.subr.bf16.mxu1 %v2740_v41 }
  0x46   : > { %2477 = vmatpush3.bf16.msra.mxu0 %v2819_v2 }
  0x47   : > { %2478 = vmatprep.subr.bf16.mxu0 %v2826_v3 }
  0x48   : > { %2557 = vmatpush3.bf16.msra.mxu1 %v2669_v42 }
  0x49   : > { %2455 = vmatmul.mubr.msk.bf16.gmra.mrb[20].mxu0 %vm423_vm0, %v2645_v26  ;;  %2558 = vmatprep.subr.bf16.mxu1 %v2740_v41 }
  0x4a   : > { %2479 = vmatpush3.bf16.msra.mxu0 %v2826_v3  ;;  %2482 = vmatprep.mubr.msk.bf16.mxu0 %vm423_vm0, %v2648_v27 }
  0x4b   : > { %2480 = vmatprep.subr.bf16.mxu0 %v2830_v4  ;;  %2535 = vmatmul.mubr.msk.bf16.gmra.mrb[20].mxu1 %vm423_vm0, %v2663_v28 }
  0x4c   : > { %2559 = vmatpush3.bf16.msra.mxu1 %v2670_v43  ;;  %2570 = vmatprep.mubr.msk.bf16.mxu1 %vm2741_vm1, %v2740_v41 }
  0x4d   : > { %2560 = vmatprep.subr.bf16.mxu1 %v2740_v41 }
  0x4e   : > { %2481 = vmatpush3.bf16.msra.mxu0 %v2830_v4 }
  0x4f   : > { %2506 = vmatprep.subr.bf16.mxu0 %v2817_v1 }
  0x50   : > { %2561 = vmatpush3.bf16.msra.mxu1 %v2671_v44 }
  0x51   : > { %2483 = vmatmul.mubr.msk.bf16.vlgmr.msra.gmra.mrb[24].mxu0 %vm423_vm0, %v2649_v29  ;;  %2562 = vmatprep.subr.bf16.mxu1 %v2740_v41 }
  0x52   : > { %2507 = vmatpush3.bf16.msra.mxu0 %v2817_v1  ;;  %2486 = vmatprep.mubr.msk.bf16.mxu0 %vm423_vm0, %v2652_v30 }
  0x53   : > { %2508 = vmatprep.subr.bf16.mxu0 %v2819_v2 }
  0x54   : > { %2563 = vmatpush3.bf16.msra.mxu1 %v2672_v54 }
  0x55   : > { %2564 = vmatprep.subr.bf16.mxu1 %v2740_v41 }
  0x56   : > { %2509 = vmatpush3.bf16.msra.mxu0 %v2819_v2 }
  0x57   : > { %2510 = vmatprep.subr.bf16.mxu0 %v2826_v3 }
  0x58   : > { %2565 = vmatpush3.bf16.msra.mxu1 %v2673_v56 }
  0x59   : > { %2487 = vmatmul.mubr.msk.bf16.gmra.mrb[28].mxu0 %vm423_vm0, %v2653_v31  ;;  %2566 = vmatprep.subr.bf16.mxu1 %v2740_v41 }
  0x5a   : > { %2511 = vmatpush3.bf16.msra.mxu0 %v2826_v3  ;;  %2514 = vmatprep.mubr.msk.bf16.mxu0 %vm423_vm0, %v2656_v32  ;;  %v747_v32 = vsub.s32 2, %v3066_v55 }
  0x5b   : > { %2512 = vmatprep.subr.bf16.mxu0 %v2830_v4 }
  0x5c   : > { %2567 = vmatpush3.bf16.msra.mxu1 %v2674_v63 }
  0x5d   : > { %2568 = vmatprep.subr.bf16.mxu1 %v2740_v41 }
  0x5e   : > { %2513 = vmatpush3.bf16.msra.mxu0 %v2830_v4 }
  0x5f   : > { %2538 = vmatprep.subr.bf16.mxu0 %v2817_v1 }
  0x60   : > { %2569 = vmatpush3.bf16.msra.mxu1 %v2675_v7 }
  0x61   : > { %2515 = vmatmul.mubr.msk.bf16.vlgmr.msra.gmra.mrb[32].mxu0 %vm423_vm0, %v2657_v33  ;;  %v873_v33 = vsub.s32 3, %v3066_v55 }
  0x62   : > { %2539 = vmatpush3.bf16.msra.mxu0 %v2817_v1  ;;  %2518 = vmatprep.mubr.msk.bf16.mxu0 %vm423_vm0, %v2660_v34 }
  0x63   : > { %2540 = vmatprep.subr.bf16.mxu0 %v2819_v2  ;;  %v874_v54 = vrot.slane %v3085_v0, %v873_v33 }
  0x66   : > { %2541 = vmatpush3.bf16.msra.mxu0 %v2819_v2 }
  0x67   : > { %2542 = vmatprep.subr.bf16.mxu0 %v2826_v3 }
  0x69   : > { %2519 = vmatmul.mubr.msk.bf16.gmra.mrb[36].mxu0 %vm423_vm0, %v2661_v35 }
  0x6a   : > { %2543 = vmatpush3.bf16.msra.mxu0 %v2826_v3  ;;  %2546 = vmatprep.mubr.msk.bf16.mxu0 %vm423_vm0, %v2664_v36 }
  0x6b   : > { %2544 = vmatprep.subr.bf16.mxu0 %v2830_v4 }
  0x6e   : > { %2545 = vmatpush3.bf16.msra.mxu0 %v2830_v4 }
  0x6f   : > { %2574 = vmatprep.subr.bf16.mxu0 %v2740_v41 }
  0x71   : > { %2547 = vmatmul.mubr.msk.bf16.vlgmr.msra.gmra.mrb[40].mxu0 %vm423_vm0, %v2665_v37 }
  0x72   : > { %2550 = vmatprep.mubr.msk.bf16.mxu0 %vm423_vm0, %v2666_v38 }
  0x79   : > { %2551 = vmatmul.mubr.msk.bf16.gmra.mrb[44].mxu0 %vm423_vm0, %v2667_v39 }
  0x7a   : > { %2590 = vmatprep.mubr.msk.bf16.mxu0 %vm2741_vm1, %v2740_v41 }
  0xf4   : > { %v2420_v45 = vpop.f32.mrb[0].mxu0  ;;  %v3054_v46 = vpop.f32.mrb[0].mxu1 }
  0xf5   : > { %v470_v48 = vpop.f32.mrb[1].mxu0  ;;  %v3056_v49 = vpop.f32.mrb[1].mxu1  ;;  %v507_v9 = vmul.f32 %v2420_v45, %v504_v5 }
  0xf6   : > { %v2421_v50 = vpop.f32.mrb[2].mxu0  ;;  %v3058_v51 = vpop.f32.mrb[2].mxu1  ;;  %v505_v12 = vmul.f32 %v504_v5, %v470_v48 }
  0xf7   : > { %v473_v52 = vpop.f32.mrb[3].mxu0  ;;  %v3061_v53 = vpop.f32.mrb[3].mxu1  ;;  %v508_v16 = vmul.f32 %v2421_v50, %v504_v5 }
  0xf8   : > { %v506_v21 = vmul.f32 %v504_v5, %v473_v52  ;;  %v748_v52 = vrot.slane %v3085_v0, %v747_v32  ;;  %v1125_v32 = vsub.s32 5, %v3066_v55 }
  0xfc   : > { %v2424_v57 = vpop.f32.mrb[4].mxu0  ;;  %v3072_v58 = vpop.f32.mrb[4].mxu1 }
  0xfd   : > { %v486_v60 = vpop.f32.mrb[5].mxu0  ;;  %v3076_v62 = vpop.f32.mrb[5].mxu1  ;;  %v511_v29 = vmul.f32 %v2424_v57, %v504_v5 }
  0xfe   : > { %v2425_v1 = vpop.f32.mrb[6].mxu0  ;;  %v3087_v2 = vpop.f32.mrb[6].mxu1  ;;  %v509_v34 = vmul.f32 %v504_v5, %v486_v60 }
  0xff   : > { %v489_v3 = vpop.f32.mrb[7].mxu0  ;;  %v3091_v4 = vpop.f32.mrb[7].mxu1  ;;  %v512_v38 = vmul.f32 %v2425_v1, %v504_v5  ;;  %v877_v1 = vmul.f32 %v3054_v46, %v874_v54 }
 0x100   : > { %v510_v44 = vmul.f32 %v504_v5, %v489_v3  ;;  %v875_v3 = vmul.f32 %v874_v54, %v3056_v49 }
 0x104   : > { %v2436_v8 = vpop.f32.mrb[8].mxu0 }
 0x105   : > { %v625_v10 = vmul.f32 %v2436_v8, %v622_v6  ;;  %v588_v11 = vpop.f32.mrb[9].mxu0 }
 0x106   : > { %v623_v13 = vmul.f32 %v622_v6, %v588_v11  ;;  %v2437_v14 = vpop.f32.mrb[10].mxu0  ;;  %v3101_v15 = vpop.f32.mrb[8].mxu1  ;;  %v878_v11 = vmul.f32 %v3058_v51, %v874_v54  ;;  %v881_v51 = vmul.f32 %v3072_v58, %v874_v54  ;;  %v880_v58 = vmul.f32 %v874_v54, %v3091_v4 }
 0x107   : > { %v633_v17 = vadd.f32 %v625_v10, %v507_v9  ;;  %v626_v18 = vmul.f32 %v2437_v14, %v622_v6  ;;  %v591_v19 = vpop.f32.mrb[11].mxu0  ;;  %v3103_v20 = vpop.f32.mrb[9].mxu1 }
 0x108   : > { %v631_v22 = vadd.f32 %v623_v13, %v505_v12  ;;  %v624_v23 = vmul.f32 %v622_v6, %v591_v19  ;;  %v3105_v24 = vpop.f32.mrb[10].mxu1 }
 0x109   : > { %v634_v25 = vadd.f32 %v626_v18, %v508_v16  ;;  %v3107_v26 = vpop.f32.mrb[11].mxu1  ;;  %v876_v16 = vmul.f32 %v874_v54, %v3061_v53 }
 0x10a   : > { %v632_v27 = vadd.f32 %v624_v23, %v506_v21 }
 0x10c   : > { %v2440_v28 = vpop.f32.mrb[12].mxu0 }
 0x10d   : > { %v629_v30 = vmul.f32 %v2440_v28, %v622_v6  ;;  %v604_v31 = vpop.f32.mrb[13].mxu0 }
 0x10e   : > { %v627_v35 = vmul.f32 %v622_v6, %v604_v31  ;;  %v2441_v36 = vpop.f32.mrb[14].mxu0  ;;  %v3111_v37 = vpop.f32.mrb[12].mxu1 }
 0x10f   : > { %v637_v39 = vadd.f32 %v629_v30, %v511_v29  ;;  %v630_v40 = vmul.f32 %v2441_v36, %v622_v6  ;;  %v607_v42 = vpop.f32.mrb[15].mxu0  ;;  %v3113_v43 = vpop.f32.mrb[13].mxu1 }
 0x110   : > { %v635_v45 = vadd.f32 %v627_v35, %v509_v34  ;;  %v628_v47 = vmul.f32 %v622_v6, %v607_v42  ;;  %v3115_v48 = vpop.f32.mrb[14].mxu1 }
 0x111   : > { %v638_v50 = vadd.f32 %v630_v40, %v512_v38  ;;  %v3119_v56 = vpop.f32.mrb[15].mxu1  ;;  %v882_v38 = vmul.f32 %v3087_v2, %v874_v54 }
 0x112   : > { %v636_v57 = vadd.f32 %v628_v47, %v510_v44 }
 0x114   : > { %v2452_v60 = vpop.f32.mrb[16].mxu0 }
 0x115   : > { %v751_v61 = vmul.f32 %v2452_v60, %v748_v52  ;;  %v714_v63 = vpop.f32.mrb[17].mxu0 }
 0x116   : > { %v749_v7 = vmul.f32 %v748_v52, %v714_v63  ;;  %v2453_v8 = vpop.f32.mrb[18].mxu0  ;;  %v3123_v5 = vpop.f32.mrb[16].mxu1 }
 0x117   : > { %v759_v6 = vadd.f32 %v751_v61, %v633_v17  ;;  %v752_v9 = vmul.f32 %v2453_v8, %v748_v52  ;;  %v717_v10 = vpop.f32.mrb[19].mxu0  ;;  %v3126_v12 = vpop.f32.mrb[17].mxu1 }
 0x118   : > { %v757_v13 = vadd.f32 %v749_v7, %v631_v22  ;;  %v750_v14 = vmul.f32 %v748_v52, %v717_v10  ;;  %v3129_v18 = vpop.f32.mrb[18].mxu1  ;;  %v999_v22 = vsub.s32 4, %v3066_v55 }
 0x119   : > { %v760_v46 = vadd.f32 %v752_v9, %v634_v25  ;;  %v885_v19 = vadd.f32 %v877_v1, %v759_v6  ;;  %v3131_v21 = vpop.f32.mrb[19].mxu1  ;;  %v879_v25 = vmul.f32 %v874_v54, %v3076_v62  ;;  %v1126_v62 = vrot.slane %v3085_v0, %v1125_v32 }
 0x11a   : > { %v758_v49 = vadd.f32 %v750_v14, %v632_v27  ;;  %v883_v23 = vadd.f32 %v875_v3, %v757_v13  ;;  %v1000_v63 = vrot.slane %v3085_v0, %v999_v22 }
 0x11b   : > { %v886_v28 = vadd.f32 %v878_v11, %v760_v46  ;;  %v1130_v13 = vmul.f32 %v3105_v24, %v1126_v62 }
 0x11c   : > { %v884_v17 = vadd.f32 %v876_v16, %v758_v49  ;;  %v2456_v29 = vpop.f32.mrb[20].mxu0 }
 0x11d   : > { %v755_v30 = vmul.f32 %v2456_v29, %v748_v52  ;;  %v730_v31 = vpop.f32.mrb[21].mxu0 }
 0x11e   : > { %v753_v53 = vmul.f32 %v748_v52, %v730_v31  ;;  %v2457_v33 = vpop.f32.mrb[22].mxu0  ;;  %v3137_v34 = vpop.f32.mrb[20].mxu1 }
 0x11f   : > { %v763_v35 = vadd.f32 %v755_v30, %v637_v39  ;;  %v756_v27 = vmul.f32 %v2457_v33, %v748_v52  ;;  %v733_v36 = vpop.f32.mrb[23].mxu0  ;;  %v3140_v40 = vpop.f32.mrb[21].mxu1  ;;  %v1131_v33 = vmul.f32 %v1126_v62, %v3113_v43 }
 0x120   : > { %v761_v42 = vadd.f32 %v753_v53, %v635_v45  ;;  %v754_v44 = vmul.f32 %v748_v52, %v733_v36  ;;  %v3143_v47 = vpop.f32.mrb[22].mxu1  ;;  %v1129_v52 = vmul.f32 %v3101_v15, %v1126_v62  ;;  %v1377_v53 = vsub.s32 7, %v3066_v55 }
 0x121   : > { %v764_v60 = vadd.f32 %v756_v27, %v638_v50  ;;  %v889_v61 = vadd.f32 %v881_v51, %v763_v35  ;;  %v3147_v1 = vpop.f32.mrb[23].mxu1  ;;  %v1127_v50 = vmul.f32 %v1126_v62, %v3103_v20  ;;  %v1133_v20 = vmul.f32 %v3111_v37, %v1126_v62 }
 0x122   : > { %v762_v39 = vadd.f32 %v754_v44, %v636_v57  ;;  %v887_v7 = vadd.f32 %v879_v25, %v761_v42  ;;  %v1128_v57 = vmul.f32 %v1126_v62, %v3107_v26  ;;  %v1132_v36 = vmul.f32 %v1126_v62, %v3119_v56 }
 0x123   : > { %v890_v8 = vadd.f32 %v882_v38, %v764_v60  ;;  %v1378_v44 = vrot.slane %v3085_v0, %v1377_v53 }
 0x124   : > { %v888_v2 = vadd.f32 %v880_v58, %v762_v39  ;;  %v2484_v3 = vpop.f32.mrb[24].mxu0 }
 0x125   : > { %v1003_v6 = vmul.f32 %v2484_v3, %v1000_v63  ;;  %v966_v45 = vpop.f32.mrb[25].mxu0 }
 0x126   : > { %v1001_v4 = vmul.f32 %v1000_v63, %v966_v45  ;;  %v2485_v54 = vpop.f32.mrb[26].mxu0  ;;  %v1381_v45 = vmul.f32 %v3123_v5, %v1378_v44 }
 0x127   : > { %v1011_v9 = vadd.f32 %v1003_v6, %v885_v19  ;;  %v1004_v10 = vmul.f32 %v2485_v54, %v1000_v63  ;;  %v969_v11 = vpop.f32.mrb[27].mxu0  ;;  %v1251_v19 = vsub.s32 6, %v3066_v55 }
 0x128   : > { %v1009_v14 = vadd.f32 %v1001_v4, %v883_v23  ;;  %v1002_v16 = vmul.f32 %v1000_v63, %v969_v11 }
 0x129   : > { %v1012_v46 = vadd.f32 %v1004_v10, %v886_v28  ;;  %v1137_v49 = vadd.f32 %v1129_v52, %v1011_v9  ;;  %v1252_v37 = vrot.slane %v3085_v0, %v1251_v19  ;;  %v1382_v52 = vmul.f32 %v3129_v18, %v1378_v44 }
 0x12a   : > { %v1010_v29 = vadd.f32 %v1002_v16, %v884_v17  ;;  %v1135_v30 = vadd.f32 %v1127_v50, %v1009_v14  ;;  %v1134_v17 = vmul.f32 %v3115_v48, %v1126_v62 }
 0x12b   : > { %v1138_v31 = vadd.f32 %v1130_v13, %v1012_v46 }
 0x12c   : > { %v1136_v51 = vadd.f32 %v1128_v57, %v1010_v29  ;;  %v2488_v15 = vpop.f32.mrb[28].mxu0 }
 0x12d   : > { %v1007_v22 = vmul.f32 %v2488_v15, %v1000_v63  ;;  %v982_v32 = vpop.f32.mrb[29].mxu0 }
 0x12e   : > { %v1005_v24 = vmul.f32 %v1000_v63, %v982_v32  ;;  %v2489_v23 = vpop.f32.mrb[30].mxu0 }
 0x12f   : > { %v1015_v26 = vadd.f32 %v1007_v22, %v889_v61  ;;  %v1008_v28 = vmul.f32 %v2489_v23, %v1000_v63  ;;  %v985_v25 = vpop.f32.mrb[31].mxu0 }
 0x130   : > { %v1013_v35 = vadd.f32 %v1005_v24, %v887_v7  ;;  %v1006_v27 = vmul.f32 %v1000_v63, %v985_v25  ;;  %v1379_v63 = vmul.f32 %v1378_v44, %v3126_v12  ;;  %v1385_v12 = vmul.f32 %v3137_v34, %v1378_v44  ;;  %v2228_v34 = vld [vmem:[%s3295_s2 + $0x8] ss:$0 sm:$0xff] }
 0x131   : > { %v1016_v38 = vadd.f32 %v1008_v28, %v890_v8  ;;  %v1141_v42 = vadd.f32 %v1133_v20, %v1015_v26 }
 0x132   : > { %v1014_v58 = vadd.f32 %v1006_v27, %v888_v2  ;;  %v1139_v60 = vadd.f32 %v1131_v33, %v1013_v35  ;;  %v1380_v2 = vmul.f32 %v1378_v44, %v3131_v21  ;;  %v1386_v21 = vmul.f32 %v3143_v47, %v1378_v44  ;;  %v2229_v47 = vld [vmem:[%s3296_s3] ss:$0 sm:$0xff] }
 0x133   : > { %v1142_v39 = vadd.f32 %v1134_v17, %v1016_v38 }
 0x134   : > { %v1140_v3 = vadd.f32 %v1132_v36, %v1014_v58  ;;  %v2516_v43 = vpop.f32.mrb[32].mxu0 }
 0x135   : > { %v1255_v61 = vmul.f32 %v2516_v43, %v1252_v37  ;;  %v1218_v6 = vpop.f32.mrb[33].mxu0 }
 0x136   : > { %v1253_v48 = vmul.f32 %v1252_v37, %v1218_v6  ;;  %v2517_v7 = vpop.f32.mrb[34].mxu0 }
 0x137   : > { %v1263_v56 = vadd.f32 %v1255_v61, %v1137_v49  ;;  %v1256_v62 = vmul.f32 %v2517_v7, %v1252_v37  ;;  %v1221_v8 = vpop.f32.mrb[35].mxu0  ;;  %v1383_v49 = vmul.f32 %v1378_v44, %v3140_v40 }
 0x138   : > { %v1261_v4 = vadd.f32 %v1253_v48, %v1135_v30  ;;  %v1254_v0 = vmul.f32 %v1252_v37, %v1221_v8 }
 0x139   : > { %v1264_v54 = vadd.f32 %v1256_v62, %v1138_v31  ;;  %v1389_v50 = vadd.f32 %v1381_v45, %v1263_v56 }
 0x13a   : > { %v1262_v9 = vadd.f32 %v1254_v0, %v1136_v51  ;;  %v1387_v10 = vadd.f32 %v1379_v63, %v1261_v4  ;;  %v1384_v51 = vmul.f32 %v1378_v44, %v3147_v1 }
 0x13b   : > { %v1390_v11 = vadd.f32 %v1382_v52, %v1264_v54 }
 0x13c   : > { %v1388_v13 = vadd.f32 %v1380_v2, %v1262_v9  ;;  %v2520_v5 = vpop.f32.mrb[36].mxu0 }
 0x13d   : > { %v1259_v14 = vmul.f32 %v2520_v5, %v1252_v37  ;;  %v1234_v16 = vpop.f32.mrb[37].mxu0 }
 0x13e   : > { %v1257_v57 = vmul.f32 %v1252_v37, %v1234_v16  ;;  %v2521_v46 = vpop.f32.mrb[38].mxu0 }
 0x13f   : > { %v1267_v18 = vadd.f32 %v1259_v14, %v1141_v42  ;;  %v1260_v29 = vmul.f32 %v2521_v46, %v1252_v37  ;;  %v1237_v30 = vpop.f32.mrb[39].mxu0 }
 0x140   : > { %v1265_v31 = vadd.f32 %v1257_v57, %v1139_v60  ;;  %v1258_v15 = vmul.f32 %v1252_v37, %v1237_v30 }
 0x141   : > { %v1268_v22 = vadd.f32 %v1260_v29, %v1142_v39  ;;  %v1393_v32 = vadd.f32 %v1385_v12, %v1267_v18 }
 0x142   : > { %v1266_v20 = vadd.f32 %v1258_v15, %v1140_v3  ;;  %v1391_v19 = vadd.f32 %v1383_v49, %v1265_v31 }
 0x143   : > { %v1394_v53 = vadd.f32 %v1386_v21, %v1268_v22 }
 0x144   : > { %v1392_v24 = vadd.f32 %v1384_v51, %v1266_v20  ;;  %v2548_v40 = vpop.f32.mrb[40].mxu0 }
 0x145   : > { %v1507_v23 = vmul.f32 %v2548_v40, %v2228_v34  ;;  %v1470_v33 = vpop.f32.mrb[41].mxu0 }
 0x146   : > { %v1505_v26 = vmul.f32 %v2228_v34, %v1470_v33  ;;  %v2549_v28 = vpop.f32.mrb[42].mxu0 }
 0x147   : > { %v1515_v1 = vadd.f32 %v1507_v23, %v1389_v50  ;;  %v1508_v25 = vmul.f32 %v2549_v28, %v2228_v34  ;;  %v1473_v17 = vpop.f32.mrb[43].mxu0 }
 0x148   : > { %v1513_v35 = vadd.f32 %v1505_v26, %v1387_v10  ;;  %v1506_v27 = vmul.f32 %v2228_v34, %v1473_v17 }
 0x149   : > { %v3175_v36 = vadd.f32 %v2229_v47, %v1515_v1  ;;  %v1516_v38 = vadd.f32 %v1508_v25, %v1390_v11 }
 0x14a   : > { %v3177_v42 = vadd.f32 %v2229_v47, %v1513_v35  ;;  %v1514_v37 = vadd.f32 %v1506_v27, %v1388_v13 }
 0x14b   : > { %v2232_v44 = vmul.f32 -1.442695, %v3175_v36  ;;  %v3180_v58 = vadd.f32 %v2229_v47, %v1516_v38 }
 0x14c   : > { %v2230_v60 = vmul.f32 -1.442695, %v3177_v42  ;;  %v1529_v39 = vadd.f32 %v2229_v47, %v1514_v37  ;;  %v2552_v3 = vpop.f32.mrb[44].mxu0 }
 0x14d   : > { %2692 = vpow2.f32 %v2232_v44  ;;  %v2233_v43 = vmul.f32 -1.442695, %v3180_v58  ;;  %v1511_v61 = vmul.f32 %v2552_v3, %v2228_v34  ;;  %v1486_v6 = vpop.f32.mrb[45].mxu0 }
 0x14e   : > { %2694 = vpow2.f32 %v2230_v60  ;;  %v2231_v45 = vmul.f32 -1.442695, %v1529_v39  ;;  %v1509_v48 = vmul.f32 %v2228_v34, %v1486_v6  ;;  %v2553_v7 = vpop.f32.mrb[46].mxu0 }
 0x14f   : > { %2696 = vpow2.f32 %v2233_v43  ;;  %v1519_v63 = vadd.f32 %v1511_v61, %v1393_v32  ;;  %v1512_v56 = vmul.f32 %v2553_v7, %v2228_v34  ;;  %v1489_v62 = vpop.f32.mrb[47].mxu0 }
 0x150   : > { %2698 = vpow2.f32 %v2231_v45  ;;  %v1517_v8 = vadd.f32 %v1509_v48, %v1391_v19  ;;  %v1510_v52 = vmul.f32 %v2228_v34, %v1489_v62  ;;  %v2677_v62 = vld [vmem:[%s3299_s6 + $0x8] sm:$0xff]  }
 0x151   : > { %v1534_v4 = vadd.f32 %v2229_v47, %v1519_v63  ;;  %v1520_v0 = vadd.f32 %v1512_v56, %v1394_v53  ;;  %v2676_v56 = vld [vmem:[%s3299_s6] sm:$0xff]  }
 0x152   : > { %v1532_v2 = vadd.f32 %v2229_v47, %v1517_v8  ;;  %v1518_v54 = vadd.f32 %v1510_v52, %v1392_v24  ;;  %2575 = vmatpush3.bf16.msra.mxu0 %v2676_v56  ;;  %v2678_v8 = vld [vmem:[%s3299_s6 + $0x10] sm:$0xff]   ;;  %v2679_v52 = vld [vmem:[%s3299_s6 + $0x18] sm:$0xff]  }
 0x153   : > { %v2236_v50 = vmul.f32 -1.442695, %v1534_v4  ;;  %v1535_v9 = vadd.f32 %v2229_v47, %v1520_v0  ;;  %2576 = vmatprep.subr.bf16.mxu0 %v2740_v41  ;;  %v2681_v0 = vld [vmem:[%s3299_s6 + $0x28] sm:$0xff]  }
 0x154   : > { %v2234_v10 = vmul.f32 -1.442695, %v1532_v2  ;;  %v1533_v11 = vadd.f32 %v2229_v47, %v1518_v54  ;;  %v2683_v54 = vld [vmem:[%s3299_s6 + $0x38] sm:$0xff]  }
 0x155   : > { %2700 = vpow2.f32 %v2236_v50  ;;  %v2237_v13 = vmul.f32 -1.442695, %v1535_v9  ;;  %v1624_v50 = vld [vmem:[%s3298_s5] sm:$0x1] }
 0x156   : > { %2702 = vpow2.f32 %v2234_v10  ;;  %v2235_v5 = vmul.f32 -1.442695, %v1533_v11  ;;  %2577 = vmatpush3.bf16.msra.mxu0 %v2677_v62 }
 0x157   : > { %v2693_v14 = vpop.eup %2692  ;;  %2704 = vpow2.f32 %v2237_v13  ;;  %2578 = vmatprep.subr.bf16.mxu0 %v2740_v41 }
 0x158   : > { %v2695_v16 = vpop.eup %2694  ;;  %v1562_v12 = vadd.f32 1.0, %v2693_v14  ;;  %2706 = vpow2.f32 %v2235_v5 }
 0x159   : > { %v2697_v57 = vpop.eup %2696  ;;  %v1560_v46 = vadd.f32 1.0, %v2695_v16 }
 0x15a   : > { %v2699_v49 = vpop.eup %2698  ;;  %v1563_v18 = vadd.f32 1.0, %v2697_v57  ;;  %2579 = vmatpush3.bf16.msra.mxu0 %v2678_v8 }
 0x15b   : > { %2708 = vrcp.f32 %v1560_v46  ;;  %v1561_v29 = vadd.f32 1.0, %v2699_v49  ;;  %2580 = vmatprep.subr.bf16.mxu0 %v2740_v41  ;;  %v2684_v49 = vld [vmem:[%s3301_s8] sm:$0xff]  }
 0x15c   : > { %2710 = vrcp.f32 %v1562_v12  ;;  %2594 = vmatprep.subr.bf16.mxu1 %v2684_v49 }
 0x15d   : > { %2712 = vrcp.f32 %v1561_v29  ;;  %v2686_v29 = vld [vmem:[%s3301_s8 + $0x10] sm:$0xff]  }
 0x15e   : > { %2714 = vrcp.f32 %v1563_v18  ;;  %2581 = vmatpush3.bf16.msra.mxu0 %v2679_v52  ;;  %v2685_v18 = vld [vmem:[%s3301_s8 + $0x8] sm:$0xff]  }
 0x15f   : > { %v2701_v30 = vpop.eup %2700  ;;  %2582 = vmatprep.subr.bf16.mxu0 %v2740_v41 }
 0x160   : > { %v2703_v21 = vpop.eup %2702  ;;  %v1566_v31 = vadd.f32 1.0, %v2701_v30  ;;  %v2687_v30 = vld [vmem:[%s3301_s8 + $0x18] sm:$0xff]  }
 0x161   : > { %v2705_v15 = vpop.eup %2704  ;;  %v1564_v51 = vadd.f32 1.0, %v2703_v21  ;;  %v2688_v21 = vld [vmem:[%s3301_s8 + $0x20] sm:$0xff]  }
 0x162   : > { %v2707_v22 = vpop.eup %2706  ;;  %v1567_v32 = vadd.f32 1.0, %v2705_v15  ;;  %v2690_v15 = vld [vmem:[%s3301_s8 + $0x30] sm:$0xff]  }
 0x163   : > { %2716 = vrcp.f32 %v1564_v51  ;;  %v1565_v20 = vadd.f32 1.0, %v2707_v22  ;;  %v2691_v51 = vld [vmem:[%s3301_s8 + $0x38] sm:$0xff]   ;;  %v1737_v22 = vld [vmem:[%s3300_s7] sm:$0x1] }
 0x164   : > { %2718 = vrcp.f32 %v1566_v31  ;;  %v2689_v31 = vld [vmem:[%s3301_s8 + $0x28] sm:$0xff]  }
 0x165   : > { %v2709_v19 = vpop.eup %2708  ;;  %2720 = vrcp.f32 %v1565_v20 }
 0x166   : > { %v2711_v34 = vpop.eup %2710  ;;  %2722 = vrcp.f32 %v1567_v32  ;;  %v3185_v24 = vmul.f32 %v2709_v19, %v3177_v42 }
 0x167   : > { %v2713_v53 = vpop.eup %2712  ;;  %v3190_v33 = vmul.f32 %v2711_v34, %v3175_v36 }
 0x168   : > { %v3187_v40 = vmul.f32 %v2713_v53, %v1529_v39  ;;  %v2715_v23 = vpop.eup %2714 }
 0x169   : > { %v3195_v26 = vmul.f32 %v2715_v23, %v3180_v58 }
 0x16a   : > { %v1592_v47 = vadd.f32 %v3187_v40, %v3185_v24 }
 0x16c   : > { %v1593_v28 = vadd.f32 %v1592_v47, %v3190_v33 }
 0x16d   : > { %v2717_v1 = vpop.eup %2716 }
 0x16e   : > { %v2719_v25 = vpop.eup %2718  ;;  %v3198_v17 = vmul.f32 %v2717_v1, %v1532_v2  ;;  %v1594_v35 = vadd.f32 %v1593_v28, %v3195_v26  ;;  %v2682_v2 = vld [vmem:[%s3299_s6 + $0x30] sm:$0xff]  }
 0x16f   : > { %v2721_v27 = vpop.eup %2720  ;;  %v3204_v37 = vmul.f32 %v2719_v25, %v1534_v4  ;;  %v2680_v4 = vld [vmem:[%s3299_s6 + $0x20] sm:$0xff]  }
 0x170   : > { %v1595_v38 = vadd.f32 %v1594_v35, %v3198_v17  ;;  %v3202_v42 = vmul.f32 %v2721_v27, %v1533_v11  ;;  %v2723_v36 = vpop.eup %2722  ;;  %2583 = vmatpush3.bf16.msra.mxu0 %v2680_v4 }
 0x171   : > { %v3207_v58 = vmul.f32 %v2723_v36, %v1535_v9  ;;  %2584 = vmatprep.subr.bf16.mxu0 %v2740_v41 }
 0x172   : > { %v1596_v44 = vadd.f32 %v1595_v38, %v3202_v42 }
 0x174   : > { %v1597_v60 = vadd.f32 %v1596_v44, %v3204_v37  ;;  %2585 = vmatpush3.bf16.msra.mxu0 %v2681_v0 }
 0x175   : > { %2586 = vmatprep.subr.bf16.mxu0 %v2740_v41 }
 0x176   : > { %v1598_v39 = vadd.f32 %v1597_v60, %v3207_v58 }
 0x178   : > { %v1599_v3 = vrot.slane %v1598_v39, 4  ;;  %2587 = vmatpush3.bf16.msra.mxu0 %v2682_v2 }
 0x179   : > { %2588 = vmatprep.subr.bf16.mxu0 %v2740_v41 }
 0x17a   : > { %v1600_v43 = vadd.f32 %v1599_v3, %v1598_v39 }
 0x17c   : > { %v1601_v61 = vrot.slane %v1600_v43, 2  ;;  %2589 = vmatpush3.bf16.msra.mxu0 %v2683_v54 }
 0x17e   : > { %v1602_v6 = vadd.f32 %v1601_v61, %v1600_v43 }
 0x180   : > { %v1603_v45 = vrot.slane %v1602_v6, 1 }
 0x182   : > { %v1604_v48 = vadd.f32 %v1603_v45, %v1602_v6 }
 0x184   : > { %v1606_v7 = vmul.f32 0.015625, %v1604_v48 }
 0x186   : > { %v1607_v63 = vpack.c.bf16 %v1606_v7, %v1606_v7 }
 0x188   : > { %2571 = vmatmul.mubr.bf16.vlgmr.msra.gmra.mrb[24].mxu1 %v1607_v63 }
 0x189   : > { %2595 = vmatpush3.bf16.msra.mxu1 %v2684_v49 }
 0x18a   : > { %2596 = vmatprep.subr.bf16.mxu1 %v2685_v18 }
 0x18d   : > { %2597 = vmatpush3.bf16.msra.mxu1 %v2685_v18 }
 0x18e   : > { %2598 = vmatprep.subr.bf16.mxu1 %v2686_v29 }
 0x191   : > { %2599 = vmatpush3.bf16.msra.mxu1 %v2686_v29 }
 0x192   : > { %2600 = vmatprep.subr.bf16.mxu1 %v2687_v30 }
 0x195   : > { %2601 = vmatpush3.bf16.msra.mxu1 %v2687_v30 }
 0x196   : > { %2602 = vmatprep.subr.bf16.mxu1 %v2688_v21 }
 0x199   : > { %2603 = vmatpush3.bf16.msra.mxu1 %v2688_v21 }
 0x19a   : > { %2604 = vmatprep.subr.bf16.mxu1 %v2689_v31 }
 0x19d   : > { %2605 = vmatpush3.bf16.msra.mxu1 %v2689_v31 }
 0x19e   : > { %2606 = vmatprep.subr.bf16.mxu1 %v2690_v15 }
 0x1a1   : > { %2607 = vmatpush3.bf16.msra.mxu1 %v2690_v15 }
 0x1a2   : > { %2608 = vmatprep.subr.bf16.mxu1 %v2691_v51 }
 0x1a5   : > { %2609 = vmatpush3.bf16.msra.mxu1 %v2691_v51 }
 0x25b   : > { %v1707_v9 = vpop.f32.mrb[24].mxu1 }
 0x25c   : > { %v1708_v10 = vadd.f32 %v1707_v9, %v1624_v50  ;;  %v2572_v11 = vpop.f32.mrb[25].mxu1 }
 0x25d   : > { %v1710_v13 = vpop.f32.mrb[26].mxu1 }
 0x25e   : > { %v2246_v5 = vmul.f32 -1.442695, %v1708_v10  ;;  %v2573_v14 = vpop.f32.mrb[27].mxu1 }
 0x260   : > { %2724 = vpow2.f32 %v2246_v5 }
 0x26a   : > { %v2725_v16 = vpop.eup %2724 }
 0x26b   : > { %v1716_v12 = vadd.f32 1.0, %v2725_v16 }
 0x26d   : > { %2726 = vrcp.f32 %v1716_v12 }
 0x277   : > { %v2727_v41 = vpop.eup %2726 }
 0x278   : > { %v1719_v57 = vmul.f32 %v2727_v41, %v1708_v10 }
 0x27a   : > { %v1720_v46 = vpack.c.bf16 %v1719_v57, %v1719_v57 }
 0x27c   : > { %2591 = vmatmul.mubr.bf16.vlgmr.msra.gmra.mrb[48].mxu0 %v1720_v46 }
 0x34f   : > { %v1820_v32 = vpop.f32.mrb[48].mxu0 }
 0x350   : > { %v1821_v20 = vadd.f32 %v1820_v32, %v1737_v22  ;;  %v2592_v19 = vpop.f32.mrb[49].mxu0 }
 0x351   : > { %v1823_v34 = vpop.f32.mrb[50].mxu0 }
 0x352   : > { %v2255_v53 = vmul.f32 -1.442695, %v1821_v20  ;;  %v2593_v23 = vpop.f32.mrb[51].mxu0 }
 0x354   : > { %2728 = vpow2.f32 %v2255_v53 }
 0x35e   : > { %v2729_v47 = vpop.eup %2728 }
 0x35f   : > { %v1829_v28 = vadd.f32 1.0, %v2729_v47 }
 0x361   : > { %2730 = vrcp.f32 %v1829_v28 }
 0x36b   : > { %v2731_v1 = vpop.eup %2730 }
 0x36c   : > { %v1835_v25 = vrot.slane %v2731_v1, %v503_v59 }
 0x36e   : > { %v1836_v35 = vmul.f32 %v1835_v25, %v3185_v24  ;;  %v1837_v27 = vmul.f32 %v1835_v25, %v3187_v40  ;;  %v1838_v38 = vmul.f32 %v1835_v25, %v3190_v33  ;;  %v1839_v36 = vmul.f32 %v1835_v25, %v3195_v26  ;;  %v2256_v33 = vld [vmem:[%s3302_s9] ss:$0 sm:$0xff] }
 0x36f   : > { %v1840_v44 = vmul.f32 %v1835_v25, %v3198_v17  ;;  %v1841_v60 = vmul.f32 %v1835_v25, %v3202_v42  ;;  %v1842_v55 = vmul.f32 %v1835_v25, %v3204_v37  ;;  %v1843_v59 = vmul.f32 %v1835_v25, %v3207_v58 }
 0x370   : > { %v1844_v39 = vpack.c.bf16 %v1837_v27, %v1836_v35  ;;  %v1845_v3 = vpack.c.bf16 %v1839_v36, %v1838_v38 }
 0x371   : > { %v1846_v43 = vpack.c.bf16 %v1841_v60, %v1840_v44  ;;  %v1847_v24 = vpack.c.bf16 %v1843_v59, %v1842_v55 }
 0x372   : > { %2610 = vmatprep.mubr.bf16.mxu1 %v1844_v39 }
 0x373   : > { %2611 = vmatmul.mubr.bf16.vlgmr.msra.gmra.mrb[28].mxu1 %v1845_v3 }
 0x374   : > { %2614 = vmatprep.mubr.bf16.mxu1 %v1846_v43 }
 0x37b   : > { %2615 = vmatmul.mubr.bf16.gmra.mrb[32].mxu1 %v1847_v24 }
 0x446   : > { %v2612_v40 = vpop.f32.mrb[28].mxu1 }
 0x447   : > { %v1953_v26 = vpop.f32.mrb[29].mxu1  ;;  %v1962_v42 = vadd.f32 %v2612_v40, %v2256_v33 }
 0x448   : > { %v2613_v17 = vpop.f32.mrb[30].mxu1  ;;  %v1954_v45 = vadd.f32 %v2256_v33, %v1953_v26 }
 0x449   : > { %v1965_v61 = vadd.f32 %v2613_v17, %v2256_v33  ;;  %v1956_v6 = vpop.f32.mrb[31].mxu1 }
 0x44a   : > { %v1957_v37 = vadd.f32 %v2256_v33, %v1956_v6 }
 0x44b   : > { %v2293_v58 = vpack.c.bf16 %v1965_v61, %v1962_v42 }
 0x44c   : > { %v2288_v48 = vpack.c.bf16 %v1957_v37, %v1954_v45 }
 0x44d   : > { %2305 = vst [vmem:[%s359_s16 + $0x8] sm:$0xff] %v2293_v58  }
 0x44e   : > { %2289 = vst [vmem:[%s359_s16] sm:$0xff] %v2288_v48   ;;  %v2616_v7 = vpop.f32.mrb[32].mxu1 }
 0x44f   : > { %v1969_v63 = vpop.f32.mrb[33].mxu1  ;;  %v1978_v62 = vadd.f32 %v2616_v7, %v2256_v33 }
 0x450   : > { %v2617_v56 = vpop.f32.mrb[34].mxu1  ;;  %v1970_v4 = vadd.f32 %v2256_v33, %v1969_v63 }
 0x451   : > { %v1981_v8 = vadd.f32 %v2617_v56, %v2256_v33  ;;  %v1972_v52 = vpop.f32.mrb[35].mxu1 }
 0x452   : > { %v1973_v0 = vadd.f32 %v2256_v33, %v1972_v52 }
 0x453   : > { %v2303_v2 = vpack.c.bf16 %v1981_v8, %v1978_v62 }
 0x454   : > { %v2298_v54 = vpack.c.bf16 %v1973_v0, %v1970_v4 }
 0x455   : > { %2307 = vst [vmem:[%s359_s16 + $0x18] sm:$0xff] %v2303_v2  }
 0x456   : > { %2306 = vst [vmem:[%s359_s16 + $0x10] sm:$0xff] %v2298_v54  }
 0x457 PF: > { %s20_s13 = sadd.s32 1, %s2738_s13  }
 0x458   : > { %p17_p4 = scmp.ge.s32.totalorder %s20_s13, 4  }
 0x45a   :  { %19 = sbr.rel (!%p17_p4) target bundleno = 1 (0x1), region = 98 }

// kernel: lyft_effnet_forward.5
= control target key start
LH: loop header
LB: loop body
LE: loop exit
PB: predicated region body
PF: predicated region fallthrough
CT: control target
= control target key end

     0   :  { %s2646_s21 = smov 0   ;;  %s3064_s0 = inlined_call_operand.vmem [shape: bf16[2,64,128], index: 0, kind: input, shape index: {}]   ;;  %s3065_s1 = inlined_call_operand.vmem [shape: bf16[9,16,64], index: 1, kind: input, shape index: {}]   ;;  %s3066_s2 = inlined_call_operand.vmem [shape: bf16[128,128], index: 2, kind: input, shape index: {}]   ;;  %s3067_s3 = inlined_call_operand.vmem [shape: f32[1,128], index: 3, kind: input, shape index: {}]   ;;  %s3068_s4 = inlined_call_operand.vmem [shape: f32[9,128], index: 4, kind: input, shape index: {}]   ;;  %s3069_s5 = inlined_call_operand.vmem [shape: f32[1,128], index: 5, kind: input, shape index: {}]   ;;  %s3070_s6 = inlined_call_operand.vmem [shape: bf16[128,128], index: 6, kind: input, shape index: {}]   ;;  %s3071_s7 = inlined_call_operand.vmem [shape: f32[1,128], index: 7, kind: input, shape index: {}]   ;;  %s3072_s8 = inlined_call_operand.vmem [shape: bf16[128,128], index: 8, kind: input, shape index: {}]   ;;  %s3073_s9 = inlined_call_operand.vmem [shape: f32[1,128], index: 9, kind: input, shape index: {}]   ;;  %s3074_s10 = inlined_call_operand.vmem [shape: bf16[128,128], index: 10, kind: input, shape index: {}]   ;;  %s3075_s11 = inlined_call_operand.vmem [shape: f32[1,128], index: 11, kind: input, shape index: {}]   ;;  %s3076_s12 = inlined_call_operand.vmem [shape: bf16[128,128], index: 12, kind: input, shape index: {}]   ;;  %s3077_s13 = inlined_call_operand.vmem [shape: f32[1,128], index: 13, kind: input, shape index: {}]   ;;  %s3078_s14 = inlined_call_operand.vmem [shape: bf16[128,128], index: 14, kind: input, shape index: {}]   ;;  %s3079_s15 = inlined_call_operand.vmem [shape: f32[1,128], index: 15, kind: input, shape index: {}]   ;;  %s3080_s16 = inlined_call_operand.vmem [shape: f32[2,1,128], index: 16, kind: output, shape index: {}]  }
   0x1   :  { %3081 = sst [smem:[#allocation2_spill]] %s3064_s0 }
   0x2 LB: > { %s1971_s22 = sadd.s32 4294967295, %s2557_s21   ;;  %p1975_p0 = scmp.ge.s32.totalorder %s2557_s21, 1  ;;  %s2557_s21 = sphi %s2646_s21, %s26_s21  }
   0x3   : > { %p462_p1 = scmp.lt.s32.totalorder %s2557_s21, 3 }
   0x5   : > { %p463_p2 = pnand %p1975_p0, %p462_p1 }
   0x6   : > { %v2430_v0 = vld [vmem:[%s3066_s2] sm:$0xff] (!%p463_p2)   ;;  %p510_p3 = scmp.lt.s32.totalorder (!%p463_p2), %s1971_s22, 1  ;;  %v2431_v1 = vld [vmem:[%s3066_s2 + $0x8] sm:$0xff] (!%p463_p2)   ;;  %v2432_v2 = vld [vmem:[%s3066_s2 + $0x10] sm:$0xff] (!%p463_p2)   ;;  %s3082_s17 = sld [smem:[#allocation2_spill]] (!%p463_p2)  ;;  %v2559_v12 = vmov (!%p463_p2), 0.0  }
   0x7   : > { %466 = sbr.rel (%p463_p2) target bundleno = 2134 (0x856), region = 84  ;;  %2188 = vmatprep.subr.bf16.mxu0 (!%p463_p2), %v2430_v0  ;;  %v2433_v3 = vld [vmem:[%s3066_s2 + $0x18] sm:$0xff] (!%p463_p2)   ;;  %v2434_v5 = vld [vmem:[%s3066_s2 + $0x20] sm:$0xff] (!%p463_p2)   ;;  %v2435_v6 = vld [vmem:[%s3066_s2 + $0x28] sm:$0xff] (!%p463_p2)   ;;  %2212 = vmatprep.subr.bf16.mxu1 (!%p463_p2), %v2559_v12  ;;  %vm2560_vm0 = vmmov (!%p463_p2), 0   ;;  %vm756_vm1 = vcmask (!%p463_p2), 523264  }
   0x8   : > { %2189 = vmatpush3.bf16.msra.mxu0 (!%p463_p2), %v2430_v0  ;;  %v2436_v7 = vld [vmem:[%s3066_s2 + $0x30] sm:$0xff] (!%p463_p2)   ;;  %v2437_v8 = vld [vmem:[%s3066_s2 + $0x38] sm:$0xff] (!%p463_p2)   ;;  %2220 = vmatprep.mubr.msk.bf16.mxu1 (!%p463_p2), %vm2560_vm0, %v2559_v12  ;;  %v1978_v13 = vld [vmem:[%s3067_s3] ss:$0 sm:$0xff] (!%p463_p2)  ;;  %vm1910_vm5 = vcmask (!%p463_p2), 1040384  }
   0x9   : > { %2190 = vmatprep.subr.bf16.mxu0 (!%p463_p2), %v2431_v1 }
   0xc   : > { %2191 = vmatpush3.bf16.msra.mxu0 (!%p463_p2), %v2431_v1 }
   0xd   : > { %2192 = vmatprep.subr.bf16.mxu0 (!%p463_p2), %v2432_v2 }
   0xe   : > { %s3086_s22 = smov (!%p510_p3, %s1971_s22), 1 }
   0xf   : > { %s2085_s29 = sshll.u32 %s3086_s22, 5 }
  0x10   : > { %s514_s18 = scalar_lea.vmem %s3082_s17, %s2085_s29  ;;  %2193 = vmatpush3.bf16.msra.mxu0 %v2432_v2  ;;  %s517_s17 = scalar_lea.vmem %s3080_s16, %s3086_s22 }
  0x11   : > { %v2438_v4 = vld [vmem:[%s514_s18] sm:$0xff]   ;;  %2194 = vmatprep.subr.bf16.mxu0 %v2433_v3  ;;  %v2439_v9 = vld [vmem:[%s514_s18 + $0x8] sm:$0xff]   ;;  %v2440_v10 = vld [vmem:[%s514_s18 + $0x10] sm:$0xff]  }
  0x12   : > { %2204 = vmatprep.mubr.bf16.mxu0 %v2438_v4  ;;  %v2441_v11 = vld [vmem:[%s514_s18 + $0x18] sm:$0xff]  }
  0x14   : > { %2195 = vmatpush3.bf16.msra.mxu0 %v2433_v3 }
  0x15   : > { %2196 = vmatprep.subr.bf16.mxu0 %v2434_v5 }
  0x18   : > { %2197 = vmatpush3.bf16.msra.mxu0 %v2434_v5 }
  0x19   : > { %2198 = vmatprep.subr.bf16.mxu0 %v2435_v6 }
  0x1c   : > { %2199 = vmatpush3.bf16.msra.mxu0 %v2435_v6 }
  0x1d   : > { %2200 = vmatprep.subr.bf16.mxu0 %v2436_v7 }
  0x20   : > { %2201 = vmatpush3.bf16.msra.mxu0 %v2436_v7 }
  0x21   : > { %2202 = vmatprep.subr.bf16.mxu0 %v2437_v8 }
  0x24   : > { %2203 = vmatpush3.bf16.msra.mxu0 %v2437_v8 }
  0x25   : > { %2236 = vmatprep.subr.bf16.mxu0 %v2559_v12 }
  0x27   : > { %2205 = vmatmul.mubr.bf16.vlgmr.msra.gmra.mrb[0].mxu0 %v2439_v9 }
  0x28   : > { %2208 = vmatprep.mubr.bf16.mxu0 %v2440_v10  ;;  %v2442_v10 = vld [vmem:[%s3065_s1] sm:$0xff]  }
  0x2f   : > { %2209 = vmatmul.mubr.bf16.gmra.mrb[4].mxu0 %v2441_v11  ;;  %v2443_v11 = vld [vmem:[%s3065_s1 + $0x10] sm:$0xff]  }
  0x30   : > { %2244 = vmatprep.mubr.msk.bf16.mxu0 %vm2560_vm0, %v2559_v12 }
  0xfa   : > { %v2206_v14 = vpop.f32.mrb[0].mxu0 }
  0xfb   : > { %v665_v15 = vadd.f32 %v2206_v14, %v1978_v13  ;;  %v656_v16 = vpop.f32.mrb[1].mxu0  ;;  %v2445_v14 = vld [vmem:[%s3065_s1 + $0x20] sm:$0xff]  }
  0xfc   : > { %v657_v17 = vadd.f32 %v1978_v13, %v656_v16  ;;  %v2207_v18 = vpop.f32.mrb[2].mxu0  ;;  %v2447_v16 = vld [vmem:[%s3065_s1 + $0x30] sm:$0xff]  }
  0xfd   : > { %v1993_v19 = vmul.f32 -1.442695, %v665_v15  ;;  %v668_v20 = vadd.f32 %v2207_v18, %v1978_v13  ;;  %v659_v21 = vpop.f32.mrb[3].mxu0  ;;  %v2449_v18 = vld [vmem:[%s3065_s1 + $0x40] sm:$0xff]  }
  0xfe   : > { %v1991_v22 = vmul.f32 -1.442695, %v657_v17  ;;  %v660_v23 = vadd.f32 %v1978_v13, %v659_v21  ;;  %v2452_v21 = vld [vmem:[%s3070_s6 + $0x8] sm:$0xff]  }
  0xff   : > { %2491 = vpow2.f32 %v1993_v19  ;;  %v1994_v24 = vmul.f32 -1.442695, %v668_v20  ;;  %v2450_v19 = vld [vmem:[%s3065_s1 + $0x38] sm:$0xff]  }
 0x100   : > { %2493 = vpow2.f32 %v1991_v22  ;;  %v1992_v25 = vmul.f32 -1.442695, %v660_v23  ;;  %v2453_v22 = vld [vmem:[%s3070_s6 + $0x10] sm:$0xff]  }
 0x101   : > { %2495 = vpow2.f32 %v1994_v24  ;;  %v2455_v24 = vld [vmem:[%s3070_s6 + $0x20] sm:$0xff]  }
 0x102   : > { %2497 = vpow2.f32 %v1992_v25  ;;  %v2210_v26 = vpop.f32.mrb[4].mxu0  ;;  %v2456_v25 = vld [vmem:[%s3070_s6 + $0x28] sm:$0xff]  }
 0x103   : > { %v681_v27 = vadd.f32 %v2210_v26, %v1978_v13  ;;  %v672_v28 = vpop.f32.mrb[5].mxu0  ;;  %v2457_v26 = vld [vmem:[%s3070_s6 + $0x30] sm:$0xff]  }
 0x104   : > { %v673_v29 = vadd.f32 %v1978_v13, %v672_v28  ;;  %v2211_v30 = vpop.f32.mrb[6].mxu0 }
 0x105   : > { %v1997_v31 = vmul.f32 -1.442695, %v681_v27  ;;  %v684_v32 = vadd.f32 %v2211_v30, %v1978_v13  ;;  %v675_v33 = vpop.f32.mrb[7].mxu0  ;;  %v801_v30 = vlaneseq }
 0x106   : > { %v1995_v34 = vmul.f32 -1.442695, %v673_v29  ;;  %v676_v35 = vadd.f32 %v1978_v13, %v675_v33  ;;  %v2444_v13 = vld [vmem:[%s3065_s1 + $0x8] sm:$0xff]  }
 0x107   : > { %2499 = vpow2.f32 %v1997_v31  ;;  %v1998_v36 = vmul.f32 -1.442695, %v684_v32 }
 0x108   : > { %2501 = vpow2.f32 %v1995_v34  ;;  %v1996_v37 = vmul.f32 -1.442695, %v676_v35 }
 0x109   : > { %v2492_v38 = vpop.eup %2491  ;;  %2503 = vpow2.f32 %v1998_v36 }
 0x10a   : > { %v2494_v39 = vpop.eup %2493  ;;  %v713_v40 = vadd.f32 1.0, %v2492_v38  ;;  %2505 = vpow2.f32 %v1996_v37  ;;  %v2860_v37 = vshrl.u32 %v801_v30, 7 }
 0x10b   : > { %v2496_v41 = vpop.eup %2495  ;;  %v711_v42 = vadd.f32 1.0, %v2494_v39 }
 0x10c   : > { %v2498_v43 = vpop.eup %2497  ;;  %2507 = vrcp.f32 %v713_v40  ;;  %v714_v44 = vadd.f32 1.0, %v2496_v41  ;;  %v803_v38 = vsub.s32 0, %v2860_v37  ;;  %v861_v39 = vsub.s32 1, %v2860_v37  ;;  %v2868_v41 = vld [vmem:[%s3068_s4] sm:$0xff] }
 0x10d   : > { %2509 = vrcp.f32 %v711_v42  ;;  %v712_v45 = vadd.f32 1.0, %v2498_v43  ;;  %v921_v40 = vsub.s32 2, %v2860_v37 }
 0x10e   : > { %2511 = vrcp.f32 %v714_v44  ;;  %v804_v42 = vrot.slane %v2868_v41, %v803_v38  ;;  %v862_v43 = vrot.slane %v2868_v41, %v861_v39 }
 0x10f   : > { %2513 = vrcp.f32 %v712_v45  ;;  %v922_v44 = vrot.slane %v2868_v41, %v921_v40 }
 0x111   : > { %v2500_v46 = vpop.eup %2499 }
 0x112   : > { %v2502_v47 = vpop.eup %2501  ;;  %v717_v48 = vadd.f32 1.0, %v2500_v46 }
 0x113   : > { %v2504_v49 = vpop.eup %2503  ;;  %v715_v50 = vadd.f32 1.0, %v2502_v47 }
 0x114   : > { %v2506_v51 = vpop.eup %2505  ;;  %2515 = vrcp.f32 %v717_v48  ;;  %v718_v52 = vadd.f32 1.0, %v2504_v49 }
 0x115   : > { %2517 = vrcp.f32 %v715_v50  ;;  %v716_v53 = vadd.f32 1.0, %v2506_v51 }
 0x116   : > { %v2508_v54 = vpop.eup %2507  ;;  %2519 = vrcp.f32 %v718_v52 }
 0x117   : > { %v2510_v55 = vpop.eup %2509  ;;  %2521 = vrcp.f32 %v716_v53  ;;  %v737_v58 = vmul.f32 %v2508_v54, %v665_v15  ;;  %v2446_v15 = vld [vmem:[%s3065_s1 + $0x18] sm:$0xff]  }
 0x118   : > { %v2512_v56 = vpop.eup %2511  ;;  %v735_v60 = vmul.f32 %v2510_v55, %v657_v17  ;;  %v2448_v17 = vld [vmem:[%s3065_s1 + $0x28] sm:$0xff]  }
 0x119   : > { %v2514_v57 = vpop.eup %2513  ;;  %v738_v59 = vmul.f32 %v2512_v56, %v668_v20  ;;  %v2451_v20 = vld [vmem:[%s3070_s6] sm:$0xff]  }
 0x11a   : > { %v736_v61 = vmul.f32 %v2514_v57, %v660_v23  ;;  %v2454_v23 = vld [vmem:[%s3070_s6 + $0x18] sm:$0xff]  }
 0x11b   : > { %v2693_v62 = vpack.c.bf16 %v738_v59, %v737_v58 }
 0x11c   : > { %v2695_v63 = vpack.c.bf16 %v736_v61, %v735_v60 }
 0x11e   : > { %v2516_v0 = vpop.eup %2515  ;;  %2213 = vmatpush3.bf16.msra.mxu1 %v2695_v63  ;;  %2237 = vmatpush3.bf16.msra.mxu0 %v2695_v63 }
 0x11f   : > { %v2518_v1 = vpop.eup %2517  ;;  %2214 = vmatprep.subr.bf16.mxu1 %v2559_v12  ;;  %2238 = vmatprep.subr.bf16.mxu0 %v2559_v12  ;;  %v741_v4 = vmul.f32 %v2516_v0, %v681_v27  ;;  %v2458_v27 = vld [vmem:[%s3070_s6 + $0x38] sm:$0xff]   ;;  %v1041_v0 = vsub.s32 4, %v2860_v37 }
 0x120   : > { %v2520_v2 = vpop.eup %2519  ;;  %v739_v6 = vmul.f32 %v2518_v1, %v673_v29 }
 0x121   : > { %v2522_v3 = vpop.eup %2521  ;;  %v742_v5 = vmul.f32 %v2520_v2, %v684_v32  ;;  %v1042_v2 = vrot.slane %v2868_v41, %v1041_v0 }
 0x122   : > { %v740_v7 = vmul.f32 %v2522_v3, %v676_v35  ;;  %2215 = vmatpush3.bf16.msra.mxu1 %v2693_v62  ;;  %2239 = vmatpush3.bf16.msra.mxu0 %v2693_v62 }
 0x123   : > { %v2703_v8 = vpack.c.bf16 %v742_v5, %v741_v4  ;;  %2216 = vmatprep.subr.bf16.mxu1 %v2559_v12  ;;  %2240 = vmatprep.subr.bf16.mxu0 %v2559_v12 }
 0x124   : > { %v2707_v9 = vpack.c.bf16 %v740_v7, %v739_v6 }
 0x126   : > { %2217 = vmatpush3.bf16.msra.mxu1 %v2707_v9  ;;  %2241 = vmatpush3.bf16.msra.mxu0 %v2707_v9 }
 0x127   : > { %2218 = vmatprep.subr.bf16.mxu1 %v2559_v12  ;;  %2242 = vmatprep.subr.bf16.mxu0 %v2559_v12 }
 0x12a   : > { %2219 = vmatpush3.bf16.msra.mxu1 %v2703_v8  ;;  %2243 = vmatpush3.bf16.msra.mxu0 %v2703_v8 }
 0x12b   : > { %2224 = vmatprep.subr.bf16.mxu1 %v2559_v12  ;;  %2260 = vmatprep.subr.bf16.mxu0 %v2559_v12 }
 0x12d   : > { %2221 = vmatmul.mubr.msk.bf16.vlgmr.msra.gmra.mrb[0].mxu1 %vm756_vm1, %v2442_v10  ;;  %2245 = vmatmul.mubr.msk.bf16.vlgmr.msra.gmra.mrb[8].mxu0 %vm756_vm1, %v2443_v11 }
 0x12e   : > { %2225 = vmatpush3.bf16.msra.mxu1 %v2695_v63  ;;  %2261 = vmatpush3.bf16.msra.mxu0 %v2695_v63 }
 0x12f   : > { %2226 = vmatprep.subr.bf16.mxu1 %v2559_v12  ;;  %2262 = vmatprep.subr.bf16.mxu0 %v2559_v12 }
 0x130   : > { %2232 = vmatprep.mubr.msk.bf16.mxu1 %vm2560_vm0, %v2559_v12  ;;  %2268 = vmatprep.mubr.msk.bf16.mxu0 %vm2560_vm0, %v2559_v12 }
 0x132   : > { %2227 = vmatpush3.bf16.msra.mxu1 %v2693_v62  ;;  %2263 = vmatpush3.bf16.msra.mxu0 %v2693_v62 }
 0x133   : > { %2228 = vmatprep.subr.bf16.mxu1 %v2559_v12  ;;  %2264 = vmatprep.subr.bf16.mxu0 %v2559_v12 }
 0x136   : > { %2229 = vmatpush3.bf16.msra.mxu1 %v2707_v9  ;;  %2265 = vmatpush3.bf16.msra.mxu0 %v2707_v9 }
 0x137   : > { %2230 = vmatprep.subr.bf16.mxu1 %v2559_v12  ;;  %2266 = vmatprep.subr.bf16.mxu0 %v2559_v12 }
 0x13a   : > { %2231 = vmatpush3.bf16.msra.mxu1 %v2703_v8  ;;  %2267 = vmatpush3.bf16.msra.mxu0 %v2703_v8 }
 0x13b   : > { %2248 = vmatprep.subr.bf16.mxu1 %v2559_v12  ;;  %2284 = vmatprep.subr.bf16.mxu0 %v2559_v12 }
 0x13d   : > { %2233 = vmatmul.mubr.msk.bf16.vlgmr.msra.gmra.mrb[4].mxu1 %vm756_vm1, %v2444_v13  ;;  %2269 = vmatmul.mubr.msk.bf16.vlgmr.msra.gmra.mrb[12].mxu0 %vm756_vm1, %v2445_v14 }
 0x13e   : > { %2249 = vmatpush3.bf16.msra.mxu1 %v2695_v63  ;;  %2285 = vmatpush3.bf16.msra.mxu0 %v2695_v63 }
 0x13f   : > { %2250 = vmatprep.subr.bf16.mxu1 %v2559_v12  ;;  %2286 = vmatprep.subr.bf16.mxu0 %v2559_v12 }
 0x140   : > { %2256 = vmatprep.mubr.msk.bf16.mxu1 %vm2560_vm0, %v2559_v12  ;;  %2292 = vmatprep.mubr.msk.bf16.mxu0 %vm2560_vm0, %v2559_v12 }
 0x142   : > { %2251 = vmatpush3.bf16.msra.mxu1 %v2693_v62  ;;  %2287 = vmatpush3.bf16.msra.mxu0 %v2693_v62 }
 0x143   : > { %2252 = vmatprep.subr.bf16.mxu1 %v2559_v12  ;;  %2288 = vmatprep.subr.bf16.mxu0 %v2559_v12 }
 0x146   : > { %2253 = vmatpush3.bf16.msra.mxu1 %v2707_v9  ;;  %2289 = vmatpush3.bf16.msra.mxu0 %v2707_v9 }
 0x147   : > { %2254 = vmatprep.subr.bf16.mxu1 %v2559_v12  ;;  %2290 = vmatprep.subr.bf16.mxu0 %v2559_v12 }
 0x14a   : > { %2255 = vmatpush3.bf16.msra.mxu1 %v2703_v8  ;;  %2291 = vmatpush3.bf16.msra.mxu0 %v2703_v8 }
 0x14b   : > { %2272 = vmatprep.subr.bf16.mxu1 %v2559_v12  ;;  %2308 = vmatprep.subr.bf16.mxu0 %v2559_v12 }
 0x14d   : > { %2257 = vmatmul.mubr.msk.bf16.vlgmr.msra.gmra.mrb[8].mxu1 %vm756_vm1, %v2446_v15  ;;  %2293 = vmatmul.mubr.msk.bf16.vlgmr.msra.gmra.mrb[16].mxu0 %vm756_vm1, %v2447_v16 }
 0x14e   : > { %2273 = vmatpush3.bf16.msra.mxu1 %v2695_v63  ;;  %2309 = vmatpush3.bf16.msra.mxu0 %v2695_v63 }
 0x14f   : > { %2274 = vmatprep.subr.bf16.mxu1 %v2559_v12  ;;  %2310 = vmatprep.subr.bf16.mxu0 %v2559_v12 }
 0x150   : > { %2280 = vmatprep.mubr.msk.bf16.mxu1 %vm2560_vm0, %v2559_v12  ;;  %2316 = vmatprep.mubr.msk.bf16.mxu0 %vm2560_vm0, %v2559_v12 }
 0x152   : > { %2275 = vmatpush3.bf16.msra.mxu1 %v2693_v62  ;;  %2311 = vmatpush3.bf16.msra.mxu0 %v2693_v62 }
 0x153   : > { %2276 = vmatprep.subr.bf16.mxu1 %v2559_v12  ;;  %2312 = vmatprep.subr.bf16.mxu0 %v2559_v12 }
 0x156   : > { %2277 = vmatpush3.bf16.msra.mxu1 %v2707_v9  ;;  %2313 = vmatpush3.bf16.msra.mxu0 %v2707_v9 }
 0x157   : > { %2278 = vmatprep.subr.bf16.mxu1 %v2559_v12  ;;  %2314 = vmatprep.subr.bf16.mxu0 %v2559_v12 }
 0x15a   : > { %2279 = vmatpush3.bf16.msra.mxu1 %v2703_v8  ;;  %2315 = vmatpush3.bf16.msra.mxu0 %v2703_v8 }
 0x15b   : > { %2296 = vmatprep.subr.bf16.mxu1 %v2559_v12  ;;  %2340 = vmatprep.subr.bf16.mxu0 %v2559_v12 }
 0x15d   : > { %2281 = vmatmul.mubr.msk.bf16.vlgmr.msra.gmra.mrb[12].mxu1 %vm756_vm1, %v2448_v17  ;;  %2317 = vmatmul.mubr.msk.bf16.vlgmr.msra.gmra.mrb[20].mxu0 %vm756_vm1, %v2449_v18 }
 0x15e   : > { %2297 = vmatpush3.bf16.msra.mxu1 %v2695_v63  ;;  %2304 = vmatprep.mubr.msk.bf16.mxu1 %vm2560_vm0, %v2559_v12  ;;  %v981_v63 = vsub.s32 3, %v2860_v37 }
 0x15f   : > { %2298 = vmatprep.subr.bf16.mxu1 %v2559_v12  ;;  %2356 = vmatprep.mubr.msk.bf16.mxu0 %vm2560_vm0, %v2559_v12 }
 0x160   : > { %v982_v1 = vrot.slane %v2868_v41, %v981_v63 }
 0x162   : > { %2299 = vmatpush3.bf16.msra.mxu1 %v2693_v62 }
 0x163   : > { %2300 = vmatprep.subr.bf16.mxu1 %v2559_v12 }
 0x166   : > { %2301 = vmatpush3.bf16.msra.mxu1 %v2707_v9 }
 0x167   : > { %2302 = vmatprep.subr.bf16.mxu1 %v2559_v12 }
 0x16a   : > { %2303 = vmatpush3.bf16.msra.mxu1 %v2703_v8 }
 0x16b   : > { %2320 = vmatprep.subr.bf16.mxu1 %v2559_v12 }
 0x16d   : > { %2305 = vmatmul.mubr.msk.bf16.vlgmr.msra.gmra.mrb[16].mxu1 %vm756_vm1, %v2450_v19 }
 0x16e   : > { %2336 = vmatprep.mubr.msk.bf16.mxu1 %vm2560_vm0, %v2559_v12  ;;  %2321 = vmatpush3.bf16.msra.mxu1 %v2451_v20  ;;  %v1101_v20 = vsub.s32 5, %v2860_v37 }
 0x16f   : > { %2322 = vmatprep.subr.bf16.mxu1 %v2559_v12 }
 0x172   : > { %2323 = vmatpush3.bf16.msra.mxu1 %v2452_v21  ;;  %v1161_v21 = vsub.s32 6, %v2860_v37 }
 0x173   : > { %2324 = vmatprep.subr.bf16.mxu1 %v2559_v12 }
 0x176   : > { %2325 = vmatpush3.bf16.msra.mxu1 %v2453_v22  ;;  %v1102_v22 = vrot.slane %v2868_v41, %v1101_v20  ;;  %v2462_v20 = vld [vmem:[%s3072_s8 + $0x18] sm:$0xff]  }
 0x177   : > { %2326 = vmatprep.subr.bf16.mxu1 %v2559_v12 }
 0x17a   : > { %2327 = vmatpush3.bf16.msra.mxu1 %v2454_v23  ;;  %v1162_v23 = vrot.slane %v2868_v41, %v1161_v21  ;;  %v2463_v21 = vld [vmem:[%s3072_s8 + $0x20] sm:$0xff]  }
 0x17b   : > { %2328 = vmatprep.subr.bf16.mxu1 %v2559_v12 }
 0x17e   : > { %2329 = vmatpush3.bf16.msra.mxu1 %v2455_v24 }
 0x17f   : > { %2330 = vmatprep.subr.bf16.mxu1 %v2559_v12 }
 0x182   : > { %2331 = vmatpush3.bf16.msra.mxu1 %v2456_v25 }
 0x183   : > { %2332 = vmatprep.subr.bf16.mxu1 %v2559_v12 }
 0x186   : > { %2333 = vmatpush3.bf16.msra.mxu1 %v2457_v26 }
 0x187   : > { %2334 = vmatprep.subr.bf16.mxu1 %v2559_v12 }
 0x18a   : > { %2335 = vmatpush3.bf16.msra.mxu1 %v2458_v27 }
 0x18b   : > { %2360 = vmatprep.subr.bf16.mxu1 %v2559_v12 }
 0x200   : > { %v794_v28 = vpop.f32.mrb[0].mxu1  ;;  %v912_v29 = vpop.f32.mrb[8].mxu0 }
 0x201   : > { %v2222_v31 = vpop.f32.mrb[1].mxu1  ;;  %v2246_v32 = vpop.f32.mrb[9].mxu0  ;;  %v805_v47 = vmul.f32 %v804_v42, %v794_v28  ;;  %v923_v49 = vmul.f32 %v922_v44, %v912_v29 }
 0x202   : > { %v797_v33 = vpop.f32.mrb[2].mxu1  ;;  %v915_v34 = vpop.f32.mrb[10].mxu0 }
 0x203   : > { %v2223_v35 = vpop.f32.mrb[3].mxu1  ;;  %v2247_v36 = vpop.f32.mrb[11].mxu0  ;;  %v806_v54 = vmul.f32 %v804_v42, %v797_v33  ;;  %v924_v57 = vmul.f32 %v922_v44, %v915_v34  ;;  %v1221_v44 = vsub.s32 7, %v2860_v37  ;;  %v2482_v37 = vld [vmem:[%s3076_s12 + $0x38] sm:$0xff]  }
 0x210   : > { %v852_v45 = vpop.f32.mrb[4].mxu1  ;;  %v1032_v46 = vpop.f32.mrb[12].mxu0 }
 0x211   : > { %v863_v48 = vmul.f32 %v862_v43, %v852_v45  ;;  %v2234_v50 = vpop.f32.mrb[5].mxu1  ;;  %v2270_v51 = vpop.f32.mrb[13].mxu0  ;;  %v1043_v6 = vmul.f32 %v1042_v2, %v1032_v46  ;;  %v1222_v45 = vrot.slane %v2868_v41, %v1221_v44  ;;  %v2033_v46 = vld [vmem:[%s3068_s4 + $0x8] ss:$0 sm:$0xff]  ;;  %v2470_v44 = vld [vmem:[%s3074_s10 + $0x18] sm:$0xff]  }
 0x212   : > { %v855_v52 = vpop.f32.mrb[6].mxu1  ;;  %v1035_v53 = vpop.f32.mrb[14].mxu0 }
 0x213   : > { %v865_v55 = vadd.f32 %v863_v48, %v805_v47  ;;  %v864_v56 = vmul.f32 %v862_v43, %v855_v52  ;;  %v2235_v58 = vpop.f32.mrb[7].mxu1  ;;  %v2271_v59 = vpop.f32.mrb[15].mxu0  ;;  %v1044_v14 = vmul.f32 %v1042_v2, %v1035_v53 }
 0x215   : > { %v925_v60 = vadd.f32 %v923_v49, %v865_v55  ;;  %v866_v61 = vadd.f32 %v864_v56, %v806_v54  ;;  %v2034_v55 = vld [vmem:[%s3069_s5] ss:$0 sm:$0xff] }
 0x217   : > { %v926_v62 = vadd.f32 %v924_v57, %v866_v61 }
 0x220   : > { %v972_v3 = vpop.f32.mrb[8].mxu1  ;;  %v1152_v4 = vpop.f32.mrb[16].mxu0 }
 0x221   : > { %v983_v5 = vmul.f32 %v982_v1, %v972_v3  ;;  %v2258_v7 = vpop.f32.mrb[9].mxu1  ;;  %v2294_v8 = vpop.f32.mrb[17].mxu0  ;;  %v1163_v27 = vmul.f32 %v1162_v23, %v1152_v4 }
 0x222   : > { %v975_v9 = vpop.f32.mrb[10].mxu1  ;;  %v1155_v10 = vpop.f32.mrb[18].mxu0 }
 0x223   : > { %v985_v11 = vadd.f32 %v983_v5, %v925_v60  ;;  %v984_v13 = vmul.f32 %v982_v1, %v975_v9  ;;  %v2259_v15 = vpop.f32.mrb[11].mxu1  ;;  %v2295_v16 = vpop.f32.mrb[19].mxu0  ;;  %v1164_v35 = vmul.f32 %v1162_v23, %v1155_v10  ;;  %v2465_v23 = vld [vmem:[%s3072_s8 + $0x30] sm:$0xff]  }
 0x225   : > { %v1045_v17 = vadd.f32 %v1043_v6, %v985_v11  ;;  %v986_v18 = vadd.f32 %v984_v13, %v926_v62 }
 0x227   : > { %v1046_v19 = vadd.f32 %v1044_v14, %v986_v18  ;;  %v2460_v18 = vld [vmem:[%s3072_s8 + $0x8] sm:$0xff]  }
 0x230   : > { %v1092_v24 = vpop.f32.mrb[12].mxu1  ;;  %v1272_v25 = vpop.f32.mrb[20].mxu0 }
 0x231   : > { %v1103_v26 = vmul.f32 %v1102_v22, %v1092_v24  ;;  %v2282_v28 = vpop.f32.mrb[13].mxu1  ;;  %v2318_v29 = vpop.f32.mrb[21].mxu0  ;;  %v1283_v48 = vmul.f32 %v2033_v46, %v1272_v25  ;;  %v2466_v24 = vld [vmem:[%s3072_s8 + $0x38] sm:$0xff]   ;;  %v1336_v25 = vld [vmem:[%s3071_s7] sm:$0x1] }
 0x232   : > { %v1095_v31 = vpop.f32.mrb[14].mxu1  ;;  %v1275_v32 = vpop.f32.mrb[22].mxu0 }
 0x233   : > { %v1105_v33 = vadd.f32 %v1103_v26, %v1045_v17  ;;  %v1104_v34 = vmul.f32 %v1102_v22, %v1095_v31  ;;  %v2283_v36 = vpop.f32.mrb[15].mxu1  ;;  %v2319_v39 = vpop.f32.mrb[23].mxu0  ;;  %v1284_v57 = vmul.f32 %v2033_v46, %v1275_v32  ;;  %v2459_v17 = vld [vmem:[%s3072_s8] sm:$0xff]   ;;  %v2464_v22 = vld [vmem:[%s3072_s8 + $0x28] sm:$0xff]  }
 0x234   : > { %2341 = vmatpush3.bf16.msra.mxu0 %v2459_v17  ;;  %v2472_v46 = vld [vmem:[%s3074_s10 + $0x28] sm:$0xff]   ;;  %v2487_v17 = vld [vmem:[%s3078_s14 + $0x20] sm:$0xff]  }
 0x235   : > { %v1165_v40 = vadd.f32 %v1163_v27, %v1105_v33  ;;  %v1106_v42 = vadd.f32 %v1104_v34, %v1046_v19  ;;  %2342 = vmatprep.subr.bf16.mxu0 %v2559_v12  ;;  %v2461_v19 = vld [vmem:[%s3072_s8 + $0x10] sm:$0xff]  }
 0x237   : > { %v1166_v43 = vadd.f32 %v1164_v35, %v1106_v42  ;;  %v2468_v42 = vld [vmem:[%s3074_s10 + $0x8] sm:$0xff]  }
 0x238   : > { %2343 = vmatpush3.bf16.msra.mxu0 %v2460_v18  ;;  %v2488_v18 = vld [vmem:[%s3078_s14 + $0x28] sm:$0xff]  }
 0x239   : > { %2344 = vmatprep.subr.bf16.mxu0 %v2559_v12 }
 0x23c   : > { %2345 = vmatpush3.bf16.msra.mxu0 %v2461_v19  ;;  %v2489_v19 = vld [vmem:[%s3078_s14 + $0x30] sm:$0xff]  }
 0x23d   : > { %2346 = vmatprep.subr.bf16.mxu0 %v2559_v12 }
 0x240   : > { %v1212_v47 = vpop.f32.mrb[16].mxu1  ;;  %2347 = vmatpush3.bf16.msra.mxu0 %v2462_v20  ;;  %v2490_v20 = vld [vmem:[%s3078_s14 + $0x38] sm:$0xff]  }
 0x241   : > { %v1223_v49 = vmul.f32 %v1222_v45, %v1212_v47  ;;  %v2306_v50 = vpop.f32.mrb[17].mxu1  ;;  %2348 = vmatprep.subr.bf16.mxu0 %v2559_v12  ;;  %v2473_v47 = vld [vmem:[%s3074_s10 + $0x30] sm:$0xff]  }
 0x242   : > { %v1215_v51 = vpop.f32.mrb[18].mxu1  ;;  %v2476_v50 = vld [vmem:[%s3076_s12 + $0x8] sm:$0xff]  }
 0x243   : > { %v1225_v52 = vadd.f32 %v1223_v49, %v1165_v40  ;;  %v1224_v53 = vmul.f32 %v1222_v45, %v1215_v51  ;;  %v2307_v54 = vpop.f32.mrb[19].mxu1  ;;  %v2467_v40 = vld [vmem:[%s3074_s10] sm:$0xff]   ;;  %v2477_v51 = vld [vmem:[%s3076_s12 + $0x10] sm:$0xff]  }
 0x244   : > { %2349 = vmatpush3.bf16.msra.mxu0 %v2463_v21  ;;  %v2471_v45 = vld [vmem:[%s3074_s10 + $0x20] sm:$0xff]   ;;  %v2480_v54 = vld [vmem:[%s3076_s12 + $0x28] sm:$0xff]  }
 0x245   : > { %v1285_v56 = vadd.f32 %v1283_v48, %v1225_v52  ;;  %v1226_v58 = vadd.f32 %v1224_v53, %v1166_v43  ;;  %2350 = vmatprep.subr.bf16.mxu0 %v2559_v12  ;;  %v2469_v43 = vld [vmem:[%s3074_s10 + $0x10] sm:$0xff]   ;;  %v2474_v48 = vld [vmem:[%s3074_s10 + $0x38] sm:$0xff]   ;;  %v2475_v49 = vld [vmem:[%s3076_s12] sm:$0xff]  }
 0x246   : > { %v2478_v52 = vld [vmem:[%s3076_s12 + $0x18] sm:$0xff]   ;;  %v2479_v53 = vld [vmem:[%s3076_s12 + $0x20] sm:$0xff]  }
 0x247   : > { %v1294_v41 = vadd.f32 %v2034_v55, %v1285_v56  ;;  %v1286_v59 = vadd.f32 %v1284_v57, %v1226_v58  ;;  %v2064_v21 = vld [vmem:[%s3077_s13] ss:$0 sm:$0xff] }
 0x248   : > { %2351 = vmatpush3.bf16.msra.mxu0 %v2464_v22 }
 0x249   : > { %v2035_v60 = vmul.f32 -1.442695, %v1294_v41  ;;  %v1295_v61 = vadd.f32 %v2034_v55, %v1286_v59  ;;  %2352 = vmatprep.subr.bf16.mxu0 %v2559_v12  ;;  %v1449_v55 = vld [vmem:[%s3073_s9] sm:$0x1] }
 0x24b   : > { %2523 = vpow2.f32 %v2035_v60  ;;  %v2036_v62 = vmul.f32 -1.442695, %v1295_v61 }
 0x24c   : > { %2353 = vmatpush3.bf16.msra.mxu0 %v2465_v23 }
 0x24d   : > { %2525 = vpow2.f32 %v2036_v62  ;;  %2354 = vmatprep.subr.bf16.mxu0 %v2559_v12 }
 0x250   : > { %2355 = vmatpush3.bf16.msra.mxu0 %v2466_v24 }
 0x251   : > { %2380 = vmatprep.subr.bf16.mxu0 %v2559_v12 }
 0x255   : > { %v2524_v63 = vpop.eup %2523 }
 0x256   : > { %v1302_v0 = vadd.f32 1.0, %v2524_v63 }
 0x257   : > { %v2526_v1 = vpop.eup %2525 }
 0x258   : > { %2527 = vrcp.f32 %v1302_v0  ;;  %v1303_v2 = vadd.f32 1.0, %v2526_v1 }
 0x25a   : > { %2529 = vrcp.f32 %v1303_v2 }
 0x262   : > { %v2528_v3 = vpop.eup %2527 }
 0x263   : > { %v2891_v5 = vmul.f32 %v2528_v3, %v1294_v41 }
 0x264   : > { %v2530_v4 = vpop.eup %2529 }
 0x265   : > { %v2893_v6 = vmul.f32 %v2530_v4, %v1295_v61  ;;  %v2481_v4 = vld [vmem:[%s3076_s12 + $0x30] sm:$0xff]  }
 0x267   : > { %v1310_v7 = vadd.f32 %v2893_v6, %v2891_v5 }
 0x269   : > { %v1311_v8 = vrot.slane %v1310_v7, 4 }
 0x26b   : > { %v1312_v9 = vadd.f32 %v1311_v8, %v1310_v7 }
 0x26d   : > { %v1313_v10 = vrot.slane %v1312_v9, 2 }
 0x26f   : > { %v1314_v11 = vadd.f32 %v1313_v10, %v1312_v9 }
 0x271   : > { %v1315_v13 = vrot.slane %v1314_v11, 1 }
 0x273   : > { %v1316_v14 = vadd.f32 %v1315_v13, %v1314_v11  ;;  %v2483_v13 = vld [vmem:[%s3078_s14] sm:$0xff]  }
 0x275   : > { %v1318_v15 = vmul.f32 0.0625, %v1316_v14  ;;  %v2484_v14 = vld [vmem:[%s3078_s14 + $0x8] sm:$0xff]  }
 0x277   : > { %v1319_v16 = vpack.c.bf16 %v1318_v15, %v1318_v15  ;;  %v2485_v15 = vld [vmem:[%s3078_s14 + $0x10] sm:$0xff]  }
 0x279   : > { %2337 = vmatmul.mubr.bf16.vlgmr.msra.gmra.mrb[20].mxu1 %v1319_v16  ;;  %v2486_v16 = vld [vmem:[%s3078_s14 + $0x18] sm:$0xff]  }
 0x27a   : > { %2376 = vmatprep.mubr.msk.bf16.mxu1 %vm2560_vm0, %v2559_v12  ;;  %2361 = vmatpush3.bf16.msra.mxu1 %v2467_v40 }
 0x27b   : > { %2362 = vmatprep.subr.bf16.mxu1 %v2559_v12 }
 0x27e   : > { %2363 = vmatpush3.bf16.msra.mxu1 %v2468_v42 }
 0x27f   : > { %2364 = vmatprep.subr.bf16.mxu1 %v2559_v12 }
 0x282   : > { %2365 = vmatpush3.bf16.msra.mxu1 %v2469_v43 }
 0x283   : > { %2366 = vmatprep.subr.bf16.mxu1 %v2559_v12 }
 0x286   : > { %2367 = vmatpush3.bf16.msra.mxu1 %v2470_v44 }
 0x287   : > { %2368 = vmatprep.subr.bf16.mxu1 %v2559_v12 }
 0x28a   : > { %2369 = vmatpush3.bf16.msra.mxu1 %v2471_v45 }
 0x28b   : > { %2370 = vmatprep.subr.bf16.mxu1 %v2559_v12 }
 0x28e   : > { %2371 = vmatpush3.bf16.msra.mxu1 %v2472_v46 }
 0x28f   : > { %2372 = vmatprep.subr.bf16.mxu1 %v2559_v12 }
 0x292   : > { %2373 = vmatpush3.bf16.msra.mxu1 %v2473_v47 }
 0x293   : > { %2374 = vmatprep.subr.bf16.mxu1 %v2559_v12 }
 0x296   : > { %2375 = vmatpush3.bf16.msra.mxu1 %v2474_v48 }
 0x297   : > { %2400 = vmatprep.subr.bf16.mxu1 %v2559_v12 }
 0x34c   : > { %v1419_v26 = vpop.f32.mrb[20].mxu1 }
 0x34d   : > { %v1420_v27 = vadd.f32 %v1419_v26, %v1336_v25  ;;  %v2338_v28 = vpop.f32.mrb[21].mxu1 }
 0x34e   : > { %v1422_v29 = vpop.f32.mrb[22].mxu1 }
 0x34f   : > { %v2045_v31 = vmul.f32 -1.442695, %v1420_v27  ;;  %v2339_v32 = vpop.f32.mrb[23].mxu1 }
 0x351   : > { %2531 = vpow2.f32 %v2045_v31 }
 0x35b   : > { %v2532_v33 = vpop.eup %2531 }
 0x35c   : > { %v1428_v34 = vadd.f32 1.0, %v2532_v33 }
 0x35e   : > { %2533 = vrcp.f32 %v1428_v34 }
 0x368   : > { %v2534_v35 = vpop.eup %2533 }
 0x369   : > { %v1431_v36 = vmul.f32 %v2534_v35, %v1420_v27 }
 0x36b   : > { %v1432_v39 = vpack.c.bf16 %v1431_v36, %v1431_v36 }
 0x36d   : > { %2357 = vmatmul.mubr.bf16.vlgmr.msra.gmra.mrb[24].mxu0 %v1432_v39 }
 0x36e   : > { %2396 = vmatprep.mubr.msk.bf16.mxu0 %vm2560_vm0, %v2559_v12  ;;  %2381 = vmatpush3.bf16.msra.mxu0 %v2475_v49 }
 0x36f   : > { %2382 = vmatprep.subr.bf16.mxu0 %v2559_v12 }
 0x372   : > { %2383 = vmatpush3.bf16.msra.mxu0 %v2476_v50  ;;  %v1905_v50 = vand.u32 127, %v801_v30 }
 0x373   : > { %2384 = vmatprep.subr.bf16.mxu0 %v2559_v12 }
 0x374   : > { %vm1906_vm2 = vcmp.ge.s32.totalorder %v1905_v50, 48  ;;  %vm1907_vm3 = vcmp.lt.s32.totalorder %v1905_v50, 51 }
 0x375   : > { %vm3049_vm4 = vmand %vm1906_vm2, %vm1907_vm3 }
 0x376   : > { %2385 = vmatpush3.bf16.msra.mxu0 %v2477_v51  ;;  %v1815_v51 = vld [vmem:[%s3079_s15] sm:$0x1] }
 0x377   : > { %2386 = vmatprep.subr.bf16.mxu0 %v2559_v12 }
 0x37a   : > { %2387 = vmatpush3.bf16.msra.mxu0 %v2478_v52 }
 0x37b   : > { %2388 = vmatprep.subr.bf16.mxu0 %v2559_v12 }
 0x37e   : > { %2389 = vmatpush3.bf16.msra.mxu0 %v2479_v53 }
 0x37f   : > { %2390 = vmatprep.subr.bf16.mxu0 %v2559_v12 }
 0x382   : > { %2391 = vmatpush3.bf16.msra.mxu0 %v2480_v54 }
 0x383   : > { %2392 = vmatprep.subr.bf16.mxu0 %v2559_v12 }
 0x386   : > { %2393 = vmatpush3.bf16.msra.mxu0 %v2481_v4 }
 0x387   : > { %2394 = vmatprep.subr.bf16.mxu0 %v2559_v12 }
 0x38a   : > { %2395 = vmatpush3.bf16.msra.mxu0 %v2482_v37 }
 0x440   : > { %v1532_v56 = vpop.f32.mrb[24].mxu0 }
 0x441   : > { %v1533_v57 = vadd.f32 %v1532_v56, %v1449_v55  ;;  %v2358_v58 = vpop.f32.mrb[25].mxu0 }
 0x442   : > { %v1535_v41 = vpop.f32.mrb[26].mxu0 }
 0x443   : > { %v2054_v59 = vmul.f32 -1.442695, %v1533_v57  ;;  %v2359_v60 = vpop.f32.mrb[27].mxu0 }
 0x445   : > { %2535 = vpow2.f32 %v2054_v59 }
 0x44f   : > { %v2536_v61 = vpop.eup %2535 }
 0x450   : > { %v1541_v62 = vadd.f32 1.0, %v2536_v61 }
 0x452   : > { %2537 = vrcp.f32 %v1541_v62 }
 0x45c   : > { %v2538_v63 = vpop.eup %2537 }
 0x45d   : > { %v1547_v0 = vrot.slane %v2538_v63, %v803_v38  ;;  %v2055_v38 = vld [vmem:[%s3075_s11] ss:$0 sm:$0xff] }
 0x45f   : > { %v1548_v1 = vmul.f32 %v1547_v0, %v2891_v5  ;;  %v1549_v2 = vmul.f32 %v1547_v0, %v2893_v6 }
 0x461   : > { %v1550_v3 = vpack.c.bf16 %v1549_v2, %v1548_v1 }
 0x463   : > { %2377 = vmatmul.mubr.bf16.vlgmr.msra.gmra.mrb[24].mxu1 %v1550_v3 }
 0x464   : > { %2416 = vmatprep.mubr.msk.bf16.mxu1 %vm2560_vm0, %v2559_v12  ;;  %2401 = vmatpush3.bf16.msra.mxu1 %v2483_v13 }
 0x465   : > { %2402 = vmatprep.subr.bf16.mxu1 %v2559_v12 }
 0x468   : > { %2403 = vmatpush3.bf16.msra.mxu1 %v2484_v14 }
 0x469   : > { %2404 = vmatprep.subr.bf16.mxu1 %v2559_v12 }
 0x46c   : > { %2405 = vmatpush3.bf16.msra.mxu1 %v2485_v15 }
 0x46d   : > { %2406 = vmatprep.subr.bf16.mxu1 %v2559_v12 }
 0x470   : > { %2407 = vmatpush3.bf16.msra.mxu1 %v2486_v16 }
 0x471   : > { %2408 = vmatprep.subr.bf16.mxu1 %v2559_v12 }
 0x474   : > { %2409 = vmatpush3.bf16.msra.mxu1 %v2487_v17 }
 0x475   : > { %2410 = vmatprep.subr.bf16.mxu1 %v2559_v12 }
 0x478   : > { %2411 = vmatpush3.bf16.msra.mxu1 %v2488_v18 }
 0x479   : > { %2412 = vmatprep.subr.bf16.mxu1 %v2559_v12 }
 0x47c   : > { %2413 = vmatpush3.bf16.msra.mxu1 %v2489_v19 }
 0x47d   : > { %2414 = vmatprep.subr.bf16.mxu1 %v2559_v12 }
 0x480   : > { %2415 = vmatpush3.bf16.msra.mxu1 %v2490_v20 }
 0x536   : > { %v1656_v5 = vpop.f32.mrb[24].mxu1 }
 0x537   : > { %v2378_v6 = vpop.f32.mrb[25].mxu1  ;;  %v1657_v8 = vadd.f32 %v2055_v38, %v1656_v5 }
 0x538   : > { %v1659_v7 = vpop.f32.mrb[26].mxu1 }
 0x539   : > { %v1660_v9 = vadd.f32 %v2055_v38, %v1659_v7  ;;  %v2379_v10 = vpop.f32.mrb[27].mxu1 }
 0x53b   : > { %v1663_v11 = vpack.c.bf16 %v1660_v9, %v1657_v8 }
 0x53d   : > { %2397 = vmatmul.mubr.bf16.vlgmr.msra.gmra.mrb[28].mxu0 %v1663_v11 }
 0x610   : > { %v1769_v22 = vpop.f32.mrb[28].mxu0 }
 0x611   : > { %v1770_v23 = vadd.f32 %v2064_v21, %v1769_v22  ;;  %v2398_v24 = vpop.f32.mrb[29].mxu0 }
 0x612   : > { %v1772_v25 = vpop.f32.mrb[30].mxu0 }
 0x613   : > { %v2073_v26 = vmul.f32 -1.442695, %v1770_v23  ;;  %v1773_v27 = vadd.f32 %v2064_v21, %v1772_v25  ;;  %v2399_v28 = vpop.f32.mrb[31].mxu0 }
 0x615   : > { %2539 = vpow2.f32 %v2073_v26  ;;  %v2074_v29 = vmul.f32 -1.442695, %v1773_v27 }
 0x617   : > { %2541 = vpow2.f32 %v2074_v29 }
 0x61f   : > { %v2540_v31 = vpop.eup %2539 }
 0x620   : > { %v1782_v32 = vadd.f32 1.0, %v2540_v31 }
 0x621   : > { %v2542_v33 = vpop.eup %2541 }
 0x622   : > { %2543 = vrcp.f32 %v1782_v32  ;;  %v1783_v12 = vadd.f32 1.0, %v2542_v33 }
 0x624   : > { %2545 = vrcp.f32 %v1783_v12 }
 0x62c   : > { %v2544_v34 = vpop.eup %2543 }
 0x62d   : > { %v1788_v36 = vmul.f32 %v2544_v34, %v1770_v23 }
 0x62e   : > { %v2546_v35 = vpop.eup %2545 }
 0x62f   : > { %v1789_v39 = vmul.f32 %v2546_v35, %v1773_v27 }
 0x631   : > { %v1790_v40 = vadd.f32 %v1789_v39, %v1788_v36 }
 0x633   : > { %v1791_v42 = vrot.slane %v1790_v40, 4 }
 0x635   : > { %v1792_v43 = vadd.f32 %v1791_v42, %v1790_v40 }
 0x637   : > { %v1793_v44 = vrot.slane %v1792_v43, 2 }
 0x639   : > { %v1794_v45 = vadd.f32 %v1793_v44, %v1792_v43 }
 0x63b   : > { %v1795_v46 = vrot.slane %v1794_v45, 1 }
 0x63d   : > { %v1796_v47 = vadd.f32 %v1795_v46, %v1794_v45 }
 0x63f   : > { %v1797_v48 = vmul.f32 0.0625, %v1796_v47 }
 0x641   : > { %v1798_v49 = vpack.c.bf16 %v1797_v48, %v1797_v48 }
 0x643   : > { %2417 = vmatmul.mubr.bf16.vlgmr.msra.gmra.mrb[28].mxu1 %v1798_v49 }
 0x716   : > { %v1898_v52 = vpop.f32.mrb[28].mxu1 }
 0x717   : > { %v1899_v54 = vadd.f32 %v1898_v52, %v1815_v51  ;;  %v2418_v55 = vpop.f32.mrb[29].mxu1 }
 0x718   : > { %v1901_v56 = vpop.f32.mrb[30].mxu1 }
 0x719   : > { %v2419_v57 = vpop.f32.mrb[31].mxu1  ;;  %v1909_v30 = vsel %vm3049_vm4, %v1899_v54, -1e+30 }
 0x71a   : > { %v1911_v58 = vsel %vm1910_vm5, %v1909_v30, -inf }
 0x71b   : > { %1912 = vmax.xlane.f32.xlu0 %v1911_v58 }
 0x7a8   : > { %v1913_v41 = vpop.xlane.xlu0 %1912 }
 0x7a9   : > { %v1914_v59 = vsub.f32 %v1909_v30, %v1913_v41 }
 0x7ab   : > { %v1915_v60 = vmul.f32 1.442695, %v1914_v59 }
 0x7ad   : > { %2547 = vpow2.f32 %v1915_v60 }
 0x7b7   : > { %v2548_v61 = vpop.eup %2547 }
 0x7b8   : > { %v1917_v62 = vsel %vm1910_vm5, %v2548_v61, 0.0 }
 0x7b9   : > { %1918 = vadd.xlane.f32.xlu0 %v1917_v62 }
 0x846   : > { %v1919_v63 = vpop.xlane.xlu0 %1918 }
 0x847   : > { %2549 = vrcp.f32 %v1919_v63 }
 0x851   : > { %v2550_v0 = vpop.eup %2549 }
 0x852   : > { %v1921_v1 = vmul.f32 %v2550_v0, %v2548_v61 }
 0x854   : > { %v1922_v2 = vsel %vm3049_vm4, %v1921_v1, %v1899_v54 }
 0x855   : > { %1923 = vst [vmem:[%s517_s17] sm:$0x1] %v1922_v2 }
 0x856 PF: > { %s26_s21 = sadd.s32 1, %s2557_s21  }
 0x857   : > { %p23_p4 = scmp.ge.s32.totalorder %s26_s21, 4  }
 0x859   :  { %25 = sbr.rel (!%p23_p4) target bundleno = 2 (0x2), region = 122 }

</bundles_post_ra>
